<compile_context>
chip_gen: v6e
topology: v6e:2x2x1
jax: 0.10.0
libtpu: 0.0.40
codegen_flags: <defaults>
</compile_context>

<pallas_src>
import functools

import jax
import jax.numpy as jnp
from jax.experimental import pallas as pl
from jax.experimental.pallas import tpu as pltpu


# ----------------------------------------------------------------------------
# Kernel 1: fused 3x3 "same" conv + bias + ReLU + 2x2/2 max-pool
# ----------------------------------------------------------------------------
def _conv3x3_relu_pool_kernel(x_ref, w_ref, b_ref, o_ref, row_max_ref,
                              *, H, W, Cin, Cout):
    """One grid step computes one POOLED output row (pool window = conv rows
    2i, 2i+1) for one image.

    x_ref:       (1, H+2, W+2, Cin)  bf16   spatially padded NHWC image
    w_ref:       (9, Cin, Cout)      bf16   tap-major weights, tap = kh*3 + kw
    b_ref:       (1, Cout)           f32
    o_ref:       (1, 1, W//2, Cout)  bf16   one pooled row
    row_max_ref: VMEM (W, Cout)      f32    scratch (max of the two conv rows)
    """
    i = pl.program_id(1)          # pooled-row index
    Wo = W // 2
    bias = b_ref[...]             # hoisted once; broadcasts over (W, Cout)

    def conv_row(h):
        # in-kernel im2col: 9 shifted (W, Cin) windows of the padded image.
        acc = jnp.zeros((W, Cout), jnp.float32)
        for dh in range(3):
            for dw in range(3):
                lhs = x_ref[0, h + dh, pl.ds(dw, W), :]     # (W, Cin) bf16
                tap = w_ref[dh * 3 + dw]                     # (Cin, Cout) bf16
                if Cin < 8:
                    # Degenerate contraction (conv1, Cin=1): cheaper & safer on
                    # the VPU as a broadcast multiply than a K=1 MXU matmul.
                    acc = acc + lhs.astype(jnp.float32) * tap.astype(jnp.float32)
                else:
                    acc = acc + jnp.dot(lhs, tap,
                                        preferred_element_type=jnp.float32)
        return jnp.maximum(acc + bias, 0.0)                  # bias + ReLU (f32)

    h0 = 2 * i
    # max over the two conv rows of the 2x2 pooling window
    row_max_ref[...] = jnp.maximum(conv_row(h0), conv_row(h0 + 1))
    # max over the two columns of the window via strided sublane reads
    pooled = jnp.maximum(row_max_ref[pl.ds(0, Wo, stride=2), :],
                         row_max_ref[pl.ds(1, Wo, stride=2), :])
    o_ref[0, 0] = pooled.astype(o_ref.dtype)


def conv3x3_relu_pool(x_padded, w_taps, bias):
    """x_padded: (B, H+2, W+2, Cin) bf16; w_taps: (9, Cin, Cout) bf16;
    bias: (1, Cout) f32  ->  (B, H//2, W//2, Cout) bf16 (relu(conv) max-pooled)."""
    B, Hp, Wp, Cin = x_padded.shape
    H, W = Hp - 2, Wp - 2
    Ho, Wo = H // 2, W // 2
    Cout = w_taps.shape[-1]
    kernel = functools.partial(_conv3x3_relu_pool_kernel,
                               H=H, W=W, Cin=Cin, Cout=Cout)
    return pl.pallas_call(
        kernel,
        out_shape=jax.ShapeDtypeStruct((B, Ho, Wo, Cout), jnp.bfloat16),
        grid=(B, Ho),
        in_specs=[
            # whole (small) padded image; block index constant in the row axis,
            # so it stays resident in VMEM across the per-image row loop.
            pl.BlockSpec((1, Hp, Wp, Cin), lambda bi, ri: (bi, 0, 0, 0)),
            pl.BlockSpec((9, Cin, Cout), lambda bi, ri: (0, 0, 0)),
            pl.BlockSpec((1, Cout), lambda bi, ri: (0, 0)),
        ],
        out_specs=pl.BlockSpec((1, 1, Wo, Cout), lambda bi, ri: (bi, ri, 0, 0)),
        scratch_shapes=[pltpu.VMEM((W, Cout), jnp.float32)],
        compiler_params=pltpu.CompilerParams(
            dimension_semantics=("parallel", "arbitrary")),
    )(x_padded, w_taps, bias)


# ----------------------------------------------------------------------------
# Kernel 2: fused fc1 (GEMM + bias + ReLU) -> fc2 (GEMM + bias), M-tiled grid
# ----------------------------------------------------------------------------
def _mlp_kernel(x_ref, w1_ref, b1_ref, w2_ref, b2_ref, o_ref):
    h = jnp.dot(x_ref[...], w1_ref[...], preferred_element_type=jnp.float32)
    h = jnp.maximum(h + b1_ref[...], 0.0).astype(w2_ref.dtype)   # bf16 for MXU
    out = jnp.dot(h, w2_ref[...], preferred_element_type=jnp.float32)
    o_ref[...] = (out + b2_ref[...]).astype(o_ref.dtype)


def mlp_fused(x, w1, b1, w2, b2, *, block_m=512):
    """x:(B,K1) bf16, w1:(K1,H) bf16, b1:(1,H) f32, w2:(H,N) bf16, b2:(1,N) f32
       -> (B, N) f32.  Batch axis tiled (block_m rows) and marked parallel."""
    B, K1 = x.shape
    Hdim = w1.shape[1]
    N = w2.shape[1]
    if B <= block_m:
        tm, Bp = B, B                       # single full-dim block
    else:
        tm = block_m
        Bp = pl.cdiv(B, tm) * tm
        if Bp != B:
            x = jnp.pad(x, ((0, Bp - B), (0, 0)))
    out = pl.pallas_call(
        _mlp_kernel,
        out_shape=jax.ShapeDtypeStruct((Bp, N), jnp.float32),
        grid=(Bp // tm,),
        in_specs=[
            pl.BlockSpec((tm, K1), lambda i: (i, 0)),
            pl.BlockSpec((K1, Hdim), lambda i: (0, 0)),   # resident weights
            pl.BlockSpec((1, Hdim), lambda i: (0, 0)),
            pl.BlockSpec((Hdim, N), lambda i: (0, 0)),
            pl.BlockSpec((1, N), lambda i: (0, 0)),
        ],
        out_specs=pl.BlockSpec((tm, N), lambda i: (i, 0)),
        compiler_params=pltpu.CompilerParams(
            dimension_semantics=("parallel",)),
    )(x, w1, b1, w2, b2)
    return out[:B]


# ----------------------------------------------------------------------------
# Parameters (PyTorch layouts) and one-time conversion to kernel layouts
# ----------------------------------------------------------------------------
def init_params(key):
    ks = jax.random.split(key, 8)
    s = 0.05
    return {
        "conv1_w": s * jax.random.normal(ks[0], (32, 1, 3, 3), jnp.float32),
        "conv1_b": s * jax.random.normal(ks[1], (32,), jnp.float32),
        "conv2_w": s * jax.random.normal(ks[2], (64, 32, 3, 3), jnp.float32),
        "conv2_b": s * jax.random.normal(ks[3], (64,), jnp.float32),
        "fc1_w": s * jax.random.normal(ks[4], (128, 64 * 7 * 7), jnp.float32),
        "fc1_b": s * jax.random.normal(ks[5], (128,), jnp.float32),
        "fc2_w": s * jax.random.normal(ks[6], (10, 128), jnp.float32),
        "fc2_b": s * jax.random.normal(ks[7], (10,), jnp.float32),
    }


def prepare_params(p):
    """One-time conversion of PyTorch-layout params to kernel layouts:
    tap-major bf16 conv weights with Cin/Cout zero-padded to 128, fc1 rows
    permuted to NHWC flatten order, fc2 N padded to 128."""
    def conv_prep(w, b, cin_pad, cout_pad):
        O, I, KH, KW = w.shape
        taps = jnp.transpose(w, (2, 3, 1, 0)).reshape(KH * KW, I, O)  # (9,I,O)
        taps = jnp.pad(taps, ((0, 0), (0, cin_pad - I), (0, cout_pad - O)))
        bias = jnp.pad(b, (0, cout_pad - O)).reshape(1, cout_pad)
        return taps.astype(jnp.bfloat16), bias.astype(jnp.float32)

    c1w, c1b = conv_prep(p["conv1_w"], p["conv1_b"], 1, 128)
    c2w, c2b = conv_prep(p["conv2_w"], p["conv2_b"], 128, 128)

    # fc1: PyTorch flattens (C,H,W); re-order rows to the kernel's NHWC
    # (H, W, Cpad) flatten so no per-forward transpose is needed.
    w1 = p["fc1_w"].reshape(128, 64, 7, 7)          # (out, c, h, w)
    w1 = jnp.transpose(w1, (2, 3, 1, 0))            # (h, w, c, out)
    w1 = jnp.pad(w1, ((0, 0), (0, 0), (0, 128 - 64), (0, 0)))
    w1 = w1.reshape(7 * 7 * 128, 128)

    w2 = jnp.pad(p["fc2_w"].T, ((0, 0), (0, 128 - 10)))     # (128, 128)
    b2 = jnp.pad(p["fc2_b"], (0, 128 - 10)).reshape(1, 128)

    return {
        "conv1_w": c1w, "conv1_b": c1b,
        "conv2_w": c2w, "conv2_b": c2b,
        "fc1_w": w1.astype(jnp.bfloat16),
        "fc1_b": p["fc1_b"].reshape(1, 128).astype(jnp.float32),
        "fc2_w": w2.astype(jnp.bfloat16),
        "fc2_b": b2.astype(jnp.float32),
    }


# ----------------------------------------------------------------------------
# TeacherModel forward
# ----------------------------------------------------------------------------
@jax.jit
def teacher_forward(kp, x_nchw):
    """x_nchw: (B, 1, 28, 28) float32  ->  logits (B, 10) float32."""
    B = x_nchw.shape[0]
    x = jnp.transpose(x_nchw, (0, 2, 3, 1)).astype(jnp.bfloat16)  # NHWC (C=1: free)
    x = jnp.pad(x, ((0, 0), (1, 1), (1, 1), (0, 0)))              # spatial zero-pad
    x = conv3x3_relu_pool(x, kp["conv1_w"], kp["conv1_b"])        # (B,14,14,128)
    x = jnp.pad(x, ((0, 0), (1, 1), (1, 1), (0, 0)))
    x = conv3x3_relu_pool(x, kp["conv2_w"], kp["conv2_b"])        # (B,7,7,128)
    x = x.reshape(B, 7 * 7 * 128)                                 # free NHWC flatten
    logits = mlp_fused(x, kp["fc1_w"], kp["fc1_b"], kp["fc2_w"], kp["fc2_b"])
    return logits[:, :10]


# ----------------------------------------------------------------------------
# Pure-JAX f32 reference (mirrors the PyTorch module) for a sanity check
# ----------------------------------------------------------------------------
@jax.jit
def reference_forward(params, x_nchw):
    def pool(x):  # NCHW 2x2/2 max pool
        B, C, H, W = x.shape
        return x.reshape(B, C, H // 2, 2, W // 2, 2).max(axis=(3, 5))

    dn = ("NCHW", "OIHW", "NCHW")
    x = jax.lax.conv_general_dilated(x_nchw, params["conv1_w"], (1, 1),
                                     ((1, 1), (1, 1)), dimension_numbers=dn)
    x = pool(jax.nn.relu(x + params["conv1_b"][None, :, None, None]))
    x = jax.lax.conv_general_dilated(x, params["conv2_w"], (1, 1),
                                     ((1, 1), (1, 1)), dimension_numbers=dn)
    x = pool(jax.nn.relu(x + params["conv2_b"][None, :, None, None]))
    x = x.reshape(x.shape[0], -1)                       # (C,H,W) flatten
    x = jax.nn.relu(x @ params["fc1_w"].T + params["fc1_b"])
    return x @ params["fc2_w"].T + params["fc2_b"]


if __name__ == "__main__":
    key = jax.random.PRNGKey(0)
    kpar, kin = jax.random.split(key)
    params = init_params(kpar)
    kparams = prepare_params(params)
    x = jax.random.normal(kin, (2, 1, 28, 28), jnp.float32)

    logits = teacher_forward(kparams, x)
    jax.block_until_ready(logits)
    assert logits.shape == (2, 10) and logits.dtype == jnp.float32

    ref = reference_forward(params, x)
    err = float(jnp.max(jnp.abs(logits - ref)))
    assert err < 5e-2, f"max abs error vs reference too large: {err}"
    print("KERNEL_OK")
</pallas_src>

<mosaic_0001>
module attributes {stable_mosaic.version = 11 : i64} {
  func.func @_conv3x3_relu_pool_kernel(%arg0: i32, %arg1: i32, %arg2: memref<1x30x30x1xbf16, #tpu.memory_space<vmem>>, %arg3: memref<9x1x128xbf16, #tpu.memory_space<vmem>>, %arg4: memref<1x128xf32, #tpu.memory_space<vmem>>, %arg5: memref<1x1x14x128xbf16, #tpu.memory_space<vmem>>, %arg6: memref<28x128xf32, #tpu.memory_space<vmem>>) attributes {dimension_semantics = [#tpu.dimension_semantics<parallel>, #tpu.dimension_semantics<arbitrary>], iteration_bounds = array<i64: 2, 14>, scalar_prefetch = 0 : i64, scratch_operands = 1 : i64, tpu.core_type = #tpu.core_type<tc>, window_params = [{transform_indices = @transform_0, window_bounds = array<i64: 1, 30, 30, 1>}, {pipeline_mode = #tpu.pipeline_mode<synchronous>, transform_indices = @transform_1, window_bounds = array<i64: 9, 1, 128>}, {pipeline_mode = #tpu.pipeline_mode<synchronous>, transform_indices = @transform_2, window_bounds = array<i64: 1, 128>}, {transform_indices = @transform_3, window_bounds = array<i64: 1, 1, 14, 128>}]} {
    %c0 = arith.constant 0 : index
    %c0_0 = arith.constant 0 : index
    %0 = vector.load %arg4[%c0, %c0_0] : memref<1x128xf32, #tpu.memory_space<vmem>>, vector<1x128xf32>
    %c2_i32 = arith.constant 2 : i32
    %1 = arith.muli %c2_i32, %arg1 : i32
    %cst = arith.constant 0.000000e+00 : f32
    %2 = vector.broadcast %cst : f32 to vector<28x128xf32>
    %c0_i32 = arith.constant 0 : i32
    %3 = arith.addi %1, %c0_i32 : i32
    %c0_1 = arith.constant 0 : index
    %4 = arith.index_cast %3 : i32 to index
    %c0_2 = arith.constant 0 : index
    %c0_3 = arith.constant 0 : index
    %5 = vector.load %arg2[%c0_1, %4, %c0_2, %c0_3] : memref<1x30x30x1xbf16, #tpu.memory_space<vmem>>, vector<1x1x28x1xbf16>
    %6 = vector.shape_cast %5 : vector<1x1x28x1xbf16> to vector<28x1xbf16>
    %c0_4 = arith.constant 0 : index
    %c0_5 = arith.constant 0 : index
    %c0_6 = arith.constant 0 : index
    %7 = vector.load %arg3[%c0_4, %c0_5, %c0_6] : memref<9x1x128xbf16, #tpu.memory_space<vmem>>, vector<1x1x128xbf16>
    %8 = vector.shape_cast %7 : vector<1x1x128xbf16> to vector<1x128xbf16>
    %9 = arith.extf %6 : vector<28x1xbf16> to vector<28x1xf32>
    %10 = arith.extf %8 : vector<1x128xbf16> to vector<1x128xf32>
    %11 = vector.broadcast %9 : vector<28x1xf32> to vector<28x128xf32>
    %12 = vector.broadcast %10 : vector<1x128xf32> to vector<28x128xf32>
    %13 = arith.mulf %11, %12 : vector<28x128xf32>
    %14 = arith.addf %2, %13 : vector<28x128xf32>
    %c0_i32_7 = arith.constant 0 : i32
    %15 = arith.addi %1, %c0_i32_7 : i32
    %c0_8 = arith.constant 0 : index
    %16 = arith.index_cast %15 : i32 to index
    %c1 = arith.constant 1 : index
    %c0_9 = arith.constant 0 : index
    %17 = vector.load %arg2[%c0_8, %16, %c1, %c0_9] : memref<1x30x30x1xbf16, #tpu.memory_space<vmem>>, vector<1x1x28x1xbf16>
    %18 = vector.shape_cast %17 : vector<1x1x28x1xbf16> to vector<28x1xbf16>
    %c1_10 = arith.constant 1 : index
    %c0_11 = arith.constant 0 : index
    %c0_12 = arith.constant 0 : index
    %19 = vector.load %arg3[%c1_10, %c0_11, %c0_12] : memref<9x1x128xbf16, #tpu.memory_space<vmem>>, vector<1x1x128xbf16>
    %20 = vector.shape_cast %19 : vector<1x1x128xbf16> to vector<1x128xbf16>
    %21 = arith.extf %18 : vector<28x1xbf16> to vector<28x1xf32>
    %22 = arith.extf %20 : vector<1x128xbf16> to vector<1x128xf32>
    %23 = vector.broadcast %21 : vector<28x1xf32> to vector<28x128xf32>
    %24 = vector.broadcast %22 : vector<1x128xf32> to vector<28x128xf32>
    %25 = arith.mulf %23, %24 : vector<28x128xf32>
    %26 = arith.addf %14, %25 : vector<28x128xf32>
    %c0_i32_13 = arith.constant 0 : i32
    %27 = arith.addi %1, %c0_i32_13 : i32
    %c0_14 = arith.constant 0 : index
    %28 = arith.index_cast %27 : i32 to index
    %c2 = arith.constant 2 : index
    %c0_15 = arith.constant 0 : index
    %29 = vector.load %arg2[%c0_14, %28, %c2, %c0_15] : memref<1x30x30x1xbf16, #tpu.memory_space<vmem>>, vector<1x1x28x1xbf16>
    %30 = vector.shape_cast %29 : vector<1x1x28x1xbf16> to vector<28x1xbf16>
    %c2_16 = arith.constant 2 : index
    %c0_17 = arith.constant 0 : index
    %c0_18 = arith.constant 0 : index
    %31 = vector.load %arg3[%c2_16, %c0_17, %c0_18] : memref<9x1x128xbf16, #tpu.memory_space<vmem>>, vector<1x1x128xbf16>
    %32 = vector.shape_cast %31 : vector<1x1x128xbf16> to vector<1x128xbf16>
    %33 = arith.extf %30 : vector<28x1xbf16> to vector<28x1xf32>
    %34 = arith.extf %32 : vector<1x128xbf16> to vector<1x128xf32>
    %35 = vector.broadcast %33 : vector<28x1xf32> to vector<28x128xf32>
    %36 = vector.broadcast %34 : vector<1x128xf32> to vector<28x128xf32>
    %37 = arith.mulf %35, %36 : vector<28x128xf32>
    %38 = arith.addf %26, %37 : vector<28x128xf32>
    %c1_i32 = arith.constant 1 : i32
    %39 = arith.addi %1, %c1_i32 : i32
    %c0_19 = arith.constant 0 : index
    %40 = arith.index_cast %39 : i32 to index
    %c0_20 = arith.constant 0 : index
    %c0_21 = arith.constant 0 : index
    %41 = vector.load %arg2[%c0_19, %40, %c0_20, %c0_21] : memref<1x30x30x1xbf16, #tpu.memory_space<vmem>>, vector<1x1x28x1xbf16>
    %42 = vector.shape_cast %41 : vector<1x1x28x1xbf16> to vector<28x1xbf16>
    %c3 = arith.constant 3 : index
    %c0_22 = arith.constant 0 : index
    %c0_23 = arith.constant 0 : index
    %43 = vector.load %arg3[%c3, %c0_22, %c0_23] : memref<9x1x128xbf16, #tpu.memory_space<vmem>>, vector<1x1x128xbf16>
    %44 = vector.shape_cast %43 : vector<1x1x128xbf16> to vector<1x128xbf16>
    %45 = arith.extf %42 : vector<28x1xbf16> to vector<28x1xf32>
    %46 = arith.extf %44 : vector<1x128xbf16> to vector<1x128xf32>
    %47 = vector.broadcast %45 : vector<28x1xf32> to vector<28x128xf32>
    %48 = vector.broadcast %46 : vector<1x128xf32> to vector<28x128xf32>
    %49 = arith.mulf %47, %48 : vector<28x128xf32>
    %50 = arith.addf %38, %49 : vector<28x128xf32>
    %c1_i32_24 = arith.constant 1 : i32
    %51 = arith.addi %1, %c1_i32_24 : i32
    %c0_25 = arith.constant 0 : index
    %52 = arith.index_cast %51 : i32 to index
    %c1_26 = arith.constant 1 : index
    %c0_27 = arith.constant 0 : index
    %53 = vector.load %arg2[%c0_25, %52, %c1_26, %c0_27] : memref<1x30x30x1xbf16, #tpu.memory_space<vmem>>, vector<1x1x28x1xbf16>
    %54 = vector.shape_cast %53 : vector<1x1x28x1xbf16> to vector<28x1xbf16>
    %c4 = arith.constant 4 : index
    %c0_28 = arith.constant 0 : index
    %c0_29 = arith.constant 0 : index
    %55 = vector.load %arg3[%c4, %c0_28, %c0_29] : memref<9x1x128xbf16, #tpu.memory_space<vmem>>, vector<1x1x128xbf16>
    %56 = vector.shape_cast %55 : vector<1x1x128xbf16> to vector<1x128xbf16>
    %57 = arith.extf %54 : vector<28x1xbf16> to vector<28x1xf32>
    %58 = arith.extf %56 : vector<1x128xbf16> to vector<1x128xf32>
    %59 = vector.broadcast %57 : vector<28x1xf32> to vector<28x128xf32>
    %60 = vector.broadcast %58 : vector<1x128xf32> to vector<28x128xf32>
    %61 = arith.mulf %59, %60 : vector<28x128xf32>
    %62 = arith.addf %50, %61 : vector<28x128xf32>
    %c1_i32_30 = arith.constant 1 : i32
    %63 = arith.addi %1, %c1_i32_30 : i32
    %c0_31 = arith.constant 0 : index
    %64 = arith.index_cast %63 : i32 to index
    %c2_32 = arith.constant 2 : index
    %c0_33 = arith.constant 0 : index
    %65 = vector.load %arg2[%c0_31, %64, %c2_32, %c0_33] : memref<1x30x30x1xbf16, #tpu.memory_space<vmem>>, vector<1x1x28x1xbf16>
    %66 = vector.shape_cast %65 : vector<1x1x28x1xbf16> to vector<28x1xbf16>
    %c5 = arith.constant 5 : index
    %c0_34 = arith.constant 0 : index
    %c0_35 = arith.constant 0 : index
    %67 = vector.load %arg3[%c5, %c0_34, %c0_35] : memref<9x1x128xbf16, #tpu.memory_space<vmem>>, vector<1x1x128xbf16>
    %68 = vector.shape_cast %67 : vector<1x1x128xbf16> to vector<1x128xbf16>
    %69 = arith.extf %66 : vector<28x1xbf16> to vector<28x1xf32>
    %70 = arith.extf %68 : vector<1x128xbf16> to vector<1x128xf32>
    %71 = vector.broadcast %69 : vector<28x1xf32> to vector<28x128xf32>
    %72 = vector.broadcast %70 : vector<1x128xf32> to vector<28x128xf32>
    %73 = arith.mulf %71, %72 : vector<28x128xf32>
    %74 = arith.addf %62, %73 : vector<28x128xf32>
    %c2_i32_36 = arith.constant 2 : i32
    %75 = arith.addi %1, %c2_i32_36 : i32
    %c0_37 = arith.constant 0 : index
    %76 = arith.index_cast %75 : i32 to index
    %c0_38 = arith.constant 0 : index
    %c0_39 = arith.constant 0 : index
    %77 = vector.load %arg2[%c0_37, %76, %c0_38, %c0_39] : memref<1x30x30x1xbf16, #tpu.memory_space<vmem>>, vector<1x1x28x1xbf16>
    %78 = vector.shape_cast %77 : vector<1x1x28x1xbf16> to vector<28x1xbf16>
    %c6 = arith.constant 6 : index
    %c0_40 = arith.constant 0 : index
    %c0_41 = arith.constant 0 : index
    %79 = vector.load %arg3[%c6, %c0_40, %c0_41] : memref<9x1x128xbf16, #tpu.memory_space<vmem>>, vector<1x1x128xbf16>
    %80 = vector.shape_cast %79 : vector<1x1x128xbf16> to vector<1x128xbf16>
    %81 = arith.extf %78 : vector<28x1xbf16> to vector<28x1xf32>
    %82 = arith.extf %80 : vector<1x128xbf16> to vector<1x128xf32>
    %83 = vector.broadcast %81 : vector<28x1xf32> to vector<28x128xf32>
    %84 = vector.broadcast %82 : vector<1x128xf32> to vector<28x128xf32>
    %85 = arith.mulf %83, %84 : vector<28x128xf32>
    %86 = arith.addf %74, %85 : vector<28x128xf32>
    %c2_i32_42 = arith.constant 2 : i32
    %87 = arith.addi %1, %c2_i32_42 : i32
    %c0_43 = arith.constant 0 : index
    %88 = arith.index_cast %87 : i32 to index
    %c1_44 = arith.constant 1 : index
    %c0_45 = arith.constant 0 : index
    %89 = vector.load %arg2[%c0_43, %88, %c1_44, %c0_45] : memref<1x30x30x1xbf16, #tpu.memory_space<vmem>>, vector<1x1x28x1xbf16>
    %90 = vector.shape_cast %89 : vector<1x1x28x1xbf16> to vector<28x1xbf16>
    %c7 = arith.constant 7 : index
    %c0_46 = arith.constant 0 : index
    %c0_47 = arith.constant 0 : index
    %91 = vector.load %arg3[%c7, %c0_46, %c0_47] : memref<9x1x128xbf16, #tpu.memory_space<vmem>>, vector<1x1x128xbf16>
    %92 = vector.shape_cast %91 : vector<1x1x128xbf16> to vector<1x128xbf16>
    %93 = arith.extf %90 : vector<28x1xbf16> to vector<28x1xf32>
    %94 = arith.extf %92 : vector<1x128xbf16> to vector<1x128xf32>
    %95 = vector.broadcast %93 : vector<28x1xf32> to vector<28x128xf32>
    %96 = vector.broadcast %94 : vector<1x128xf32> to vector<28x128xf32>
    %97 = arith.mulf %95, %96 : vector<28x128xf32>
    %98 = arith.addf %86, %97 : vector<28x128xf32>
    %c2_i32_48 = arith.constant 2 : i32
    %99 = arith.addi %1, %c2_i32_48 : i32
    %c0_49 = arith.constant 0 : index
    %100 = arith.index_cast %99 : i32 to index
    %c2_50 = arith.constant 2 : index
    %c0_51 = arith.constant 0 : index
    %101 = vector.load %arg2[%c0_49, %100, %c2_50, %c0_51] : memref<1x30x30x1xbf16, #tpu.memory_space<vmem>>, vector<1x1x28x1xbf16>
    %102 = vector.shape_cast %101 : vector<1x1x28x1xbf16> to vector<28x1xbf16>
    %c8 = arith.constant 8 : index
    %c0_52 = arith.constant 0 : index
    %c0_53 = arith.constant 0 : index
    %103 = vector.load %arg3[%c8, %c0_52, %c0_53] : memref<9x1x128xbf16, #tpu.memory_space<vmem>>, vector<1x1x128xbf16>
    %104 = vector.shape_cast %103 : vector<1x1x128xbf16> to vector<1x128xbf16>
    %105 = arith.extf %102 : vector<28x1xbf16> to vector<28x1xf32>
    %106 = arith.extf %104 : vector<1x128xbf16> to vector<1x128xf32>
    %107 = vector.broadcast %105 : vector<28x1xf32> to vector<28x128xf32>
    %108 = vector.broadcast %106 : vector<1x128xf32> to vector<28x128xf32>
    %109 = arith.mulf %107, %108 : vector<28x128xf32>
    %110 = arith.addf %98, %109 : vector<28x128xf32>
    %111 = vector.broadcast %0 : vector<1x128xf32> to vector<28x128xf32>
    %112 = arith.addf %110, %111 : vector<28x128xf32>
    %cst_54 = arith.constant 0.000000e+00 : f32
    %113 = vector.broadcast %cst_54 : f32 to vector<28x128xf32>
    %114 = arith.maximumf %112, %113 : vector<28x128xf32>
    %c1_i32_55 = arith.constant 1 : i32
    %115 = arith.addi %1, %c1_i32_55 : i32
    %cst_56 = arith.constant 0.000000e+00 : f32
    %116 = vector.broadcast %cst_56 : f32 to vector<28x128xf32>
    %c0_i32_57 = arith.constant 0 : i32
    %117 = arith.addi %115, %c0_i32_57 : i32
    %c0_58 = arith.constant 0 : index
    %118 = arith.index_cast %117 : i32 to index
    %c0_59 = arith.constant 0 : index
    %c0_60 = arith.constant 0 : index
    %119 = vector.load %arg2[%c0_58, %118, %c0_59, %c0_60] : memref<1x30x30x1xbf16, #tpu.memory_space<vmem>>, vector<1x1x28x1xbf16>
    %120 = vector.shape_cast %119 : vector<1x1x28x1xbf16> to vector<28x1xbf16>
    %c0_61 = arith.constant 0 : index
    %c0_62 = arith.constant 0 : index
    %c0_63 = arith.constant 0 : index
    %121 = vector.load %arg3[%c0_61, %c0_62, %c0_63] : memref<9x1x128xbf16, #tpu.memory_space<vmem>>, vector<1x1x128xbf16>
    %122 = vector.shape_cast %121 : vector<1x1x128xbf16> to vector<1x128xbf16>
    %123 = arith.extf %120 : vector<28x1xbf16> to vector<28x1xf32>
    %124 = arith.extf %122 : vector<1x128xbf16> to vector<1x128xf32>
    %125 = vector.broadcast %123 : vector<28x1xf32> to vector<28x128xf32>
    %126 = vector.broadcast %124 : vector<1x128xf32> to vector<28x128xf32>
    %127 = arith.mulf %125, %126 : vector<28x128xf32>
    %128 = arith.addf %116, %127 : vector<28x128xf32>
    %c0_i32_64 = arith.constant 0 : i32
    %129 = arith.addi %115, %c0_i32_64 : i32
    %c0_65 = arith.constant 0 : index
    %130 = arith.index_cast %129 : i32 to index
    %c1_66 = arith.constant 1 : index
    %c0_67 = arith.constant 0 : index
    %131 = vector.load %arg2[%c0_65, %130, %c1_66, %c0_67] : memref<1x30x30x1xbf16, #tpu.memory_space<vmem>>, vector<1x1x28x1xbf16>
    %132 = vector.shape_cast %131 : vector<1x1x28x1xbf16> to vector<28x1xbf16>
    %c1_68 = arith.constant 1 : index
    %c0_69 = arith.constant 0 : index
    %c0_70 = arith.constant 0 : index
    %133 = vector.load %arg3[%c1_68, %c0_69, %c0_70] : memref<9x1x128xbf16, #tpu.memory_space<vmem>>, vector<1x1x128xbf16>
    %134 = vector.shape_cast %133 : vector<1x1x128xbf16> to vector<1x128xbf16>
    %135 = arith.extf %132 : vector<28x1xbf16> to vector<28x1xf32>
    %136 = arith.extf %134 : vector<1x128xbf16> to vector<1x128xf32>
    %137 = vector.broadcast %135 : vector<28x1xf32> to vector<28x128xf32>
    %138 = vector.broadcast %136 : vector<1x128xf32> to vector<28x128xf32>
    %139 = arith.mulf %137, %138 : vector<28x128xf32>
    %140 = arith.addf %128, %139 : vector<28x128xf32>
    %c0_i32_71 = arith.constant 0 : i32
    %141 = arith.addi %115, %c0_i32_71 : i32
    %c0_72 = arith.constant 0 : index
    %142 = arith.index_cast %141 : i32 to index
    %c2_73 = arith.constant 2 : index
    %c0_74 = arith.constant 0 : index
    %143 = vector.load %arg2[%c0_72, %142, %c2_73, %c0_74] : memref<1x30x30x1xbf16, #tpu.memory_space<vmem>>, vector<1x1x28x1xbf16>
    %144 = vector.shape_cast %143 : vector<1x1x28x1xbf16> to vector<28x1xbf16>
    %c2_75 = arith.constant 2 : index
    %c0_76 = arith.constant 0 : index
    %c0_77 = arith.constant 0 : index
    %145 = vector.load %arg3[%c2_75, %c0_76, %c0_77] : memref<9x1x128xbf16, #tpu.memory_space<vmem>>, vector<1x1x128xbf16>
    %146 = vector.shape_cast %145 : vector<1x1x128xbf16> to vector<1x128xbf16>
    %147 = arith.extf %144 : vector<28x1xbf16> to vector<28x1xf32>
    %148 = arith.extf %146 : vector<1x128xbf16> to vector<1x128xf32>
    %149 = vector.broadcast %147 : vector<28x1xf32> to vector<28x128xf32>
    %150 = vector.broadcast %148 : vector<1x128xf32> to vector<28x128xf32>
    %151 = arith.mulf %149, %150 : vector<28x128xf32>
    %152 = arith.addf %140, %151 : vector<28x128xf32>
    %c1_i32_78 = arith.constant 1 : i32
    %153 = arith.addi %115, %c1_i32_78 : i32
    %c0_79 = arith.constant 0 : index
    %154 = arith.index_cast %153 : i32 to index
    %c0_80 = arith.constant 0 : index
    %c0_81 = arith.constant 0 : index
    %155 = vector.load %arg2[%c0_79, %154, %c0_80, %c0_81] : memref<1x30x30x1xbf16, #tpu.memory_space<vmem>>, vector<1x1x28x1xbf16>
    %156 = vector.shape_cast %155 : vector<1x1x28x1xbf16> to vector<28x1xbf16>
    %c3_82 = arith.constant 3 : index
    %c0_83 = arith.constant 0 : index
    %c0_84 = arith.constant 0 : index
    %157 = vector.load %arg3[%c3_82, %c0_83, %c0_84] : memref<9x1x128xbf16, #tpu.memory_space<vmem>>, vector<1x1x128xbf16>
    %158 = vector.shape_cast %157 : vector<1x1x128xbf16> to vector<1x128xbf16>
    %159 = arith.extf %156 : vector<28x1xbf16> to vector<28x1xf32>
    %160 = arith.extf %158 : vector<1x128xbf16> to vector<1x128xf32>
    %161 = vector.broadcast %159 : vector<28x1xf32> to vector<28x128xf32>
    %162 = vector.broadcast %160 : vector<1x128xf32> to vector<28x128xf32>
    %163 = arith.mulf %161, %162 : vector<28x128xf32>
    %164 = arith.addf %152, %163 : vector<28x128xf32>
    %c1_i32_85 = arith.constant 1 : i32
    %165 = arith.addi %115, %c1_i32_85 : i32
    %c0_86 = arith.constant 0 : index
    %166 = arith.index_cast %165 : i32 to index
    %c1_87 = arith.constant 1 : index
    %c0_88 = arith.constant 0 : index
    %167 = vector.load %arg2[%c0_86, %166, %c1_87, %c0_88] : memref<1x30x30x1xbf16, #tpu.memory_space<vmem>>, vector<1x1x28x1xbf16>
    %168 = vector.shape_cast %167 : vector<1x1x28x1xbf16> to vector<28x1xbf16>
    %c4_89 = arith.constant 4 : index
    %c0_90 = arith.constant 0 : index
    %c0_91 = arith.constant 0 : index
    %169 = vector.load %arg3[%c4_89, %c0_90, %c0_91] : memref<9x1x128xbf16, #tpu.memory_space<vmem>>, vector<1x1x128xbf16>
    %170 = vector.shape_cast %169 : vector<1x1x128xbf16> to vector<1x128xbf16>
    %171 = arith.extf %168 : vector<28x1xbf16> to vector<28x1xf32>
    %172 = arith.extf %170 : vector<1x128xbf16> to vector<1x128xf32>
    %173 = vector.broadcast %171 : vector<28x1xf32> to vector<28x128xf32>
    %174 = vector.broadcast %172 : vector<1x128xf32> to vector<28x128xf32>
    %175 = arith.mulf %173, %174 : vector<28x128xf32>
    %176 = arith.addf %164, %175 : vector<28x128xf32>
    %c1_i32_92 = arith.constant 1 : i32
    %177 = arith.addi %115, %c1_i32_92 : i32
    %c0_93 = arith.constant 0 : index
    %178 = arith.index_cast %177 : i32 to index
    %c2_94 = arith.constant 2 : index
    %c0_95 = arith.constant 0 : index
    %179 = vector.load %arg2[%c0_93, %178, %c2_94, %c0_95] : memref<1x30x30x1xbf16, #tpu.memory_space<vmem>>, vector<1x1x28x1xbf16>
    %180 = vector.shape_cast %179 : vector<1x1x28x1xbf16> to vector<28x1xbf16>
    %c5_96 = arith.constant 5 : index
    %c0_97 = arith.constant 0 : index
    %c0_98 = arith.constant 0 : index
    %181 = vector.load %arg3[%c5_96, %c0_97, %c0_98] : memref<9x1x128xbf16, #tpu.memory_space<vmem>>, vector<1x1x128xbf16>
    %182 = vector.shape_cast %181 : vector<1x1x128xbf16> to vector<1x128xbf16>
    %183 = arith.extf %180 : vector<28x1xbf16> to vector<28x1xf32>
    %184 = arith.extf %182 : vector<1x128xbf16> to vector<1x128xf32>
    %185 = vector.broadcast %183 : vector<28x1xf32> to vector<28x128xf32>
    %186 = vector.broadcast %184 : vector<1x128xf32> to vector<28x128xf32>
    %187 = arith.mulf %185, %186 : vector<28x128xf32>
    %188 = arith.addf %176, %187 : vector<28x128xf32>
    %c2_i32_99 = arith.constant 2 : i32
    %189 = arith.addi %115, %c2_i32_99 : i32
    %c0_100 = arith.constant 0 : index
    %190 = arith.index_cast %189 : i32 to index
    %c0_101 = arith.constant 0 : index
    %c0_102 = arith.constant 0 : index
    %191 = vector.load %arg2[%c0_100, %190, %c0_101, %c0_102] : memref<1x30x30x1xbf16, #tpu.memory_space<vmem>>, vector<1x1x28x1xbf16>
    %192 = vector.shape_cast %191 : vector<1x1x28x1xbf16> to vector<28x1xbf16>
    %c6_103 = arith.constant 6 : index
    %c0_104 = arith.constant 0 : index
    %c0_105 = arith.constant 0 : index
    %193 = vector.load %arg3[%c6_103, %c0_104, %c0_105] : memref<9x1x128xbf16, #tpu.memory_space<vmem>>, vector<1x1x128xbf16>
    %194 = vector.shape_cast %193 : vector<1x1x128xbf16> to vector<1x128xbf16>
    %195 = arith.extf %192 : vector<28x1xbf16> to vector<28x1xf32>
    %196 = arith.extf %194 : vector<1x128xbf16> to vector<1x128xf32>
    %197 = vector.broadcast %195 : vector<28x1xf32> to vector<28x128xf32>
    %198 = vector.broadcast %196 : vector<1x128xf32> to vector<28x128xf32>
    %199 = arith.mulf %197, %198 : vector<28x128xf32>
    %200 = arith.addf %188, %199 : vector<28x128xf32>
    %c2_i32_106 = arith.constant 2 : i32
    %201 = arith.addi %115, %c2_i32_106 : i32
    %c0_107 = arith.constant 0 : index
    %202 = arith.index_cast %201 : i32 to index
    %c1_108 = arith.constant 1 : index
    %c0_109 = arith.constant 0 : index
    %203 = vector.load %arg2[%c0_107, %202, %c1_108, %c0_109] : memref<1x30x30x1xbf16, #tpu.memory_space<vmem>>, vector<1x1x28x1xbf16>
    %204 = vector.shape_cast %203 : vector<1x1x28x1xbf16> to vector<28x1xbf16>
    %c7_110 = arith.constant 7 : index
    %c0_111 = arith.constant 0 : index
    %c0_112 = arith.constant 0 : index
    %205 = vector.load %arg3[%c7_110, %c0_111, %c0_112] : memref<9x1x128xbf16, #tpu.memory_space<vmem>>, vector<1x1x128xbf16>
    %206 = vector.shape_cast %205 : vector<1x1x128xbf16> to vector<1x128xbf16>
    %207 = arith.extf %204 : vector<28x1xbf16> to vector<28x1xf32>
    %208 = arith.extf %206 : vector<1x128xbf16> to vector<1x128xf32>
    %209 = vector.broadcast %207 : vector<28x1xf32> to vector<28x128xf32>
    %210 = vector.broadcast %208 : vector<1x128xf32> to vector<28x128xf32>
    %211 = arith.mulf %209, %210 : vector<28x128xf32>
    %212 = arith.addf %200, %211 : vector<28x128xf32>
    %c2_i32_113 = arith.constant 2 : i32
    %213 = arith.addi %115, %c2_i32_113 : i32
    %c0_114 = arith.constant 0 : index
    %214 = arith.index_cast %213 : i32 to index
    %c2_115 = arith.constant 2 : index
    %c0_116 = arith.constant 0 : index
    %215 = vector.load %arg2[%c0_114, %214, %c2_115, %c0_116] : memref<1x30x30x1xbf16, #tpu.memory_space<vmem>>, vector<1x1x28x1xbf16>
    %216 = vector.shape_cast %215 : vector<1x1x28x1xbf16> to vector<28x1xbf16>
    %c8_117 = arith.constant 8 : index
    %c0_118 = arith.constant 0 : index
    %c0_119 = arith.constant 0 : index
    %217 = vector.load %arg3[%c8_117, %c0_118, %c0_119] : memref<9x1x128xbf16, #tpu.memory_space<vmem>>, vector<1x1x128xbf16>
    %218 = vector.shape_cast %217 : vector<1x1x128xbf16> to vector<1x128xbf16>
    %219 = arith.extf %216 : vector<28x1xbf16> to vector<28x1xf32>
    %220 = arith.extf %218 : vector<1x128xbf16> to vector<1x128xf32>
    %221 = vector.broadcast %219 : vector<28x1xf32> to vector<28x128xf32>
    %222 = vector.broadcast %220 : vector<1x128xf32> to vector<28x128xf32>
    %223 = arith.mulf %221, %222 : vector<28x128xf32>
    %224 = arith.addf %212, %223 : vector<28x128xf32>
    %225 = vector.broadcast %0 : vector<1x128xf32> to vector<28x128xf32>
    %226 = arith.addf %224, %225 : vector<28x128xf32>
    %cst_120 = arith.constant 0.000000e+00 : f32
    %227 = vector.broadcast %cst_120 : f32 to vector<28x128xf32>
    %228 = arith.maximumf %226, %227 : vector<28x128xf32>
    %229 = arith.maximumf %114, %228 : vector<28x128xf32>
    %c0_121 = arith.constant 0 : index
    %c0_122 = arith.constant 0 : index
    %230 = vector.load %arg6[%c0_121, %c0_122] : memref<28x128xf32, #tpu.memory_space<vmem>>, vector<28x128xf32>
    tpu.vector_store %arg6[%c0_121, %c0_122], %229 {strides = array<i32>} : memref<28x128xf32, #tpu.memory_space<vmem>>, vector<28x128xf32>,
    %c0_123 = arith.constant 0 : index
    %c0_124 = arith.constant 0 : index
    %231 = tpu.strided_load %arg6[%c0_123, %c0_124] {strides = array<i32: 2, 1>} : memref<28x128xf32, #tpu.memory_space<vmem>>, vector<14x128xf32>
    %c1_125 = arith.constant 1 : index
    %c0_126 = arith.constant 0 : index
    %232 = tpu.strided_load %arg6[%c1_125, %c0_126] {strides = array<i32: 2, 1>} : memref<28x128xf32, #tpu.memory_space<vmem>>, vector<14x128xf32>
    %233 = arith.maximumf %231, %232 : vector<14x128xf32>
    %234 = arith.truncf %233 : vector<14x128xf32> to vector<14x128xbf16>
    %c0_127 = arith.constant 0 : index
    %c0_128 = arith.constant 0 : index
    %c0_129 = arith.constant 0 : index
    %c0_130 = arith.constant 0 : index
    %235 = vector.load %arg5[%c0_127, %c0_128, %c0_129, %c0_130] : memref<1x1x14x128xbf16, #tpu.memory_space<vmem>>, vector<1x1x14x128xbf16>
    %236 = vector.shape_cast %235 : vector<1x1x14x128xbf16> to vector<14x128xbf16>
    %237 = vector.shape_cast %234 : vector<14x128xbf16> to vector<1x1x14x128xbf16>
    tpu.vector_store %arg5[%c0_127, %c0_128, %c0_129, %c0_130], %237 {strides = array<i32>} : memref<1x1x14x128xbf16, #tpu.memory_space<vmem>>, vector<1x1x14x128xbf16>,
    return
  }
  func.func @transform_0(%arg0: i32, %arg1: i32) -> (i32, i32, i32, i32) {
    %c0_i32 = arith.constant 0 : i32
    %c0_i32_0 = arith.constant 0 : i32
    %c0_i32_1 = arith.constant 0 : i32
    %c0_i32_2 = arith.constant 0 : i32
    return %arg0, %c0_i32, %c0_i32_0, %c0_i32_1 : i32, i32, i32, i32
  }
  func.func @transform_1(%arg0: i32, %arg1: i32) -> (i32, i32, i32) {
    %c0_i32 = arith.constant 0 : i32
    %c0_i32_0 = arith.constant 0 : i32
    %c0_i32_1 = arith.constant 0 : i32
    %c0_i32_2 = arith.constant 0 : i32
    return %c0_i32, %c0_i32_0, %c0_i32_1 : i32, i32, i32
  }
  func.func @transform_2(%arg0: i32, %arg1: i32) -> (i32, i32) {
    %c0_i32 = arith.constant 0 : i32
    %c0_i32_0 = arith.constant 0 : i32
    %c0_i32_1 = arith.constant 0 : i32
    return %c0_i32, %c0_i32_0 : i32, i32
  }
  func.func @transform_3(%arg0: i32, %arg1: i32) -> (i32, i32, i32, i32) {
    %c0_i32 = arith.constant 0 : i32
    %c0_i32_0 = arith.constant 0 : i32
    %c0_i32_1 = arith.constant 0 : i32
    return %arg0, %arg1, %c0_i32, %c0_i32_0 : i32, i32, i32, i32
  }
}

module attributes {stable_mosaic.version = 11 : i64} {
  func.func @_mlp_kernel(%arg0: i32, %arg1: memref<2x6272xbf16, #tpu.memory_space<vmem>>, %arg2: memref<6272x128xbf16, #tpu.memory_space<vmem>>, %arg3: memref<1x128xf32, #tpu.memory_space<vmem>>, %arg4: memref<128x128xbf16, #tpu.memory_space<vmem>>, %arg5: memref<1x128xf32, #tpu.memory_space<vmem>>, %arg6: memref<2x128xf32, #tpu.memory_space<vmem>>) attributes {dimension_semantics = [#tpu.dimension_semantics<parallel>], iteration_bounds = array<i64: 1>, scalar_prefetch = 0 : i64, scratch_operands = 0 : i64, tpu.core_type = #tpu.core_type<tc>, window_params = [{transform_indices = @transform_0, window_bounds = array<i64: 2, 6272>}, {pipeline_mode = #tpu.pipeline_mode<synchronous>, transform_indices = @transform_1, window_bounds = array<i64: 6272, 128>}, {pipeline_mode = #tpu.pipeline_mode<synchronous>, transform_indices = @transform_2, window_bounds = array<i64: 1, 128>}, {pipeline_mode = #tpu.pipeline_mode<synchronous>, transform_indices = @transform_3, window_bounds = array<i64: 128, 128>}, {pipeline_mode = #tpu.pipeline_mode<synchronous>, transform_indices = @transform_4, window_bounds = array<i64: 1, 128>}, {transform_indices = @transform_5, window_bounds = array<i64: 2, 128>}]} {
    %c0 = arith.constant 0 : index
    %c0_0 = arith.constant 0 : index
    %0 = vector.load %arg1[%c0, %c0_0] : memref<2x6272xbf16, #tpu.memory_space<vmem>>, vector<2x6272xbf16>
    %c0_1 = arith.constant 0 : index
    %c0_2 = arith.constant 0 : index
    %1 = vector.load %arg2[%c0_1, %c0_2] : memref<6272x128xbf16, #tpu.memory_space<vmem>>, vector<6272x128xbf16>
    %cst = arith.constant dense<0.000000e+00> : vector<2x128xf32>
    %2 = tpu.matmul %0, %1, %cst {dimension_numbers = #tpu.dot_dimension_numbers<[1], [0], [0], [1], [0, 0, 1, 1], [], []>} : vector<2x6272xbf16>, vector<6272x128xbf16>, vector<2x128xf32> -> vector<2x128xf32>
    %c0_3 = arith.constant 0 : index
    %c0_4 = arith.constant 0 : index
    %3 = vector.load %arg3[%c0_3, %c0_4] : memref<1x128xf32, #tpu.memory_space<vmem>>, vector<1x128xf32>
    %4 = vector.broadcast %3 : vector<1x128xf32> to vector<2x128xf32>
    %5 = arith.addf %2, %4 : vector<2x128xf32>
    %cst_5 = arith.constant 0.000000e+00 : f32
    %6 = vector.broadcast %cst_5 : f32 to vector<2x128xf32>
    %7 = arith.maximumf %5, %6 : vector<2x128xf32>
    %8 = arith.truncf %7 : vector<2x128xf32> to vector<2x128xbf16>
    %c0_6 = arith.constant 0 : index
    %c0_7 = arith.constant 0 : index
    %9 = vector.load %arg4[%c0_6, %c0_7] : memref<128x128xbf16, #tpu.memory_space<vmem>>, vector<128x128xbf16>
    %cst_8 = arith.constant dense<0.000000e+00> : vector<2x128xf32>
    %10 = tpu.matmul %8, %9, %cst_8 {dimension_numbers = #tpu.dot_dimension_numbers<[1], [0], [0], [1], [0, 0, 1, 1], [], []>} : vector<2x128xbf16>, vector<128x128xbf16>, vector<2x128xf32> -> vector<2x128xf32>
    %c0_9 = arith.constant 0 : index
    %c0_10 = arith.constant 0 : index
    %11 = vector.load %arg5[%c0_9, %c0_10] : memref<1x128xf32, #tpu.memory_space<vmem>>, vector<1x128xf32>
    %12 = vector.broadcast %11 : vector<1x128xf32> to vector<2x128xf32>
    %13 = arith.addf %10, %12 : vector<2x128xf32>
    %c0_11 = arith.constant 0 : index
    %c0_12 = arith.constant 0 : index
    %14 = vector.load %arg6[%c0_11, %c0_12] : memref<2x128xf32, #tpu.memory_space<vmem>>, vector<2x128xf32>
    tpu.vector_store %arg6[%c0_11, %c0_12], %13 {strides = array<i32>} : memref<2x128xf32, #tpu.memory_space<vmem>>, vector<2x128xf32>,
    return
  }
  func.func @transform_0(%arg0: i32) -> (i32, i32) {
    %c0_i32 = arith.constant 0 : i32
    %c0_i32_0 = arith.constant 0 : i32
    return %arg0, %c0_i32 : i32, i32
  }
  func.func @transform_1(%arg0: i32) -> (i32, i32) {
    %c0_i32 = arith.constant 0 : i32
    %c0_i32_0 = arith.constant 0 : i32
    %c0_i32_1 = arith.constant 0 : i32
    return %c0_i32, %c0_i32_0 : i32, i32
  }
  func.func @transform_2(%arg0: i32) -> (i32, i32) {
    %c0_i32 = arith.constant 0 : i32
    %c0_i32_0 = arith.constant 0 : i32
    %c0_i32_1 = arith.constant 0 : i32
    return %c0_i32, %c0_i32_0 : i32, i32
  }
  func.func @transform_3(%arg0: i32) -> (i32, i32) {
    %c0_i32 = arith.constant 0 : i32
    %c0_i32_0 = arith.constant 0 : i32
    %c0_i32_1 = arith.constant 0 : i32
    return %c0_i32, %c0_i32_0 : i32, i32
  }
  func.func @transform_4(%arg0: i32) -> (i32, i32) {
    %c0_i32 = arith.constant 0 : i32
    %c0_i32_0 = arith.constant 0 : i32
    %c0_i32_1 = arith.constant 0 : i32
    return %c0_i32, %c0_i32_0 : i32, i32
  }
  func.func @transform_5(%arg0: i32) -> (i32, i32) {
    %c0_i32 = arith.constant 0 : i32
    %c0_i32_0 = arith.constant 0 : i32
    return %arg0, %c0_i32 : i32, i32
  }
}

module attributes {stable_mosaic.version = 11 : i64} {
  func.func @_conv3x3_relu_pool_kernel(%arg0: i32, %arg1: i32, %arg2: memref<1x16x16x128xbf16, #tpu.memory_space<vmem>>, %arg3: memref<9x128x128xbf16, #tpu.memory_space<vmem>>, %arg4: memref<1x128xf32, #tpu.memory_space<vmem>>, %arg5: memref<1x1x7x128xbf16, #tpu.memory_space<vmem>>, %arg6: memref<14x128xf32, #tpu.memory_space<vmem>>) attributes {dimension_semantics = [#tpu.dimension_semantics<parallel>, #tpu.dimension_semantics<arbitrary>], iteration_bounds = array<i64: 2, 7>, scalar_prefetch = 0 : i64, scratch_operands = 1 : i64, tpu.core_type = #tpu.core_type<tc>, window_params = [{transform_indices = @transform_0, window_bounds = array<i64: 1, 16, 16, 128>}, {pipeline_mode = #tpu.pipeline_mode<synchronous>, transform_indices = @transform_1, window_bounds = array<i64: 9, 128, 128>}, {pipeline_mode = #tpu.pipeline_mode<synchronous>, transform_indices = @transform_2, window_bounds = array<i64: 1, 128>}, {transform_indices = @transform_3, window_bounds = array<i64: 1, 1, 7, 128>}]} {
    %c0 = arith.constant 0 : index
    %c0_0 = arith.constant 0 : index
    %0 = vector.load %arg4[%c0, %c0_0] : memref<1x128xf32, #tpu.memory_space<vmem>>, vector<1x128xf32>
    %c2_i32 = arith.constant 2 : i32
    %1 = arith.muli %c2_i32, %arg1 : i32
    %cst = arith.constant 0.000000e+00 : f32
    %2 = vector.broadcast %cst : f32 to vector<14x128xf32>
    %c0_i32 = arith.constant 0 : i32
    %3 = arith.addi %1, %c0_i32 : i32
    %c0_1 = arith.constant 0 : index
    %4 = arith.index_cast %3 : i32 to index
    %c0_2 = arith.constant 0 : index
    %c0_3 = arith.constant 0 : index
    %5 = vector.load %arg2[%c0_1, %4, %c0_2, %c0_3] : memref<1x16x16x128xbf16, #tpu.memory_space<vmem>>, vector<1x1x14x128xbf16>
    %6 = vector.shape_cast %5 : vector<1x1x14x128xbf16> to vector<14x128xbf16>
    %c0_4 = arith.constant 0 : index
    %c0_5 = arith.constant 0 : index
    %c0_6 = arith.constant 0 : index
    %7 = vector.load %arg3[%c0_4, %c0_5, %c0_6] : memref<9x128x128xbf16, #tpu.memory_space<vmem>>, vector<1x128x128xbf16>
    %8 = vector.shape_cast %7 : vector<1x128x128xbf16> to vector<128x128xbf16>
    %cst_7 = arith.constant dense<0.000000e+00> : vector<14x128xf32>
    %9 = tpu.matmul %6, %8, %cst_7 {dimension_numbers = #tpu.dot_dimension_numbers<[1], [0], [0], [1], [0, 0, 1, 1], [], []>} : vector<14x128xbf16>, vector<128x128xbf16>, vector<14x128xf32> -> vector<14x128xf32>
    %10 = arith.addf %2, %9 : vector<14x128xf32>
    %c0_i32_8 = arith.constant 0 : i32
    %11 = arith.addi %1, %c0_i32_8 : i32
    %c0_9 = arith.constant 0 : index
    %12 = arith.index_cast %11 : i32 to index
    %c1 = arith.constant 1 : index
    %c0_10 = arith.constant 0 : index
    %13 = vector.load %arg2[%c0_9, %12, %c1, %c0_10] : memref<1x16x16x128xbf16, #tpu.memory_space<vmem>>, vector<1x1x14x128xbf16>
    %14 = vector.shape_cast %13 : vector<1x1x14x128xbf16> to vector<14x128xbf16>
    %c1_11 = arith.constant 1 : index
    %c0_12 = arith.constant 0 : index
    %c0_13 = arith.constant 0 : index
    %15 = vector.load %arg3[%c1_11, %c0_12, %c0_13] : memref<9x128x128xbf16, #tpu.memory_space<vmem>>, vector<1x128x128xbf16>
    %16 = vector.shape_cast %15 : vector<1x128x128xbf16> to vector<128x128xbf16>
    %cst_14 = arith.constant dense<0.000000e+00> : vector<14x128xf32>
    %17 = tpu.matmul %14, %16, %cst_14 {dimension_numbers = #tpu.dot_dimension_numbers<[1], [0], [0], [1], [0, 0, 1, 1], [], []>} : vector<14x128xbf16>, vector<128x128xbf16>, vector<14x128xf32> -> vector<14x128xf32>
    %18 = arith.addf %10, %17 : vector<14x128xf32>
    %c0_i32_15 = arith.constant 0 : i32
    %19 = arith.addi %1, %c0_i32_15 : i32
    %c0_16 = arith.constant 0 : index
    %20 = arith.index_cast %19 : i32 to index
    %c2 = arith.constant 2 : index
    %c0_17 = arith.constant 0 : index
    %21 = vector.load %arg2[%c0_16, %20, %c2, %c0_17] : memref<1x16x16x128xbf16, #tpu.memory_space<vmem>>, vector<1x1x14x128xbf16>
    %22 = vector.shape_cast %21 : vector<1x1x14x128xbf16> to vector<14x128xbf16>
    %c2_18 = arith.constant 2 : index
    %c0_19 = arith.constant 0 : index
    %c0_20 = arith.constant 0 : index
    %23 = vector.load %arg3[%c2_18, %c0_19, %c0_20] : memref<9x128x128xbf16, #tpu.memory_space<vmem>>, vector<1x128x128xbf16>
    %24 = vector.shape_cast %23 : vector<1x128x128xbf16> to vector<128x128xbf16>
    %cst_21 = arith.constant dense<0.000000e+00> : vector<14x128xf32>
    %25 = tpu.matmul %22, %24, %cst_21 {dimension_numbers = #tpu.dot_dimension_numbers<[1], [0], [0], [1], [0, 0, 1, 1], [], []>} : vector<14x128xbf16>, vector<128x128xbf16>, vector<14x128xf32> -> vector<14x128xf32>
    %26 = arith.addf %18, %25 : vector<14x128xf32>
    %c1_i32 = arith.constant 1 : i32
    %27 = arith.addi %1, %c1_i32 : i32
    %c0_22 = arith.constant 0 : index
    %28 = arith.index_cast %27 : i32 to index
    %c0_23 = arith.constant 0 : index
    %c0_24 = arith.constant 0 : index
    %29 = vector.load %arg2[%c0_22, %28, %c0_23, %c0_24] : memref<1x16x16x128xbf16, #tpu.memory_space<vmem>>, vector<1x1x14x128xbf16>
    %30 = vector.shape_cast %29 : vector<1x1x14x128xbf16> to vector<14x128xbf16>
    %c3 = arith.constant 3 : index
    %c0_25 = arith.constant 0 : index
    %c0_26 = arith.constant 0 : index
    %31 = vector.load %arg3[%c3, %c0_25, %c0_26] : memref<9x128x128xbf16, #tpu.memory_space<vmem>>, vector<1x128x128xbf16>
    %32 = vector.shape_cast %31 : vector<1x128x128xbf16> to vector<128x128xbf16>
    %cst_27 = arith.constant dense<0.000000e+00> : vector<14x128xf32>
    %33 = tpu.matmul %30, %32, %cst_27 {dimension_numbers = #tpu.dot_dimension_numbers<[1], [0], [0], [1], [0, 0, 1, 1], [], []>} : vector<14x128xbf16>, vector<128x128xbf16>, vector<14x128xf32> -> vector<14x128xf32>
    %34 = arith.addf %26, %33 : vector<14x128xf32>
    %c1_i32_28 = arith.constant 1 : i32
    %35 = arith.addi %1, %c1_i32_28 : i32
    %c0_29 = arith.constant 0 : index
    %36 = arith.index_cast %35 : i32 to index
    %c1_30 = arith.constant 1 : index
    %c0_31 = arith.constant 0 : index
    %37 = vector.load %arg2[%c0_29, %36, %c1_30, %c0_31] : memref<1x16x16x128xbf16, #tpu.memory_space<vmem>>, vector<1x1x14x128xbf16>
    %38 = vector.shape_cast %37 : vector<1x1x14x128xbf16> to vector<14x128xbf16>
    %c4 = arith.constant 4 : index
    %c0_32 = arith.constant 0 : index
    %c0_33 = arith.constant 0 : index
    %39 = vector.load %arg3[%c4, %c0_32, %c0_33] : memref<9x128x128xbf16, #tpu.memory_space<vmem>>, vector<1x128x128xbf16>
    %40 = vector.shape_cast %39 : vector<1x128x128xbf16> to vector<128x128xbf16>
    %cst_34 = arith.constant dense<0.000000e+00> : vector<14x128xf32>
    %41 = tpu.matmul %38, %40, %cst_34 {dimension_numbers = #tpu.dot_dimension_numbers<[1], [0], [0], [1], [0, 0, 1, 1], [], []>} : vector<14x128xbf16>, vector<128x128xbf16>, vector<14x128xf32> -> vector<14x128xf32>
    %42 = arith.addf %34, %41 : vector<14x128xf32>
    %c1_i32_35 = arith.constant 1 : i32
    %43 = arith.addi %1, %c1_i32_35 : i32
    %c0_36 = arith.constant 0 : index
    %44 = arith.index_cast %43 : i32 to index
    %c2_37 = arith.constant 2 : index
    %c0_38 = arith.constant 0 : index
    %45 = vector.load %arg2[%c0_36, %44, %c2_37, %c0_38] : memref<1x16x16x128xbf16, #tpu.memory_space<vmem>>, vector<1x1x14x128xbf16>
    %46 = vector.shape_cast %45 : vector<1x1x14x128xbf16> to vector<14x128xbf16>
    %c5 = arith.constant 5 : index
    %c0_39 = arith.constant 0 : index
    %c0_40 = arith.constant 0 : index
    %47 = vector.load %arg3[%c5, %c0_39, %c0_40] : memref<9x128x128xbf16, #tpu.memory_space<vmem>>, vector<1x128x128xbf16>
    %48 = vector.shape_cast %47 : vector<1x128x128xbf16> to vector<128x128xbf16>
    %cst_41 = arith.constant dense<0.000000e+00> : vector<14x128xf32>
    %49 = tpu.matmul %46, %48, %cst_41 {dimension_numbers = #tpu.dot_dimension_numbers<[1], [0], [0], [1], [0, 0, 1, 1], [], []>} : vector<14x128xbf16>, vector<128x128xbf16>, vector<14x128xf32> -> vector<14x128xf32>
    %50 = arith.addf %42, %49 : vector<14x128xf32>
    %c2_i32_42 = arith.constant 2 : i32
    %51 = arith.addi %1, %c2_i32_42 : i32
    %c0_43 = arith.constant 0 : index
    %52 = arith.index_cast %51 : i32 to index
    %c0_44 = arith.constant 0 : index
    %c0_45 = arith.constant 0 : index
    %53 = vector.load %arg2[%c0_43, %52, %c0_44, %c0_45] : memref<1x16x16x128xbf16, #tpu.memory_space<vmem>>, vector<1x1x14x128xbf16>
    %54 = vector.shape_cast %53 : vector<1x1x14x128xbf16> to vector<14x128xbf16>
    %c6 = arith.constant 6 : index
    %c0_46 = arith.constant 0 : index
    %c0_47 = arith.constant 0 : index
    %55 = vector.load %arg3[%c6, %c0_46, %c0_47] : memref<9x128x128xbf16, #tpu.memory_space<vmem>>, vector<1x128x128xbf16>
    %56 = vector.shape_cast %55 : vector<1x128x128xbf16> to vector<128x128xbf16>
    %cst_48 = arith.constant dense<0.000000e+00> : vector<14x128xf32>
    %57 = tpu.matmul %54, %56, %cst_48 {dimension_numbers = #tpu.dot_dimension_numbers<[1], [0], [0], [1], [0, 0, 1, 1], [], []>} : vector<14x128xbf16>, vector<128x128xbf16>, vector<14x128xf32> -> vector<14x128xf32>
    %58 = arith.addf %50, %57 : vector<14x128xf32>
    %c2_i32_49 = arith.constant 2 : i32
    %59 = arith.addi %1, %c2_i32_49 : i32
    %c0_50 = arith.constant 0 : index
    %60 = arith.index_cast %59 : i32 to index
    %c1_51 = arith.constant 1 : index
    %c0_52 = arith.constant 0 : index
    %61 = vector.load %arg2[%c0_50, %60, %c1_51, %c0_52] : memref<1x16x16x128xbf16, #tpu.memory_space<vmem>>, vector<1x1x14x128xbf16>
    %62 = vector.shape_cast %61 : vector<1x1x14x128xbf16> to vector<14x128xbf16>
    %c7 = arith.constant 7 : index
    %c0_53 = arith.constant 0 : index
    %c0_54 = arith.constant 0 : index
    %63 = vector.load %arg3[%c7, %c0_53, %c0_54] : memref<9x128x128xbf16, #tpu.memory_space<vmem>>, vector<1x128x128xbf16>
    %64 = vector.shape_cast %63 : vector<1x128x128xbf16> to vector<128x128xbf16>
    %cst_55 = arith.constant dense<0.000000e+00> : vector<14x128xf32>
    %65 = tpu.matmul %62, %64, %cst_55 {dimension_numbers = #tpu.dot_dimension_numbers<[1], [0], [0], [1], [0, 0, 1, 1], [], []>} : vector<14x128xbf16>, vector<128x128xbf16>, vector<14x128xf32> -> vector<14x128xf32>
    %66 = arith.addf %58, %65 : vector<14x128xf32>
    %c2_i32_56 = arith.constant 2 : i32
    %67 = arith.addi %1, %c2_i32_56 : i32
    %c0_57 = arith.constant 0 : index
    %68 = arith.index_cast %67 : i32 to index
    %c2_58 = arith.constant 2 : index
    %c0_59 = arith.constant 0 : index
    %69 = vector.load %arg2[%c0_57, %68, %c2_58, %c0_59] : memref<1x16x16x128xbf16, #tpu.memory_space<vmem>>, vector<1x1x14x128xbf16>
    %70 = vector.shape_cast %69 : vector<1x1x14x128xbf16> to vector<14x128xbf16>
    %c8 = arith.constant 8 : index
    %c0_60 = arith.constant 0 : index
    %c0_61 = arith.constant 0 : index
    %71 = vector.load %arg3[%c8, %c0_60, %c0_61] : memref<9x128x128xbf16, #tpu.memory_space<vmem>>, vector<1x128x128xbf16>
    %72 = vector.shape_cast %71 : vector<1x128x128xbf16> to vector<128x128xbf16>
    %cst_62 = arith.constant dense<0.000000e+00> : vector<14x128xf32>
    %73 = tpu.matmul %70, %72, %cst_62 {dimension_numbers = #tpu.dot_dimension_numbers<[1], [0], [0], [1], [0, 0, 1, 1], [], []>} : vector<14x128xbf16>, vector<128x128xbf16>, vector<14x128xf32> -> vector<14x128xf32>
    %74 = arith.addf %66, %73 : vector<14x128xf32>
    %75 = vector.broadcast %0 : vector<1x128xf32> to vector<14x128xf32>
    %76 = arith.addf %74, %75 : vector<14x128xf32>
    %cst_63 = arith.constant 0.000000e+00 : f32
    %77 = vector.broadcast %cst_63 : f32 to vector<14x128xf32>
    %78 = arith.maximumf %76, %77 : vector<14x128xf32>
    %c1_i32_64 = arith.constant 1 : i32
    %79 = arith.addi %1, %c1_i32_64 : i32
    %cst_65 = arith.constant 0.000000e+00 : f32
    %80 = vector.broadcast %cst_65 : f32 to vector<14x128xf32>
    %c0_i32_66 = arith.constant 0 : i32
    %81 = arith.addi %79, %c0_i32_66 : i32
    %c0_67 = arith.constant 0 : index
    %82 = arith.index_cast %81 : i32 to index
    %c0_68 = arith.constant 0 : index
    %c0_69 = arith.constant 0 : index
    %83 = vector.load %arg2[%c0_67, %82, %c0_68, %c0_69] : memref<1x16x16x128xbf16, #tpu.memory_space<vmem>>, vector<1x1x14x128xbf16>
    %84 = vector.shape_cast %83 : vector<1x1x14x128xbf16> to vector<14x128xbf16>
    %c0_70 = arith.constant 0 : index
    %c0_71 = arith.constant 0 : index
    %c0_72 = arith.constant 0 : index
    %85 = vector.load %arg3[%c0_70, %c0_71, %c0_72] : memref<9x128x128xbf16, #tpu.memory_space<vmem>>, vector<1x128x128xbf16>
    %86 = vector.shape_cast %85 : vector<1x128x128xbf16> to vector<128x128xbf16>
    %cst_73 = arith.constant dense<0.000000e+00> : vector<14x128xf32>
    %87 = tpu.matmul %84, %86, %cst_73 {dimension_numbers = #tpu.dot_dimension_numbers<[1], [0], [0], [1], [0, 0, 1, 1], [], []>} : vector<14x128xbf16>, vector<128x128xbf16>, vector<14x128xf32> -> vector<14x128xf32>
    %88 = arith.addf %80, %87 : vector<14x128xf32>
    %c0_i32_74 = arith.constant 0 : i32
    %89 = arith.addi %79, %c0_i32_74 : i32
    %c0_75 = arith.constant 0 : index
    %90 = arith.index_cast %89 : i32 to index
    %c1_76 = arith.constant 1 : index
    %c0_77 = arith.constant 0 : index
    %91 = vector.load %arg2[%c0_75, %90, %c1_76, %c0_77] : memref<1x16x16x128xbf16, #tpu.memory_space<vmem>>, vector<1x1x14x128xbf16>
    %92 = vector.shape_cast %91 : vector<1x1x14x128xbf16> to vector<14x128xbf16>
    %c1_78 = arith.constant 1 : index
    %c0_79 = arith.constant 0 : index
    %c0_80 = arith.constant 0 : index
    %93 = vector.load %arg3[%c1_78, %c0_79, %c0_80] : memref<9x128x128xbf16, #tpu.memory_space<vmem>>, vector<1x128x128xbf16>
    %94 = vector.shape_cast %93 : vector<1x128x128xbf16> to vector<128x128xbf16>
    %cst_81 = arith.constant dense<0.000000e+00> : vector<14x128xf32>
    %95 = tpu.matmul %92, %94, %cst_81 {dimension_numbers = #tpu.dot_dimension_numbers<[1], [0], [0], [1], [0, 0, 1, 1], [], []>} : vector<14x128xbf16>, vector<128x128xbf16>, vector<14x128xf32> -> vector<14x128xf32>
    %96 = arith.addf %88, %95 : vector<14x128xf32>
    %c0_i32_82 = arith.constant 0 : i32
    %97 = arith.addi %79, %c0_i32_82 : i32
    %c0_83 = arith.constant 0 : index
    %98 = arith.index_cast %97 : i32 to index
    %c2_84 = arith.constant 2 : index
    %c0_85 = arith.constant 0 : index
    %99 = vector.load %arg2[%c0_83, %98, %c2_84, %c0_85] : memref<1x16x16x128xbf16, #tpu.memory_space<vmem>>, vector<1x1x14x128xbf16>
    %100 = vector.shape_cast %99 : vector<1x1x14x128xbf16> to vector<14x128xbf16>
    %c2_86 = arith.constant 2 : index
    %c0_87 = arith.constant 0 : index
    %c0_88 = arith.constant 0 : index
    %101 = vector.load %arg3[%c2_86, %c0_87, %c0_88] : memref<9x128x128xbf16, #tpu.memory_space<vmem>>, vector<1x128x128xbf16>
    %102 = vector.shape_cast %101 : vector<1x128x128xbf16> to vector<128x128xbf16>
    %cst_89 = arith.constant dense<0.000000e+00> : vector<14x128xf32>
    %103 = tpu.matmul %100, %102, %cst_89 {dimension_numbers = #tpu.dot_dimension_numbers<[1], [0], [0], [1], [0, 0, 1, 1], [], []>} : vector<14x128xbf16>, vector<128x128xbf16>, vector<14x128xf32> -> vector<14x128xf32>
    %104 = arith.addf %96, %103 : vector<14x128xf32>
    %c1_i32_90 = arith.constant 1 : i32
    %105 = arith.addi %79, %c1_i32_90 : i32
    %c0_91 = arith.constant 0 : index
    %106 = arith.index_cast %105 : i32 to index
    %c0_92 = arith.constant 0 : index
    %c0_93 = arith.constant 0 : index
    %107 = vector.load %arg2[%c0_91, %106, %c0_92, %c0_93] : memref<1x16x16x128xbf16, #tpu.memory_space<vmem>>, vector<1x1x14x128xbf16>
    %108 = vector.shape_cast %107 : vector<1x1x14x128xbf16> to vector<14x128xbf16>
    %c3_94 = arith.constant 3 : index
    %c0_95 = arith.constant 0 : index
    %c0_96 = arith.constant 0 : index
    %109 = vector.load %arg3[%c3_94, %c0_95, %c0_96] : memref<9x128x128xbf16, #tpu.memory_space<vmem>>, vector<1x128x128xbf16>
    %110 = vector.shape_cast %109 : vector<1x128x128xbf16> to vector<128x128xbf16>
    %cst_97 = arith.constant dense<0.000000e+00> : vector<14x128xf32>
    %111 = tpu.matmul %108, %110, %cst_97 {dimension_numbers = #tpu.dot_dimension_numbers<[1], [0], [0], [1], [0, 0, 1, 1], [], []>} : vector<14x128xbf16>, vector<128x128xbf16>, vector<14x128xf32> -> vector<14x128xf32>
    %112 = arith.addf %104, %111 : vector<14x128xf32>
    %c1_i32_98 = arith.constant 1 : i32
    %113 = arith.addi %79, %c1_i32_98 : i32
    %c0_99 = arith.constant 0 : index
    %114 = arith.index_cast %113 : i32 to index
    %c1_100 = arith.constant 1 : index
    %c0_101 = arith.constant 0 : index
    %115 = vector.load %arg2[%c0_99, %114, %c1_100, %c0_101] : memref<1x16x16x128xbf16, #tpu.memory_space<vmem>>, vector<1x1x14x128xbf16>
    %116 = vector.shape_cast %115 : vector<1x1x14x128xbf16> to vector<14x128xbf16>
    %c4_102 = arith.constant 4 : index
    %c0_103 = arith.constant 0 : index
    %c0_104 = arith.constant 0 : index
    %117 = vector.load %arg3[%c4_102, %c0_103, %c0_104] : memref<9x128x128xbf16, #tpu.memory_space<vmem>>, vector<1x128x128xbf16>
    %118 = vector.shape_cast %117 : vector<1x128x128xbf16> to vector<128x128xbf16>
    %cst_105 = arith.constant dense<0.000000e+00> : vector<14x128xf32>
    %119 = tpu.matmul %116, %118, %cst_105 {dimension_numbers = #tpu.dot_dimension_numbers<[1], [0], [0], [1], [0, 0, 1, 1], [], []>} : vector<14x128xbf16>, vector<128x128xbf16>, vector<14x128xf32> -> vector<14x128xf32>
    %120 = arith.addf %112, %119 : vector<14x128xf32>
    %c1_i32_106 = arith.constant 1 : i32
    %121 = arith.addi %79, %c1_i32_106 : i32
    %c0_107 = arith.constant 0 : index
    %122 = arith.index_cast %121 : i32 to index
    %c2_108 = arith.constant 2 : index
    %c0_109 = arith.constant 0 : index
    %123 = vector.load %arg2[%c0_107, %122, %c2_108, %c0_109] : memref<1x16x16x128xbf16, #tpu.memory_space<vmem>>, vector<1x1x14x128xbf16>
    %124 = vector.shape_cast %123 : vector<1x1x14x128xbf16> to vector<14x128xbf16>
    %c5_110 = arith.constant 5 : index
    %c0_111 = arith.constant 0 : index
    %c0_112 = arith.constant 0 : index
    %125 = vector.load %arg3[%c5_110, %c0_111, %c0_112] : memref<9x128x128xbf16, #tpu.memory_space<vmem>>, vector<1x128x128xbf16>
    %126 = vector.shape_cast %125 : vector<1x128x128xbf16> to vector<128x128xbf16>
    %cst_113 = arith.constant dense<0.000000e+00> : vector<14x128xf32>
    %127 = tpu.matmul %124, %126, %cst_113 {dimension_numbers = #tpu.dot_dimension_numbers<[1], [0], [0], [1], [0, 0, 1, 1], [], []>} : vector<14x128xbf16>, vector<128x128xbf16>, vector<14x128xf32> -> vector<14x128xf32>
    %128 = arith.addf %120, %127 : vector<14x128xf32>
    %c2_i32_114 = arith.constant 2 : i32
    %129 = arith.addi %79, %c2_i32_114 : i32
    %c0_115 = arith.constant 0 : index
    %130 = arith.index_cast %129 : i32 to index
    %c0_116 = arith.constant 0 : index
    %c0_117 = arith.constant 0 : index
    %131 = vector.load %arg2[%c0_115, %130, %c0_116, %c0_117] : memref<1x16x16x128xbf16, #tpu.memory_space<vmem>>, vector<1x1x14x128xbf16>
    %132 = vector.shape_cast %131 : vector<1x1x14x128xbf16> to vector<14x128xbf16>
    %c6_118 = arith.constant 6 : index
    %c0_119 = arith.constant 0 : index
    %c0_120 = arith.constant 0 : index
    %133 = vector.load %arg3[%c6_118, %c0_119, %c0_120] : memref<9x128x128xbf16, #tpu.memory_space<vmem>>, vector<1x128x128xbf16>
    %134 = vector.shape_cast %133 : vector<1x128x128xbf16> to vector<128x128xbf16>
    %cst_121 = arith.constant dense<0.000000e+00> : vector<14x128xf32>
    %135 = tpu.matmul %132, %134, %cst_121 {dimension_numbers = #tpu.dot_dimension_numbers<[1], [0], [0], [1], [0, 0, 1, 1], [], []>} : vector<14x128xbf16>, vector<128x128xbf16>, vector<14x128xf32> -> vector<14x128xf32>
    %136 = arith.addf %128, %135 : vector<14x128xf32>
    %c2_i32_122 = arith.constant 2 : i32
    %137 = arith.addi %79, %c2_i32_122 : i32
    %c0_123 = arith.constant 0 : index
    %138 = arith.index_cast %137 : i32 to index
    %c1_124 = arith.constant 1 : index
    %c0_125 = arith.constant 0 : index
    %139 = vector.load %arg2[%c0_123, %138, %c1_124, %c0_125] : memref<1x16x16x128xbf16, #tpu.memory_space<vmem>>, vector<1x1x14x128xbf16>
    %140 = vector.shape_cast %139 : vector<1x1x14x128xbf16> to vector<14x128xbf16>
    %c7_126 = arith.constant 7 : index
    %c0_127 = arith.constant 0 : index
    %c0_128 = arith.constant 0 : index
    %141 = vector.load %arg3[%c7_126, %c0_127, %c0_128] : memref<9x128x128xbf16, #tpu.memory_space<vmem>>, vector<1x128x128xbf16>
    %142 = vector.shape_cast %141 : vector<1x128x128xbf16> to vector<128x128xbf16>
    %cst_129 = arith.constant dense<0.000000e+00> : vector<14x128xf32>
    %143 = tpu.matmul %140, %142, %cst_129 {dimension_numbers = #tpu.dot_dimension_numbers<[1], [0], [0], [1], [0, 0, 1, 1], [], []>} : vector<14x128xbf16>, vector<128x128xbf16>, vector<14x128xf32> -> vector<14x128xf32>
    %144 = arith.addf %136, %143 : vector<14x128xf32>
    %c2_i32_130 = arith.constant 2 : i32
    %145 = arith.addi %79, %c2_i32_130 : i32
    %c0_131 = arith.constant 0 : index
    %146 = arith.index_cast %145 : i32 to index
    %c2_132 = arith.constant 2 : index
    %c0_133 = arith.constant 0 : index
    %147 = vector.load %arg2[%c0_131, %146, %c2_132, %c0_133] : memref<1x16x16x128xbf16, #tpu.memory_space<vmem>>, vector<1x1x14x128xbf16>
    %148 = vector.shape_cast %147 : vector<1x1x14x128xbf16> to vector<14x128xbf16>
    %c8_134 = arith.constant 8 : index
    %c0_135 = arith.constant 0 : index
    %c0_136 = arith.constant 0 : index
    %149 = vector.load %arg3[%c8_134, %c0_135, %c0_136] : memref<9x128x128xbf16, #tpu.memory_space<vmem>>, vector<1x128x128xbf16>
    %150 = vector.shape_cast %149 : vector<1x128x128xbf16> to vector<128x128xbf16>
    %cst_137 = arith.constant dense<0.000000e+00> : vector<14x128xf32>
    %151 = tpu.matmul %148, %150, %cst_137 {dimension_numbers = #tpu.dot_dimension_numbers<[1], [0], [0], [1], [0, 0, 1, 1], [], []>} : vector<14x128xbf16>, vector<128x128xbf16>, vector<14x128xf32> -> vector<14x128xf32>
    %152 = arith.addf %144, %151 : vector<14x128xf32>
    %153 = vector.broadcast %0 : vector<1x128xf32> to vector<14x128xf32>
    %154 = arith.addf %152, %153 : vector<14x128xf32>
    %cst_138 = arith.constant 0.000000e+00 : f32
    %155 = vector.broadcast %cst_138 : f32 to vector<14x128xf32>
    %156 = arith.maximumf %154, %155 : vector<14x128xf32>
    %157 = arith.maximumf %78, %156 : vector<14x128xf32>
    %c0_139 = arith.constant 0 : index
    %c0_140 = arith.constant 0 : index
    %158 = vector.load %arg6[%c0_139, %c0_140] : memref<14x128xf32, #tpu.memory_space<vmem>>, vector<14x128xf32>
    tpu.vector_store %arg6[%c0_139, %c0_140], %157 {strides = array<i32>} : memref<14x128xf32, #tpu.memory_space<vmem>>, vector<14x128xf32>,
    %c0_141 = arith.constant 0 : index
    %c0_142 = arith.constant 0 : index
    %159 = tpu.strided_load %arg6[%c0_141, %c0_142] {strides = array<i32: 2, 1>} : memref<14x128xf32, #tpu.memory_space<vmem>>, vector<7x128xf32>
    %c1_143 = arith.constant 1 : index
    %c0_144 = arith.constant 0 : index
    %160 = tpu.strided_load %arg6[%c1_143, %c0_144] {strides = array<i32: 2, 1>} : memref<14x128xf32, #tpu.memory_space<vmem>>, vector<7x128xf32>
    %161 = arith.maximumf %159, %160 : vector<7x128xf32>
    %162 = arith.truncf %161 : vector<7x128xf32> to vector<7x128xbf16>
    %c0_145 = arith.constant 0 : index
    %c0_146 = arith.constant 0 : index
    %c0_147 = arith.constant 0 : index
    %c0_148 = arith.constant 0 : index
    %163 = vector.load %arg5[%c0_145, %c0_146, %c0_147, %c0_148] : memref<1x1x7x128xbf16, #tpu.memory_space<vmem>>, vector<1x1x7x128xbf16>
    %164 = vector.shape_cast %163 : vector<1x1x7x128xbf16> to vector<7x128xbf16>
    %165 = vector.shape_cast %162 : vector<7x128xbf16> to vector<1x1x7x128xbf16>
    tpu.vector_store %arg5[%c0_145, %c0_146, %c0_147, %c0_148], %165 {strides = array<i32>} : memref<1x1x7x128xbf16, #tpu.memory_space<vmem>>, vector<1x1x7x128xbf16>,
    return
  }
  func.func @transform_0(%arg0: i32, %arg1: i32) -> (i32, i32, i32, i32) {
    %c0_i32 = arith.constant 0 : i32
    %c0_i32_0 = arith.constant 0 : i32
    %c0_i32_1 = arith.constant 0 : i32
    %c0_i32_2 = arith.constant 0 : i32
    return %arg0, %c0_i32, %c0_i32_0, %c0_i32_1 : i32, i32, i32, i32
  }
  func.func @transform_1(%arg0: i32, %arg1: i32) -> (i32, i32, i32) {
    %c0_i32 = arith.constant 0 : i32
    %c0_i32_0 = arith.constant 0 : i32
    %c0_i32_1 = arith.constant 0 : i32
    %c0_i32_2 = arith.constant 0 : i32
    return %c0_i32, %c0_i32_0, %c0_i32_1 : i32, i32, i32
  }
  func.func @transform_2(%arg0: i32, %arg1: i32) -> (i32, i32) {
    %c0_i32 = arith.constant 0 : i32
    %c0_i32_0 = arith.constant 0 : i32
    %c0_i32_1 = arith.constant 0 : i32
    return %c0_i32, %c0_i32_0 : i32, i32
  }
  func.func @transform_3(%arg0: i32, %arg1: i32) -> (i32, i32, i32, i32) {
    %c0_i32 = arith.constant 0 : i32
    %c0_i32_0 = arith.constant 0 : i32
    %c0_i32_1 = arith.constant 0 : i32
    return %arg0, %arg1, %c0_i32, %c0_i32_0 : i32, i32, i32, i32
  }
}

</mosaic_0001>

<bundles_post_ra>
// kernel: teacher_forward.3
= control target key start
LH: loop header
LB: loop body
LE: loop exit
PB: predicated region body
PF: predicated region fallthrough
CT: control target
= control target key end

     0   :  { %8 = vsyncpa [#allocation4], 0  ;;  %s1225_s12 = smov 0   ;;  %s1227_s13 = smov 0   ;;  %s1645_s0 = inlined_call_operand.vmem [shape: bf16[2,30,30,1], index: 0, kind: input, shape index: {}]   ;;  %s1646_s1 = inlined_call_operand.vmem [shape: bf16[9,1,128], index: 1, kind: input, shape index: {}]   ;;  %s1647_s2 = inlined_call_operand.hbm [shape: f32[1,128], index: 2, kind: input, shape index: {}]   ;;  %s1648_s3 = inlined_call_operand.vmem [shape: bf16[2,14,14,128], index: 3, kind: output, shape index: {}]  }
   0x1   :  { %s1229_s14 = smov 0   ;;  %s1231_s15 = smov 0  }
   0x2   :  { %s1233_s16 = smov 0  }
   0x3 LB: > { %s941_s17 = sadd.s32 4294967295, %s1201_s16   ;;  %s23_s18 = sadd.s32 1, %s1193_s14  ;;  %s1201_s16 = sphi %s1233_s16, %s14_s16   ;;  %s1197_s15 = sphi %s1231_s15, %s1654_s15   ;;  %s1193_s14 = sphi %s1229_s14, %s1653_s14   ;;  %s1189_s13 = sphi %s1227_s13, %s1652_s13   ;;  %s1185_s12 = sphi %s1225_s12, %s1651_s12  }
   0x4   : > { %p24_p0 = scmp.ge.s32.totalorder %s23_s18, 14  ;;  %s26_s19 = sadd.s32 1, %s1197_s15 }
   0x5   : > { %p943_p1 = scmp.ge.s32.totalorder %s1201_s16, 1  ;;  %p127_p2 = scmp.lt.s32.totalorder %s1201_s16, 29 }
   0x6   : > { %s1656_s18 = smov (%p24_p0, %s23_s18), 0  ;;  %s1658_s19 = smov (!%p24_p0, %s26_s19), %s1197_s15 }
   0x7   : > { %p1258_p3 = pnand %p943_p1, %p127_p2  ;;  %p28_p4 = scmp.ge.s32.totalorder %s1658_s19, 2 }
   0x8   : > { %p1262_p5 = scmp.eq.s32.totalorder %s941_s17, 0  ;;  %s1203_s22 = smov [#allocation3]  }
   0x9   : > { %p1023_p6 = pneg %p1258_p3  ;;  %s1660_s19 = smov (%p28_p4, %s1658_s19), 0 }
   0xa   : > { %s143_s23 = sshll.u32 %s1203_s22, 4  ;;  %s144_s23 = int_to_ptr.vmem [resolvable:$true] %s143_s23 }
   0xb   : > { %p1024_p7 = pnand %p1262_p5, %p1023_p6  ;;  %s1144_s24 = scalar_lea.vmem %s144_s23, 16 }
   0xc   : > { %p1145_p9 = scmp.ne.s32.totalorder %s144_s23, %s1144_s24  ;;  %s1151_s25 = scalar_lea.vmem %s144_s23, 32 }
   0xd   : > { %p1135_p8 = pneg %p1024_p7  ;;  %p1152_p12 = scmp.lt.s32.totalorder %s144_s23, %s144_s23 }
   0xe   : > { %p1153_p13 = scmp.lt.s32.totalorder %s1151_s25, %s1144_s24 }
   0xf   : > { %p1147_p10 = pnand %p1145_p9, %p1135_p8 }
  0x10   : > { %p1154_p0 = por %p1153_p13, %p1152_p12 }
  0x11   : > { %p1148_p11 = pneg %p1147_p10 }
  0x13   : > { %p1155_p1 = pnand %p1154_p0, %p1148_p11 }
  0x15   : > { %1158 = shalt.err (!%p1155_p1)
}
  0x16   : > { %1026 = dma.hbm_to_vmem [thread:$0]  (!%p1024_p7), %s1647_s2, 16, %s144_s23, [#allocation4]  }
  0x17   : > { %164 = sbr.rel (%p1258_p3) target bundleno = 251 (0xfb), region = 32 }
  0x1c   : > { %1180 = dma.done.wait (%p1262_p5), [#allocation4], 16  }
  0x1d   : > { %1182 = vsyncadd (%p1262_p5), [#allocation4], 4294967280  ;;  %p192_p2 = scmp.lt.s32.totalorder %s1189_s13, 1  ;;  %v1204_v0 = vmov 0   ;;  %s992_s29 = sshll.u32 %s1185_s12, 5  ;;  %v241_v55 = vlaneseq  ;;  %vm275_vm0 = vcmask 1046528  }
  0x1e   : > { %1082 = vset.pattern.permute.xlu1 %v1204_v0  ;;  %1071 = vset.pattern.permute.xlu0 %v1204_v0  ;;  %v964_v57 = vld [vmem:[%s1646_s1 + $0x4] sm:$0x1]  ;;  %v954_v58 = vld [vmem:[%s1646_s1 + $0x1] sm:$0x1]  ;;  %v955_v59 = vld [vmem:[%s1646_s1 + $0x2] sm:$0x1] }
  0x1f   : > { %s1662_s13 = smov (!%p192_p2, %s1189_s13), 1  ;;  %v242_v56 = vshrl.u32 %v241_v55, 7  ;;  %v962_v60 = vld [vmem:[%s1646_s1 + $0x3] sm:$0x1]  ;;  %v380_v62 = vunpack.c.l.bf16 %v964_v57  ;;  %v215_v63 = vld [vmem:[%s1646_s1] sm:$0x1]  ;;  %v257_v0 = vunpack.c.l.bf16 %v954_v58 }
  0x20   : > { %s1017_s28 = smul.u32 480, %s1662_s13  ;;  %vm313_vm1 = vcmask 1045504   ;;  %p199_p3 = scmp.lt.s32.totalorder %s1185_s12, 13 }
  0x21   : > { %v243_v61 = vsub.s32 0, %v242_v56 }
  0x22   : > { %s196_s5 = scalar_lea.vmem %s1645_s0, %s1017_s28  ;;  %s1664_s12 = smov (!%p199_p3, %s1185_s12), 13 }
  0x23   : > { %s1290_s6 = scalar_lea.vmem %s196_s5, %s992_s29  ;;  %s1018_s5 = smul.u32 28, %s1662_s13 }
  0x24   : > { %v1014_v1 = vld [vmem:[%s1290_s6 + $0x10] sm:$0xff]   ;;  %v999_v2 = vld [vmem:[%s1290_s6] sm:$0xff]   ;;  %v960_v3 = vld [vmem:[%s1290_s6 + $0x8] ss:$16 sps:$4 sm:$0xff]  }
  0x25   : > { %v1004_v4 = vunpack.c.l.bf16 %v1014_v1  ;;  %v1005_v5 = vunpack.c.h.bf16 %v1014_v1  ;;  %v1000_v6 = vunpack.c.l.bf16 %v999_v2  ;;  %v1001_v7 = vunpack.c.h.bf16 %v999_v2  ;;  %v963_v8 = vld [vmem:[%s1290_s6 + $0x1c] sm:$0x7]  ;;  %v253_v9 = vld [vmem:[%s1290_s6 + $0xc] sm:$0x7]  ;;  %v291_v16 = vld [vmem:[%s1290_s6] sm:$0xe] }
  0x26   : > { %v214_v10 = vld [vmem:[%s1290_s6 + $0xc] sm:$0x3]  ;;  %v341_v11 = vunpack.c.h.bf16 %v960_v3  ;;  %v379_v12 = vunpack.c.l.bf16 %v963_v8  ;;  %v218_v13 = vunpack.c.l.bf16 %v960_v3  ;;  %v256_v14 = vunpack.c.l.bf16 %v253_v9  ;;  %v961_v15 = vld [vmem:[%s1290_s6 + $0x1c] sm:$0x3]  ;;  %v965_v17 = vld [vmem:[%s1290_s6 + $0x10] sm:$0xe] }
  0x27   : > { %v1083_v18 = vpack.i.bf16 %v1005_v5, %v1004_v4  ;;  %v1072_v19 = vpack.i.bf16 %v1001_v7, %v1000_v6  ;;  %v219_v20 = vunpack.c.l.bf16 %v214_v10  ;;  %v342_v21 = vunpack.c.l.bf16 %v961_v15  ;;  %v971_v26 = vld [vmem:[%s1290_s6 + $0x28] ss:$16 sps:$4 sm:$0xff]   ;;  %v974_v27 = vld [vmem:[%s1290_s6 + $0x2c] sm:$0x7]  ;;  %v1015_v28 = vld [vmem:[%s1290_s6 + $0x20] sm:$0xff]  }
  0x28   : > { %v1088_v22 = vpack.i.bf16 %v379_v12, %v341_v11  ;;  %v1077_v23 = vpack.i.bf16 %v256_v14, %v218_v13  ;;  %v294_v24 = vunpack.c.l.bf16 %v291_v16  ;;  %v416_v25 = vunpack.c.l.bf16 %v965_v17  ;;  %v1016_v35 = vld [vmem:[%s1290_s6 + $0x30] sm:$0xff]   ;;  %v972_v36 = vld [vmem:[%s1290_s6 + $0x2c] sm:$0x3]  ;;  %v976_v37 = vld [vmem:[%s1290_s6 + $0x20] sm:$0xe] }
  0x29   : > { %1084 = vperm.xlu1 %1082, %v1083_v18   ;;  %1073 = vperm.xlu0 %1071, %v1072_v19   ;;  %v1098_v29 = vpack.i.bf16 %v342_v21, %v219_v20  ;;  %v462_v30 = vunpack.c.l.bf16 %v971_v26  ;;  %v500_v32 = vunpack.c.l.bf16 %v974_v27  ;;  %v1008_v33 = vunpack.c.l.bf16 %v1015_v28  ;;  %v984_v44 = vld [vmem:[%s1290_s6 + $0x3c] sm:$0x3]  ;;  %v986_v45 = vld [vmem:[%s1290_s6 + $0x30] sm:$0xe]  ;;  %v966_v1 = vld [vmem:[%s1646_s1 + $0x5] sm:$0x1] }
  0x2a   : > { %v1093_v31 = vpack.i.bf16 %v416_v25, %v294_v24  ;;  %v1009_v34 = vunpack.c.h.bf16 %v1015_v28  ;;  %v1012_v38 = vunpack.c.l.bf16 %v1016_v35  ;;  %v1013_v39 = vunpack.c.h.bf16 %v1016_v35  ;;  %v985_v46 = vld [vmem:[%s1290_s6 + $0x3c] sm:$0x7]  ;;  %v975_v3 = vld [vmem:[%s1646_s1 + $0x7] sm:$0x1]  ;;  %v977_v5 = vld [vmem:[%s1646_s1 + $0x8] sm:$0x1] }
  0x2b   : > { %v1108_v40 = vpack.i.bf16 %v500_v32, %v462_v30  ;;  %v463_v42 = vunpack.c.l.bf16 %v972_v36  ;;  %v537_v43 = vunpack.c.l.bf16 %v976_v37  ;;  %v704_v48 = vunpack.c.l.bf16 %v984_v44  ;;  %v973_v6 = vld [vmem:[%s1646_s1 + $0x6] sm:$0x1]  ;;  %s949_s6 = sshll.u32 %s1664_s12, 1 }
  0x2c   : > { %v1103_v41 = vpack.i.bf16 %v1009_v34, %v1008_v33  ;;  %v1118_v47 = vpack.i.bf16 %v1013_v39, %v1012_v38  ;;  %v764_v50 = vunpack.c.l.bf16 %v986_v45  ;;  %v703_v51 = vunpack.c.h.bf16 %v971_v26  ;;  %s203_s7 = sadd.s32 %s1018_s5, %s949_s6 }
  0x2d   : > { %1089 = vperm.xlu1 %1082, %v1088_v22   ;;  %1078 = vperm.xlu0 %1071, %v1077_v23   ;;  %v1113_v49 = vpack.i.bf16 %v537_v43, %v463_v42  ;;  %v734_v52 = vunpack.c.l.bf16 %v985_v46  ;;  %v295_v2 = vunpack.c.l.bf16 %v955_v59  ;;  %v343_v4 = vunpack.c.l.bf16 %v962_v60  ;;  %s950_s8 = sshll.u32 %s203_s7, 2 }
  0x2e   : > { %v1128_v53 = vpack.i.bf16 %v764_v50, %v704_v48  ;;  %v220_v8 = vunpack.c.l.bf16 %v215_v63  ;;  %v417_v10 = vunpack.c.l.bf16 %v966_v1  ;;  %v1337_v11 = vrot.slane %v380_v62, %v243_v61  ;;  %s205_s11 = scalar_lea.vmem %s1648_s3, %s950_s8 }
  0x2f   : > { %v1123_v54 = vpack.i.bf16 %v734_v52, %v703_v51  ;;  %v1339_v13 = vrot.slane %v257_v0, %v243_v61  ;;  %v501_v14 = vunpack.c.l.bf16 %v975_v3  ;;  %v1341_v15 = vrot.slane %v295_v2, %v243_v61 }
  0x30   : > { %v538_v17 = vunpack.c.l.bf16 %v977_v5  ;;  %v464_v18 = vunpack.c.l.bf16 %v973_v6  ;;  %v1343_v19 = vrot.slane %v343_v4, %v243_v61  ;;  %v1347_v22 = vrot.slane %v220_v8, %v243_v61 }
  0x31   : > { %1099 = vperm.xlu1 %1082, %v1098_v29   ;;  %1094 = vperm.xlu0 %1071, %v1093_v31   ;;  %v1349_v23 = vrot.slane %v417_v10, %v243_v61  ;;  %v1361_v29 = vrot.slane %v501_v14, %v243_v61 }
  0x32   : > { %v1367_v32 = vrot.slane %v538_v17, %v243_v61  ;;  %v1369_v33 = vrot.slane %v464_v18, %v243_v61 }
  0x35   : > { %1109 = vperm.xlu1 %1082, %v1108_v40   ;;  %1104 = vperm.xlu0 %1071, %v1103_v41  }
  0x39   : > { %1119 = vperm.xlu1 %1082, %v1118_v47   ;;  %1114 = vperm.xlu0 %1071, %v1113_v49  }
  0x3d   : > { %1129 = vperm.xlu1 %1082, %v1128_v53   ;;  %1124 = vperm.xlu0 %1071, %v1123_v54  }
  0xa4   : > { %v1085_v7 = vpop.permute.xlu1 %1084  ;;  %v1074_v9 = vpop.permute.xlu0 %1073 }
  0xa5   : > { %v1086_v12 = vunpack.i.l.bf16 %v1085_v7  ;;  %v1076_v16 = vunpack.i.h.bf16 %v1074_v9  ;;  %v1345_v20 = vunpack.i.h.bf16 %v1085_v7  ;;  %v1075_v21 = vunpack.i.l.bf16 %v1074_v9 }
  0xa7   : > { %v1353_v26 = vmul.f32 %v1345_v20, %v1337_v11  ;;  %v1356_v27 = vmul.f32 %v1086_v12, %v1337_v11  ;;  %v1359_v28 = vmul.f32 %v1086_v12, %v1339_v13  ;;  %v268_v30 = vmul.f32 %v1076_v16, %v1339_v13 }
  0xa8   : > { %v1090_v24 = vpop.permute.xlu1 %1089  ;;  %v1079_v25 = vpop.permute.xlu0 %1078  ;;  %v1365_v31 = vmul.f32 %v1076_v16, %v1341_v15  ;;  %v1372_v34 = vmul.f32 %v1086_v12, %v1343_v19  ;;  %v267_v35 = vmul.f32 %v1075_v21, %v1339_v13  ;;  %v1376_v38 = vmul.f32 %v1086_v12, %v1347_v22 }
  0xa9   : > { %v1092_v36 = vunpack.i.h.bf16 %v1090_v24  ;;  %v1081_v37 = vunpack.i.h.bf16 %v1079_v25  ;;  %v1380_v39 = vmul.f32 %v1345_v20, %v1347_v22  ;;  %v246_v40 = vmul.f32 %v1076_v16, %v1347_v22 }
  0xaa   : > { %v1091_v41 = vunpack.i.l.bf16 %v1090_v24  ;;  %v399_v42 = vrot.slane %v1353_v26, 1  ;;  %v398_v43 = vrot.slane %v1356_v27, 1  ;;  %v601_v44 = vrot.slane %v1359_v28, 1 }
  0xab   : > { %v245_v45 = vmul.f32 %v1075_v21, %v1347_v22  ;;  %v277_v46 = vrot.slane %v268_v30, 1  ;;  %v315_v47 = vrot.slane %v1365_v31, 2  ;;  %v270_v48 = vmul.f32 %v1081_v37, %v1339_v13 }
  0xac   : > { %v1080_v49 = vunpack.i.l.bf16 %v1079_v25  ;;  %v276_v50 = vrot.slane %v267_v35, 1  ;;  %v1390_v51 = vmul.f32 %v1092_v36, %v1337_v11  ;;  %v369_v52 = vmul.f32 %v1345_v20, %v1343_v19  ;;  %v1100_v58 = vpop.permute.xlu1 %1099  ;;  %v1095_v30 = vpop.permute.xlu0 %1094 }
  0xad   : > { %v308_v53 = vmul.f32 %v1081_v37, %v1341_v15  ;;  %v1396_v54 = vmul.f32 %v1092_v36, %v1349_v23  ;;  %v392_v55 = vmul.f32 %v1091_v41, %v1337_v11  ;;  %v281_v56 = vrot.slane %v270_v48, 1 }
  0xae   : > { %v269_v57 = vmul.f32 %v1080_v49, %v1339_v13  ;;  %v1401_v59 = vmul.f32 %v1091_v41, %v1349_v23  ;;  %v1404_v60 = vmul.f32 %v1091_v41, %v1341_v15  ;;  %v1407_v61 = vmul.f32 %v1092_v36, %v1341_v15 }
  0xaf   : > { %v307_v62 = vmul.f32 %v1080_v49, %v1341_v15  ;;  %v370_v63 = vmul.f32 %v1091_v41, %v1343_v19  ;;  %v1412_v1 = vmul.f32 %v1091_v41, %v1339_v13  ;;  %v596_v2 = vmul.f32 %v1092_v36, %v1339_v13 }
  0xb0   : > { %v279_v0 = vrot.slane %v269_v57, 1  ;;  %v319_v3 = vrot.slane %v308_v53, 2  ;;  %v247_v4 = vmul.f32 %v1080_v49, %v1347_v22  ;;  %v1101_v6 = vunpack.i.l.bf16 %v1100_v58  ;;  %v1105_v26 = vpop.permute.xlu0 %1104 }
  0xb1   : > { %v317_v5 = vrot.slane %v307_v62, 2  ;;  %v278_v7 = vsel %vm275_vm0, %v276_v50, %v277_v46  ;;  %v401_v8 = vrot.slane %v392_v55, 1  ;;  %v403_v16 = vrot.slane %v1390_v51, 1 }
  0xb2   : > { %v280_v9 = vsel %vm275_vm0, %v277_v46, %v279_v0  ;;  %v282_v10 = vsel %vm275_vm0, %v279_v0, %v281_v56  ;;  %v1102_v17 = vunpack.i.h.bf16 %v1100_v58  ;;  %v604_v21 = vrot.slane %v1412_v1, 1  ;;  %v1110_v0 = vpop.permute.xlu1 %1109 }
  0xb3   : > { %v288_v12 = vadd.f32 %v280_v9, %v246_v40  ;;  %v289_v14 = vadd.f32 %v282_v10, %v247_v4  ;;  %v318_v18 = vsel %vm313_vm1, %v315_v47, %v317_v5  ;;  %v606_v24 = vrot.slane %v596_v2, 1 }
  0xb4   : > { %v248_v25 = vmul.f32 %v1101_v6, %v1347_v22  ;;  %v287_v35 = vadd.f32 %v278_v7, %v245_v45  ;;  %v438_v36 = vrot.slane %v1401_v59, 2  ;;  %v320_v37 = vsel %vm313_vm1, %v317_v5, %v319_v3 }
  0xb5   : > { %v326_v40 = vadd.f32 %v318_v18, %v288_v12  ;;  %v627_v46 = vrot.slane %v1404_v60, 2  ;;  %v327_v48 = vadd.f32 %v320_v37, %v289_v14  ;;  %v594_v50 = vmul.f32 %v1345_v20, %v1339_v13 }
  0xb6   : > { %v290_v49 = vadd.f32 %v281_v56, %v248_v25  ;;  %v402_v51 = vsel %vm275_vm0, %v399_v42, %v401_v8  ;;  %v404_v53 = vsel %vm275_vm0, %v401_v8, %v403_v16  ;;  %v587_v45 = vmul.f32 %v1091_v41, %v1347_v22 }
  0xb7   : > { %v1097_v55 = vunpack.i.h.bf16 %v1095_v30  ;;  %v607_v57 = vsel %vm275_vm0, %v604_v21, %v606_v24  ;;  %v588_v58 = vmul.f32 %v1102_v17, %v1347_v22  ;;  %v428_v62 = vmul.f32 %v1345_v20, %v1349_v23 }
  0xb8   : > { %v1096_v56 = vunpack.i.l.bf16 %v1095_v30  ;;  %v373_v1 = vadd.f32 %v369_v52, %v326_v40  ;;  %v328_v13 = vadd.f32 %v319_v3, %v290_v49  ;;  %v602_v2 = vrot.slane %v594_v50, 1  ;;  %v1120_v40 = vpop.permute.xlu1 %1119 }
  0xb9   : > { %v617_v4 = vmul.f32 %v1345_v20, %v1341_v15  ;;  %v374_v5 = vadd.f32 %v370_v63, %v327_v48  ;;  %v427_v6 = vmul.f32 %v1097_v55, %v1349_v23  ;;  %v616_v41 = vmul.f32 %v1097_v55, %v1341_v15 }
  0xba   : > { %v305_v7 = vmul.f32 %v1096_v56, %v1341_v15  ;;  %v1444_v8 = vadd.f32 %v607_v57, %v587_v45  ;;  %v371_v22 = vmul.f32 %v1102_v17, %v1343_v19  ;;  %v400_v52 = vsel %vm275_vm0, %v398_v43, %v399_v42 }
  0xbb   : > { %v1452_v3 = vunpack.i.h.bf16 %v1110_v0  ;;  %v1454_v20 = vadd.f32 %v606_v24, %v588_v58  ;;  %v436_v63 = vrot.slane %v428_v62, 2  ;;  %v1456_v10 = vunpack.i.l.bf16 %v1110_v0 }
  0xbc   : > { %v314_v9 = vrot.slane %v305_v7, 2  ;;  %v410_v12 = vadd.f32 %v402_v51, %v373_v1  ;;  %v375_v15 = vadd.f32 %v371_v22, %v328_v13  ;;  %v603_v14 = vsel %vm275_vm0, %v601_v44, %v602_v2 }
  0xbd   : > { %v624_v17 = vrot.slane %v616_v41, 2  ;;  %v1461_v18 = vadd.f32 %v404_v53, %v374_v5  ;;  %v625_v27 = vrot.slane %v617_v4, 2  ;;  %v435_v42 = vrot.slane %v427_v6, 2 }
  0xbe   : > { %v316_v43 = vsel %vm313_vm1, %v314_v9, %v315_v47  ;;  %v439_v24 = vsel %vm313_vm1, %v436_v63, %v438_v36  ;;  %v1471_v28 = vmul.f32 %v1452_v3, %v1367_v32  ;;  %v1475_v44 = vmul.f32 %v1456_v10, %v1367_v32 }
  0xbf   : > { %v325_v25 = vadd.f32 %v316_v43, %v287_v35  ;;  %v612_v30 = vadd.f32 %v603_v14, %v1376_v38  ;;  %v1478_v37 = vunpack.i.h.bf16 %v1105_v26  ;;  %v1106_v31 = vunpack.i.l.bf16 %v1105_v26 }
  0xc0   : > { %v605_v47 = vsel %vm275_vm0, %v602_v2, %v604_v21  ;;  %v412_v48 = vadd.f32 %v403_v16, %v375_v15  ;;  %v626_v49 = vsel %vm313_vm1, %v624_v17, %v625_v27  ;;  %v447_v50 = vadd.f32 %v439_v24, %v410_v12 }
  0xc1   : > { %v372_v35 = vadd.f32 %v1372_v34, %v325_v25  ;;  %v437_v51 = vsel %vm313_vm1, %v435_v42, %v436_v63  ;;  %v1486_v53 = vmul.f32 %v1452_v3, %v1361_v29  ;;  %v1490_v38 = vmul.f32 %v1452_v3, %v1337_v11  ;;  %v1115_v25 = vpop.permute.xlu0 %1114 }
  0xc2   : > { %v613_v45 = vadd.f32 %v605_v47, %v1380_v39  ;;  %v561_v16 = vrot.slane %v1471_v28, 2  ;;  %v559_v55 = vrot.slane %v1475_v44, 2  ;;  %v1122_v57 = vunpack.i.h.bf16 %v1120_v40 }
  0xc3   : > { %v409_v21 = vadd.f32 %v400_v52, %v372_v35  ;;  %v635_v34 = vadd.f32 %v626_v49, %v612_v30  ;;  %v490_v58 = vmul.f32 %v1478_v37, %v1369_v33  ;;  %v1498_v62 = vmul.f32 %v1106_v31, %v1361_v29 }
  0xc4   : > { %v628_v56 = vsel %vm313_vm1, %v625_v27, %v627_v46  ;;  %v639_v0 = vmul.f32 %v1106_v31, %v1343_v19  ;;  %v647_v39 = vmul.f32 %v1106_v31, %v1337_v11  ;;  %v1121_v13 = vunpack.i.l.bf16 %v1120_v40 }
  0xc5   : > { %v636_v1 = vadd.f32 %v628_v56, %v613_v45  ;;  %v446_v2 = vadd.f32 %v437_v51, %v409_v21  ;;  %v640_v4 = vmul.f32 %v1478_v37, %v1343_v19  ;;  %v648_v5 = vmul.f32 %v1478_v37, %v1337_v11 }
  0xc6   : > { %v1511_v6 = vmul.f32 %v1456_v10, %v1337_v11  ;;  %v1518_v41 = vsel %vm313_vm1, %v559_v55, %v561_v16  ;;  %v489_v7 = vmul.f32 %v1106_v31, %v1369_v33  ;;  %v1522_v22 = vmul.f32 %v1122_v57, %v1361_v29 }
  0xc7   : > { %v1525_v52 = vmul.f32 %v1122_v57, %v1367_v32  ;;  %v656_v63 = vrot.slane %v648_v5, 1  ;;  %v671_v11 = vmul.f32 %v1478_v37, %v1349_v23  ;;  %v1532_v12 = vmul.f32 %v1456_v10, %v1349_v23 }
  0xc8   : > { %v658_v9 = vrot.slane %v1511_v6, 1  ;;  %v1534_v15 = vadd.f32 %v490_v58, %v447_v50  ;;  %v519_v14 = vrot.slane %v1498_v62, 1  ;;  %v643_v17 = vadd.f32 %v639_v0, %v635_v34 }
  0xc9   : > { %v655_v26 = vrot.slane %v647_v39, 1  ;;  %v493_v27 = vadd.f32 %v489_v7, %v446_v2  ;;  %v1538_v42 = vmul.f32 %v1122_v57, %v1369_v33  ;;  %v644_v43 = vadd.f32 %v640_v4, %v636_v1 }
  0xca   : > { %v740_v24 = vmul.f32 %v1121_v13, %v1361_v29  ;;  %v749_v30 = vrot.slane %v1522_v22, 1  ;;  %v659_v31 = vsel %vm275_vm0, %v656_v63, %v658_v9  ;;  %v440_v47 = vrot.slane %v1396_v54, 2 }
  0xcb   : > { %v513_v40 = vmul.f32 %v1456_v10, %v1361_v29  ;;  %v779_v49 = vrot.slane %v1525_v52, 2  ;;  %v679_v35 = vrot.slane %v671_v11, 2  ;;  %v681_v50 = vrot.slane %v1532_v12, 2 }
  0xcc   : > { %v725_v51 = vmul.f32 %v1121_v13, %v1369_v33  ;;  %v491_v45 = vmul.f32 %v1456_v10, %v1369_v33  ;;  %v524_v21 = vrot.slane %v1486_v53, 1  ;;  %v1117_v57 = vunpack.i.h.bf16 %v1115_v25 }
  0xcd   : > { %v1116_v34 = vunpack.i.l.bf16 %v1115_v25  ;;  %v667_v58 = vadd.f32 %v659_v31, %v644_v43  ;;  %v748_v62 = vrot.slane %v740_v24, 1  ;;  %v629_v54 = vrot.slane %v1407_v61, 2 }
  0xce   : > { %v512_v56 = vmul.f32 %v1478_v37, %v1361_v29  ;;  %v441_v0 = vsel %vm313_vm1, %v438_v36, %v440_v47  ;;  %v522_v39 = vrot.slane %v513_v40, 1  ;;  %v670_v1 = vmul.f32 %v1117_v57, %v1349_v23 }
  0xcf   : > { %v449_v13 = vadd.f32 %v440_v47, %v412_v48  ;;  %v548_v2 = vmul.f32 %v1117_v57, %v1367_v32  ;;  %v448_v53 = vadd.f32 %v441_v0, %v1461_v18  ;;  %v642_v5 = vmul.f32 %v1116_v34, %v1343_v19  ;;  %v1130_v47 = vpop.permute.xlu1 %1129 }
  0xd0   : > { %v520_v4 = vrot.slane %v512_v56, 1  ;;  %v682_v61 = vsel %vm313_vm1, %v679_v35, %v681_v50  ;;  %v638_v7 = vadd.f32 %v629_v54, %v1454_v20  ;;  %v492_v59 = vmul.f32 %v1116_v34, %v1369_v33  ;;  %v1125_v56 = vpop.permute.xlu0 %1124 }
  0xd1   : > { %v549_v36 = vmul.f32 %v1478_v37, %v1367_v32  ;;  %v630_v48 = vsel %vm313_vm1, %v627_v46, %v629_v54  ;;  %v660_v18 = vrot.slane %v1490_v38, 1  ;;  %v678_v11 = vrot.slane %v670_v1, 2 }
  0xd2   : > { %v657_v43 = vsel %vm275_vm0, %v655_v26, %v656_v63  ;;  %v1576_v24 = vadd.f32 %v682_v61, %v667_v58  ;;  %v750_v20 = vsel %vm275_vm0, %v748_v62, %v749_v30  ;;  %v496_v25 = vadd.f32 %v492_v59, %v449_v13 }
  0xd3   : > { %v646_v31 = vadd.f32 %v642_v5, %v638_v7  ;;  %v525_v37 = vsel %vm275_vm0, %v522_v39, %v524_v21  ;;  %v556_v40 = vrot.slane %v548_v2, 2  ;;  %v495_v60 = vadd.f32 %v491_v45, %v448_v53 }
  0xd4   : > { %v521_v46 = vsel %vm275_vm0, %v519_v14, %v520_v4  ;;  %v557_v38 = vrot.slane %v549_v36, 2  ;;  %v666_v34 = vadd.f32 %v657_v43, %v643_v17  ;;  %v680_v63 = vsel %vm313_vm1, %v678_v11, %v679_v35  ;;  %v978_v36 = vld [vmem:[#allocation3] ss:$0 sm:$0xff] }
  0xd5   : > { %v530_v57 = vadd.f32 %v521_v46, %v493_v27  ;;  %v669_v54 = vadd.f32 %v660_v18, %v646_v31  ;;  %v1132_v26 = vunpack.i.h.bf16 %v1130_v47  ;;  %v1131_v58 = vunpack.i.l.bf16 %v1130_v47 }
  0xd6   : > { %v673_v62 = vmul.f32 %v1452_v3, %v1349_v23  ;;  %v523_v0 = vsel %vm275_vm0, %v520_v4, %v522_v39  ;;  %v533_v1 = vadd.f32 %v524_v21, %v496_v25  ;;  %v689_v13 = vadd.f32 %v680_v63, %v666_v34 }
  0xd7   : > { %v637_v45 = vadd.f32 %v630_v48, %v1444_v8  ;;  %v558_v14 = vsel %vm313_vm1, %v556_v40, %v557_v38  ;;  %v770_v27 = vmul.f32 %v1132_v26, %v1367_v32  ;;  %v641_v35 = vmul.f32 %v1456_v10, %v1343_v19 }
  0xd8   : > { %v683_v17 = vrot.slane %v673_v62, 2  ;;  %v567_v2 = vadd.f32 %v558_v14, %v530_v57  ;;  %v729_v53 = vadd.f32 %v725_v51, %v689_v13  ;;  %v661_v23 = vsel %vm275_vm0, %v658_v9, %v660_v18 }
  0xd9   : > { %v1127_v3 = vunpack.i.h.bf16 %v1125_v56  ;;  %v778_v39 = vrot.slane %v770_v27, 2  ;;  %v728_v4 = vmul.f32 %v1131_v58, %v1369_v33  ;;  %v645_v8 = vadd.f32 %v641_v35, %v637_v45 }
  0xda   : > { %v692_v21 = vadd.f32 %v683_v17, %v669_v54  ;;  %v759_v5 = vadd.f32 %v750_v20, %v729_v53  ;;  %v1126_v59 = vunpack.i.l.bf16 %v1125_v56  ;;  %v570_v19 = vadd.f32 %v561_v16, %v533_v1 }
  0xdb   : > { %v743_v61 = vmul.f32 %v1127_v3, %v1361_v29  ;;  %v773_v7 = vmul.f32 %v1127_v3, %v1367_v32  ;;  %v780_v6 = vsel %vm313_vm1, %v778_v39, %v779_v49  ;;  %v668_v9 = vadd.f32 %v661_v23, %v645_v8 }
  0xdc   : > { %v732_v10 = vadd.f32 %v728_v4, %v692_v21  ;;  %v577_v51 = vadd.f32 %v978_v36, %v567_v2  ;;  %v789_v48 = vadd.f32 %v780_v6, %v759_v5  ;;  %v684_v18 = vsel %vm313_vm1, %v681_v50, %v683_v17 }
  0xdd   : > { %v753_v11 = vrot.slane %v743_v61, 1  ;;  %v531_v43 = vadd.f32 %v523_v0, %v1534_v15  ;;  %v532_v20 = vadd.f32 %v525_v37, %v495_v60  ;;  %v691_v25 = vadd.f32 %v684_v18, %v668_v9 }
  0xde   : > { %v727_v28 = vmul.f32 %v1126_v59, %v1369_v33  ;;  %v793_v16 = vadd.f32 %v978_v36, %v789_v48  ;;  %v783_v31 = vrot.slane %v773_v7, 2  ;;  %v742_v47 = vmul.f32 %v1126_v59, %v1361_v29 }
  0xdf   : > { %v762_v40 = vadd.f32 %v753_v11, %v732_v10  ;;  %v560_v46 = vsel %vm313_vm1, %v557_v38, %v559_v55  ;;  %v580_v57 = vadd.f32 %v978_v36, %v570_v19  ;;  %v772_v50 = vmul.f32 %v1126_v59, %v1367_v32 }
  0xe0   : > { %v731_v12 = vadd.f32 %v727_v28, %v691_v25  ;;  %v581_v34 = vmax.f32 %v577_v51, 0.0  ;;  %v797_v54 = vmax.f32 %v793_v16, 0.0  ;;  %v751_v15 = vrot.slane %v742_v47, 1 }
  0xe1   : > { %v792_v37 = vadd.f32 %v783_v31, %v762_v40  ;;  %v730_v33 = vadd.f32 %v1538_v42, %v1576_v24  ;;  %v568_v60 = vadd.f32 %v560_v46, %v531_v43  ;;  %v569_v63 = vadd.f32 %v1518_v41, %v532_v20 }
  0xe2   : > { %v781_v29 = vrot.slane %v772_v50, 2  ;;  %v801_v26 = vmax.f32 %v581_v34, %v797_v54  ;;  %v752_v44 = vsel %vm275_vm0, %v749_v30, %v751_v15  ;;  %v754_v55 = vsel %vm275_vm0, %v751_v15, %v753_v11 }
  0xe3   : > { %v796_v32 = vadd.f32 %v978_v36, %v792_v37  ;;  %v760_v38 = vadd.f32 %v752_v44, %v730_v33  ;;  %v761_v58 = vadd.f32 %v754_v55, %v731_v12  ;;  %v584_v62 = vmax.f32 %v580_v57, 0.0 }
  0xe4   : > { %805 = vst [vmem:[#allocation2] sm:$0xff] %v801_v26  ;;  %v782_v42 = vsel %vm313_vm1, %v779_v49, %v781_v29  ;;  %v784_v41 = vsel %vm313_vm1, %v781_v29, %v783_v31  ;;  %v578_v56 = vadd.f32 %v978_v36, %v568_v60  ;;  %v579_v22 = vadd.f32 %v978_v36, %v569_v63 }
  0xe5   : > { %v800_v24 = vmax.f32 %v796_v32, 0.0  ;;  %v790_v0 = vadd.f32 %v782_v42, %v760_v38  ;;  %v791_v30 = vadd.f32 %v784_v41, %v761_v58 }
  0xe6   : > { %v582_v14 = vmax.f32 %v578_v56, 0.0  ;;  %v583_v27 = vmax.f32 %v579_v22, 0.0 }
  0xe7   : > { %v804_v1 = vmax.f32 %v584_v62, %v800_v24  ;;  %v794_v13 = vadd.f32 %v978_v36, %v790_v0  ;;  %v795_v45 = vadd.f32 %v978_v36, %v791_v30 }
  0xe9   : > { %808 = vst [vmem:[#allocation2 + $0x18] sm:$0xf] %v804_v1  ;;  %v798_v17 = vmax.f32 %v794_v13, 0.0  ;;  %v799_v52 = vmax.f32 %v795_v45, 0.0 }
  0xeb   : > { %v802_v49 = vmax.f32 %v582_v14, %v798_v17  ;;  %v803_v35 = vmax.f32 %v583_v27, %v799_v52 }
  0xed   : > { %806 = vst [vmem:[#allocation2 + $0x8] sm:$0xff] %v802_v49  ;;  %807 = vst [vmem:[#allocation2 + $0x10] sm:$0xff] %v803_v35 }
  0xf4   : > { %v809_v2 = vld [vmem:[#allocation2] ss:$2 sm:$0xff]  ;;  %v811_v53 = vld [vmem:[#allocation2 + $0x10] ss:$2 sm:$0x3f] }
  0xf5   : > { %v813_v23 = vld [vmem:[#allocation2 + $0x1] ss:$2 sm:$0xff]  ;;  %v815_v3 = vld [vmem:[#allocation2 + $0x11] ss:$2 sm:$0x3f] }
  0xf6   : > { %v816_v39 = vmax.f32 %v809_v2, %v813_v23  ;;  %v817_v21 = vmax.f32 %v811_v53, %v815_v3 }
  0xf8   : > { %v996_v4 = vpack.c.bf16 %v816_v39, %v816_v39  ;;  %v997_v8 = vpack.c.bf16 %v817_v21, %v817_v21 }
  0xfa   : > { %826 = vst [vmem:[%s205_s11] sm:$0xf] %v996_v4  ;;  %827 = vst [vmem:[%s205_s11 + $0x4] sm:$0x7] %v997_v8 }
  0xfb PF: > { %s14_s16 = sadd.s32 1, %s1201_s16   ;;  %s1651_s12 = smov %s1193_s14 }
  0xfc   : > { %p11_p4 = scmp.ge.s32.totalorder %s14_s16, 30   ;;  %s1652_s13 = smov %s1197_s15 }
  0xfd   : > { %s1653_s14 = smov %s1656_s18  ;;  %s1654_s15 = smov %s1660_s19 }
  0xfe   :  { %13 = sbr.rel (!%p11_p4) target bundleno = 3 (0x3), region = 82 }
 0x103   :  { %857 = vsyncpa [#allocation4], 1 }
 0x104   :  { %859 = vsyncpa [#allocation4 + $0x1], 1 }

// kernel: teacher_forward.4
= control target key start
LH: loop header
LB: loop body
LE: loop exit
PB: predicated region body
PF: predicated region fallthrough
CT: control target
= control target key end

     0   :  { %s2747_s12 = smov 0   ;;  %s2749_s13 = smov 0   ;;  %s3548_s0 = inlined_call_operand.vmem [shape: bf16[2,16,16,128], index: 0, kind: input, shape index: {}]   ;;  %s3549_s1 = inlined_call_operand.vmem [shape: bf16[9,128,128], index: 1, kind: input, shape index: {}]   ;;  %s3550_s2 = inlined_call_operand.vmem [shape: f32[1,128], index: 2, kind: input, shape index: {}]   ;;  %s3551_s3 = inlined_call_operand.vmem [shape: bf16[2,7,7,128], index: 3, kind: output, shape index: {}]  }
   0x1   :  { %s2751_s14 = smov 0   ;;  %s2753_s15 = smov 0  }
   0x2   :  { %s2755_s16 = smov 0  }
   0x3 LB: > { %s22_s17 = sadd.s32 1, %s2715_s14  ;;  %s25_s18 = sadd.s32 1, %s2719_s15  ;;  %s2723_s16 = sphi %s2755_s16, %s13_s16   ;;  %s2719_s15 = sphi %s2753_s15, %s3594_s15   ;;  %s2715_s14 = sphi %s2751_s14, %s3593_s14   ;;  %s2711_s13 = sphi %s2749_s13, %s3592_s13   ;;  %s2707_s12 = sphi %s2747_s12, %s3591_s12  }
   0x4   : > { %p23_p0 = scmp.ge.s32.totalorder %s22_s17, 7  ;;  %p1790_p1 = scmp.ge.s32.totalorder %s2723_s16, 1 }
   0x5   : > { %p151_p2 = scmp.lt.s32.totalorder %s2723_s16, 15 }
   0x6   : > { %s3596_s17 = smov (%p23_p0, %s22_s17), 0  ;;  %s3598_s18 = smov (!%p23_p0, %s25_s18), %s2719_s15 }
   0x7   : > { %p152_p3 = pnand %p1790_p1, %p151_p2  ;;  %p27_p4 = scmp.ge.s32.totalorder %s3598_s18, 2 }
   0x9   : > { %s3600_s18 = smov (%p27_p4, %s3598_s18), 0  ;;  %155 = sbr.rel (%p152_p3) target bundleno = 524 (0x20c), region = 32 }
   0xe   : > { %v2784_v0 = vld [vmem:[%s3549_s1 + $0x78] sm:$0xff]   ;;  %v2725_v1 = vmov 0.0   ;;  %v2797_v3 = vld [vmem:[%s3549_s1 + $0x70] sm:$0xff]   ;;  %vm2726_vm0 = vmmov 0   ;;  %p178_p5 = scmp.lt.s32.totalorder %s2711_s13, 1  ;;  %v2819_v5 = vld [vmem:[%s3549_s1 + $0x68] sm:$0xff]  }
   0xf   : > { %2198 = vmatprep.subr.bf16.mxu0 %v2725_v1  ;;  %2218 = vmatprep.subr.bf16.mxu1 %v2725_v1  ;;  %v2791_v2 = vld [vmem:[%s3549_s1 + $0x38] sm:$0xff]   ;;  %v2807_v4 = vld [vmem:[%s3549_s1 + $0x30] sm:$0xff]   ;;  %v2826_v6 = vld [vmem:[%s3549_s1 + $0x28] sm:$0xff]   ;;  %s2032_s10 = sshll.u32 %s2707_s12, 4  ;;  %p185_p6 = scmp.lt.s32.totalorder %s2707_s12, 6  ;;  %vm1686_vm1 = vcmask 1043456  }
  0x10   : > { %2199 = vmatpush3.bf16.msra.mxu0 %v2784_v0  ;;  %2214 = vmatprep.mubr.msk.bf16.mxu0 %vm2726_vm0, %v2725_v1  ;;  %s3602_s13 = smov (!%p178_p5, %s2711_s13), 1  ;;  %v2834_v7 = vld [vmem:[%s3549_s1 + $0x60] sm:$0xff]   ;;  %v2854_v9 = vld [vmem:[%s3549_s1 + $0x58] sm:$0xff]   ;;  %v2873_v14 = vld [vmem:[%s3549_s1 + $0x50] sm:$0xff]   ;;  %vm1687_vm2 = vsmask.f32 3328 }
  0x11   : > { %2219 = vmatpush3.bf16.msra.mxu1 %v2791_v2  ;;  %2200 = vmatprep.subr.bf16.mxu0 %v2725_v1  ;;  %s2030_s4 = sshll.u32 %s3602_s13, 7  ;;  %v2845_v8 = vld [vmem:[%s3549_s1 + $0x20] sm:$0xff]   ;;  %v2861_v10 = vld [vmem:[%s3549_s1 + $0x18] sm:$0xff]   ;;  %v2880_v15 = vld [vmem:[%s3549_s1 + $0x10] sm:$0xff]   ;;  %s3604_s12 = smov (!%p185_p6, %s2707_s12), 6 }
  0x12   : > { %2220 = vmatprep.subr.bf16.mxu1 %v2725_v1  ;;  %2234 = vmatprep.mubr.msk.bf16.mxu1 %vm2726_vm0, %v2725_v1  ;;  %s182_s9 = scalar_lea.vmem %s3548_s0, %s2030_s4  ;;  %v2887_v17 = vld [vmem:[%s3549_s1 + $0x48] sm:$0xff]   ;;  %v2900_v19 = vld [vmem:[%s3549_s1 + $0x40] sm:$0xff]   ;;  %v2916_v26 = vld [vmem:[%s3549_s1 + $0xb8] sm:$0xff]  }
  0x13   : > { %s2848_s20 = scalar_lea.vmem %s182_s9, %s2032_s10  ;;  %v2894_v18 = vld [vmem:[%s3549_s1 + $0x8] sm:$0xff]   ;;  %v2906_v22 = vld [vmem:[%s3549_s1] sm:$0xff]   ;;  %v2923_v27 = vld [vmem:[%s3549_s1 + $0xf8] sm:$0xff]   ;;  %s2558_s9 = smul.u32 7, %s3602_s13 }
  0x14   : > { %2201 = vmatpush3.bf16.msra.mxu0 %v2797_v3  ;;  %v197_v11 = vld [vmem:[%s2848_s20] sm:$0xf]  ;;  %v2866_v12 = vld [vmem:[%s2848_s20 + $0x4] sm:$0xf]  ;;  %v2930_v28 = vld [vmem:[%s3549_s1 + $0xb0] sm:$0xff]  }
  0x15   : > { %2221 = vmatpush3.bf16.msra.mxu1 %v2807_v4  ;;  %2202 = vmatprep.subr.bf16.mxu0 %v2725_v1  ;;  %v1813_v13 = vcombine.low %v197_v11, %v2866_v12  ;;  %v198_v23 = vld [vmem:[%s2848_s20 + $0x4] sm:$0x7]  ;;  %v2937_v29 = vld [vmem:[%s3549_s1 + $0xf0] sm:$0xff]   ;;  %v2948_v30 = vld [vmem:[%s3549_s1 + $0xa8] sm:$0xff]   ;;  %s188_s10 = sadd.s32 %s2558_s9, %s3604_s12 }
  0x16   : > { %2222 = vmatprep.subr.bf16.mxu1 %v2725_v1  ;;  %v1822_v25 = vcombine.low %v197_v11, %v198_v23  ;;  %v2955_v31 = vld [vmem:[%s3549_s1 + $0xe8] sm:$0xff]   ;;  %v2962_v32 = vld [vmem:[%s3549_s1 + $0xa0] sm:$0xff]   ;;  %v2976_v34 = vld [vmem:[%s3549_s1 + $0x98] sm:$0xff]   ;;  %s1793_s11 = sshll.u32 %s188_s10, 2 }
  0x17   : > { %v241_v16 = vshll.u32 %v1813_v13, 16  ;;  %v239_v20 = vshrl.u32 %v1813_v13, 16  ;;  %v2969_v33 = vld [vmem:[%s3549_s1 + $0xe0] sm:$0xff]   ;;  %v2983_v35 = vld [vmem:[%s3549_s1 + $0xd8] sm:$0xff]   ;;  %v2990_v36 = vld [vmem:[%s3549_s1 + $0x90] sm:$0xff]   ;;  %s190_s22 = scalar_lea.vmem %s3551_s3, %s1793_s11 }
  0x18   : > { %2203 = vmatpush3.bf16.msra.mxu0 %v2819_v5  ;;  %v2997_v37 = vld [vmem:[%s3549_s1 + $0xd0] sm:$0xff]   ;;  %v3003_v38 = vld [vmem:[%s3549_s1 + $0x88] sm:$0xff]   ;;  %v428_v39 = vld [vmem:[%s2848_s20] sm:$0xe] }
  0x19   : > { %2223 = vmatpush3.bf16.msra.mxu1 %v2826_v6  ;;  %2204 = vmatprep.subr.bf16.mxu0 %v2725_v1  ;;  %v243_v21 = vrot.slane %v241_v16, 1  ;;  %v3012_v40 = vld [vmem:[%s3549_s1 + $0xc8] sm:$0xff]   ;;  %v3018_v41 = vld [vmem:[%s3549_s1 + $0x80] sm:$0xff]   ;;  %v1847_v43 = vcombine.low %v428_v39, %v2866_v12  ;;  %v3038_v48 = vld [vmem:[%s3549_s1 + $0x138] sm:$0xff]  }
  0x1a   : > { %2224 = vmatprep.subr.bf16.mxu1 %v2725_v1  ;;  %v3023_v42 = vld [vmem:[%s3549_s1 + $0xc0] sm:$0xff]   ;;  %v1858_v44 = vld [vmem:[%s2848_s20 + $0x8] sm:$0xf]  ;;  %v1859_v45 = vld [vmem:[%s2848_s20 + $0xc] sm:$0x7] }
  0x1b   : > { %v244_v24 = vor.u32 %v243_v21, %v239_v20  ;;  %v449_v46 = vrot.slane %v1847_v43, 1  ;;  %v3033_v47 = vcombine.low %v1858_v44, %v1859_v45  ;;  %v3045_v49 = vld [vmem:[%s3549_s1 + $0x178] sm:$0xff]   ;;  %v3053_v50 = vld [vmem:[%s3549_s1 + $0x130] sm:$0xff]   ;;  %v3071_v52 = vld [vmem:[%s3549_s1 + $0x128] sm:$0xff]  }
  0x1c   : > { %2205 = vmatpush3.bf16.msra.mxu0 %v2834_v7  ;;  %v3060_v51 = vld [vmem:[%s3549_s1 + $0x170] sm:$0xff]   ;;  %v3078_v53 = vld [vmem:[%s3549_s1 + $0x168] sm:$0xff]   ;;  %v3085_v54 = vld [vmem:[%s3549_s1 + $0x120] sm:$0xff]  }
  0x1d   : > { %2225 = vmatpush3.bf16.msra.mxu1 %v2845_v8  ;;  %2206 = vmatprep.subr.bf16.mxu0 %v2725_v1  ;;  %v3092_v55 = vld [vmem:[%s3549_s1 + $0x160] sm:$0xff]   ;;  %v1885_v56 = vld [vmem:[%s2848_s20 + $0xc] sm:$0xf]  ;;  %v3100_v57 = vld [vmem:[%s3549_s1 + $0x118] sm:$0xff]  }
  0x1e   : > { %2226 = vmatprep.subr.bf16.mxu1 %v2725_v1  ;;  %v3107_v58 = vld [vmem:[%s3549_s1 + $0x158] sm:$0xff]   ;;  %v1902_v59 = vcombine.low %v1858_v44, %v1885_v56  ;;  %v3114_v60 = vld [vmem:[%s3549_s1 + $0x110] sm:$0xff]   ;;  %v3128_v63 = vld [vmem:[%s3549_s1 + $0x108] sm:$0xff]  }
  0x1f   : > { %3565 = vst [vmem:[#allocation3_spill] sm:$0xff] %v3107_v58  ;;  %v3121_v61 = vld [vmem:[%s3549_s1 + $0x150] sm:$0xff]   ;;  %v3135_v11 = vld [vmem:[%s3549_s1 + $0x148] sm:$0xff]   ;;  %v3143_v20 = vld [vmem:[%s3549_s1 + $0x100] sm:$0xff]  }
  0x20   : > { %2207 = vmatpush3.bf16.msra.mxu0 %v2854_v9  ;;  %3566 = vst [vmem:[#allocation4_spill] sm:$0xff] %v3121_v61  ;;  %v686_v62 = vshll.u32 %v1902_v59, 16  ;;  %3567 = vst [vmem:[#allocation5_spill] sm:$0xff] %v3135_v11  ;;  %v1911_v12 = vld [vmem:[%s2848_s20 + $0x8] sm:$0xe]  ;;  %v684_v13 = vshrl.u32 %v1902_v59, 16 }
  0x21   : > { %2227 = vmatpush3.bf16.msra.mxu1 %v2861_v10  ;;  %2208 = vmatprep.subr.bf16.mxu0 %v2725_v1  ;;  %v1928_v21 = vcombine.low %v1911_v12, %v1885_v56  ;;  %v3150_v23 = vld [vmem:[%s3549_s1 + $0x140] sm:$0xff]   ;;  %v3161_v39 = vld [vmem:[%s3549_s1 + $0x1b8] sm:$0xff]   ;;  %v3177_v44 = vld [vmem:[%s3549_s1 + $0x1b0] sm:$0xff]  }
  0x22   : > { %2228 = vmatprep.subr.bf16.mxu1 %v2725_v1  ;;  %v688_v16 = vrot.slane %v686_v62, 1  ;;  %3568 = vst [vmem:[#allocation6_spill] sm:$0xff] %v3150_v23  ;;  %v3168_v43 = vld [vmem:[%s3549_s1 + $0x1f8] sm:$0xff]   ;;  %v3184_v45 = vld [vmem:[%s3549_s1 + $0x1f0] sm:$0xff]   ;;  %v3202_v56 = vld [vmem:[%s3549_s1 + $0x1e8] sm:$0xff]  }
  0x23   : > { %3569 = vst [vmem:[#allocation7_spill] sm:$0xff] %v3168_v43  ;;  %3570 = vst [vmem:[#allocation8_spill] sm:$0xff] %v3184_v45  ;;  %v3209_v59 = vld [vmem:[%s3549_s1 + $0x1a0] sm:$0xff]   ;;  %v3223_v12 = vld [vmem:[%s3549_s1 + $0x198] sm:$0xff]  }
  0x24   : > { %2209 = vmatpush3.bf16.msra.mxu0 %v2873_v14  ;;  %3571 = vst [vmem:[#allocation9_spill] sm:$0xff] %v3202_v56  ;;  %v3216_v62 = vld [vmem:[%s3549_s1 + $0x1e0] sm:$0xff]   ;;  %3573 = vst [vmem:[#allocation11_spill] sm:$0xff] %v3223_v12 }
  0x25   : > { %2229 = vmatpush3.bf16.msra.mxu1 %v2880_v15  ;;  %2210 = vmatprep.subr.bf16.mxu0 %v2725_v1  ;;  %3572 = vst [vmem:[#allocation10_spill] sm:$0xff] %v3216_v62  ;;  %vm1688_vm3 = vmand %vm1686_vm1, %vm1687_vm2 }
  0x26   : > { %2230 = vmatprep.subr.bf16.mxu1 %v2725_v1 }
  0x28   : > { %2211 = vmatpush3.bf16.msra.mxu0 %v2887_v17 }
  0x29   : > { %2231 = vmatpush3.bf16.msra.mxu1 %v2894_v18  ;;  %2212 = vmatprep.subr.bf16.mxu0 %v2725_v1 }
  0x2a   : > { %2232 = vmatprep.subr.bf16.mxu1 %v2725_v1 }
  0x2c   : > { %2213 = vmatpush3.bf16.msra.mxu0 %v2900_v19 }
  0x2d   : > { %2233 = vmatpush3.bf16.msra.mxu1 %v2906_v22  ;;  %2238 = vmatprep.subr.bf16.mxu0 %v2725_v1 }
  0x2e   : > { %2258 = vmatprep.subr.bf16.mxu1 %v2725_v1 }
  0x2f   : > { %2215 = vmatmul.mubr.bf16.vlgmr.msra.gmra.mxu0 %v244_v24  ;;  %v3153_v24 = vor.u32 %v688_v16, %v684_v13  ;;  %v3230_v13 = vld [vmem:[%s3549_s1 + $0x1d8] sm:$0xff]   ;;  %v1939_v16 = vld [vmem:[%s2848_s20 + $0x10] sm:$0xf] }
  0x30   : > { %2235 = vmatmul.mubr.bf16.vlgmr.msra.gmra.mxu1 %v1822_v25  ;;  %2239 = vmatpush3.bf16.msra.mxu0 %v2916_v26  ;;  %v3156_v25 = vrot.slane %v1928_v21, 1  ;;  %3574 = vst [vmem:[#allocation12_spill] sm:$0xff] %v3230_v13  ;;  %v3234_v21 = vld [vmem:[%s2848_s20 + $0x14] sm:$0xf] }
  0x31   : > { %2259 = vmatpush3.bf16.msra.mxu1 %v2923_v27  ;;  %2240 = vmatprep.subr.bf16.mxu0 %v2725_v1 }
  0x32   : > { %2260 = vmatprep.subr.bf16.mxu1 %v2725_v1  ;;  %2254 = vmatprep.mubr.msk.bf16.mxu0 %vm2726_vm0, %v2725_v1 }
  0x33   : > { %2274 = vmatprep.mubr.msk.bf16.mxu1 %vm2726_vm0, %v2725_v1 }
  0x34   : > { %2241 = vmatpush3.bf16.msra.mxu0 %v2930_v28 }
  0x35   : > { %2261 = vmatpush3.bf16.msra.mxu1 %v2937_v29  ;;  %2242 = vmatprep.subr.bf16.mxu0 %v2725_v1 }
  0x36   : > { %2262 = vmatprep.subr.bf16.mxu1 %v2725_v1 }
  0x38   : > { %2243 = vmatpush3.bf16.msra.mxu0 %v2948_v30 }
  0x39   : > { %2263 = vmatpush3.bf16.msra.mxu1 %v2955_v31  ;;  %2244 = vmatprep.subr.bf16.mxu0 %v2725_v1 }
  0x3a   : > { %2264 = vmatprep.subr.bf16.mxu1 %v2725_v1 }
  0x3c   : > { %2245 = vmatpush3.bf16.msra.mxu0 %v2962_v32 }
  0x3d   : > { %2265 = vmatpush3.bf16.msra.mxu1 %v2969_v33  ;;  %2246 = vmatprep.subr.bf16.mxu0 %v2725_v1 }
  0x3e   : > { %2266 = vmatprep.subr.bf16.mxu1 %v2725_v1 }
  0x40   : > { %2247 = vmatpush3.bf16.msra.mxu0 %v2976_v34 }
  0x41   : > { %2267 = vmatpush3.bf16.msra.mxu1 %v2983_v35  ;;  %2248 = vmatprep.subr.bf16.mxu0 %v2725_v1 }
  0x42   : > { %2268 = vmatprep.subr.bf16.mxu1 %v2725_v1 }
  0x44   : > { %2249 = vmatpush3.bf16.msra.mxu0 %v2990_v36 }
  0x45   : > { %2269 = vmatpush3.bf16.msra.mxu1 %v2997_v37  ;;  %2250 = vmatprep.subr.bf16.mxu0 %v2725_v1 }
  0x46   : > { %2270 = vmatprep.subr.bf16.mxu1 %v2725_v1 }
  0x48   : > { %2251 = vmatpush3.bf16.msra.mxu0 %v3003_v38 }
  0x49   : > { %2271 = vmatpush3.bf16.msra.mxu1 %v3012_v40  ;;  %2252 = vmatprep.subr.bf16.mxu0 %v2725_v1 }
  0x4a   : > { %2272 = vmatprep.subr.bf16.mxu1 %v2725_v1 }
  0x4c   : > { %2253 = vmatpush3.bf16.msra.mxu0 %v3018_v41 }
  0x4d   : > { %2273 = vmatpush3.bf16.msra.mxu1 %v3023_v42  ;;  %2278 = vmatprep.subr.bf16.mxu0 %v2725_v1 }
  0x4e   : > { %2298 = vmatprep.subr.bf16.mxu1 %v2725_v1 }
  0x4f   : > { %2255 = vmatmul.mubr.bf16.vlgmr.msra.gmra.mxu0 %v449_v46  ;;  %v3195_v46 = vld [vmem:[%s3549_s1 + $0x1a8] sm:$0xff]  }
  0x50   : > { %2275 = vmatmul.mubr.bf16.vlgmr.msra.gmra.mxu1 %v3033_v47  ;;  %2279 = vmatpush3.bf16.msra.mxu0 %v3038_v48 }
  0x51   : > { %2299 = vmatpush3.bf16.msra.mxu1 %v3045_v49  ;;  %2280 = vmatprep.subr.bf16.mxu0 %v2725_v1 }
  0x52   : > { %2300 = vmatprep.subr.bf16.mxu1 %v2725_v1  ;;  %2294 = vmatprep.mubr.msk.bf16.mxu0 %vm2726_vm0, %v2725_v1 }
  0x53   : > { %2314 = vmatprep.mubr.msk.bf16.mxu1 %vm2726_vm0, %v2725_v1 }
  0x54   : > { %2281 = vmatpush3.bf16.msra.mxu0 %v3053_v50 }
  0x55   : > { %2301 = vmatpush3.bf16.msra.mxu1 %v3060_v51  ;;  %2282 = vmatprep.subr.bf16.mxu0 %v2725_v1 }
  0x56   : > { %2302 = vmatprep.subr.bf16.mxu1 %v2725_v1 }
  0x58   : > { %2283 = vmatpush3.bf16.msra.mxu0 %v3071_v52 }
  0x59   : > { %2303 = vmatpush3.bf16.msra.mxu1 %v3078_v53  ;;  %2284 = vmatprep.subr.bf16.mxu0 %v2725_v1 }
  0x5a   : > { %2304 = vmatprep.subr.bf16.mxu1 %v2725_v1 }
  0x5c   : > { %2285 = vmatpush3.bf16.msra.mxu0 %v3085_v54 }
  0x5d   : > { %2305 = vmatpush3.bf16.msra.mxu1 %v3092_v55  ;;  %2286 = vmatprep.subr.bf16.mxu0 %v2725_v1 }
  0x5e   : > { %2306 = vmatprep.subr.bf16.mxu1 %v2725_v1 }
  0x60   : > { %2287 = vmatpush3.bf16.msra.mxu0 %v3100_v57 }
  0x61   : > { %2307 = vmatpush3.bf16.msra.mxu1 %v3107_v58  ;;  %2288 = vmatprep.subr.bf16.mxu0 %v2725_v1 }
  0x62   : > { %2308 = vmatprep.subr.bf16.mxu1 %v2725_v1 }
  0x64   : > { %2289 = vmatpush3.bf16.msra.mxu0 %v3114_v60 }
  0x65   : > { %2309 = vmatpush3.bf16.msra.mxu1 %v3121_v61  ;;  %2290 = vmatprep.subr.bf16.mxu0 %v2725_v1 }
  0x66   : > { %2310 = vmatprep.subr.bf16.mxu1 %v2725_v1 }
  0x68   : > { %2291 = vmatpush3.bf16.msra.mxu0 %v3128_v63 }
  0x69   : > { %2311 = vmatpush3.bf16.msra.mxu1 %v3135_v11  ;;  %2292 = vmatprep.subr.bf16.mxu0 %v2725_v1  ;;  %v3270_v11 = vld [vmem:[%s3549_s1 + $0x180] sm:$0xff]  }
  0x6a   : > { %2312 = vmatprep.subr.bf16.mxu1 %v2725_v1 }
  0x6c   : > { %2293 = vmatpush3.bf16.msra.mxu0 %v3143_v20 }
  0x6d   : > { %2313 = vmatpush3.bf16.msra.mxu1 %v3150_v23  ;;  %2318 = vmatprep.subr.bf16.mxu0 %v2725_v1 }
  0x6e   : > { %2338 = vmatprep.subr.bf16.mxu1 %v2725_v1 }
  0x6f   : > { %2295 = vmatmul.mubr.bf16.vlgmr.msra.gmra.mxu0 %v3153_v24 }
  0x70   : > { %2315 = vmatmul.mubr.bf16.vlgmr.msra.gmra.mxu1 %v3156_v25  ;;  %2319 = vmatpush3.bf16.msra.mxu0 %v3161_v39 }
  0x71   : > { %2339 = vmatpush3.bf16.msra.mxu1 %v3168_v43  ;;  %2320 = vmatprep.subr.bf16.mxu0 %v2725_v1  ;;  %v3256_v43 = vld [vmem:[%s3549_s1 + $0x188] sm:$0xff]  }
  0x72   : > { %2340 = vmatprep.subr.bf16.mxu1 %v2725_v1  ;;  %2334 = vmatprep.mubr.msk.bf16.mxu0 %vm2726_vm0, %v2725_v1  ;;  %3577 = vst [vmem:[#allocation15_spill] sm:$0xff] %v3256_v43 }
  0x73   : > { %2354 = vmatprep.mubr.msk.bf16.mxu1 %vm2726_vm0, %v2725_v1 }
  0x74   : > { %2321 = vmatpush3.bf16.msra.mxu0 %v3177_v44 }
  0x75   : > { %2341 = vmatpush3.bf16.msra.mxu1 %v3184_v45  ;;  %2322 = vmatprep.subr.bf16.mxu0 %v2725_v1  ;;  %v3249_v45 = vld [vmem:[%s3549_s1 + $0x1d0] sm:$0xff]  }
  0x76   : > { %2342 = vmatprep.subr.bf16.mxu1 %v2725_v1  ;;  %3576 = vst [vmem:[#allocation14_spill] sm:$0xff] %v3249_v45 }
  0x78   : > { %2323 = vmatpush3.bf16.msra.mxu0 %v3195_v46 }
  0x79   : > { %2343 = vmatpush3.bf16.msra.mxu1 %v3202_v56  ;;  %2324 = vmatprep.subr.bf16.mxu0 %v2725_v1  ;;  %v3241_v56 = vld [vmem:[%s3549_s1 + $0x190] sm:$0xff]  }
  0x7a   : > { %2344 = vmatprep.subr.bf16.mxu1 %v2725_v1  ;;  %3575 = vst [vmem:[#allocation13_spill] sm:$0xff] %v3241_v56 }
  0x7c   : > { %2325 = vmatpush3.bf16.msra.mxu0 %v3209_v59 }
  0x7d   : > { %2345 = vmatpush3.bf16.msra.mxu1 %v3216_v62  ;;  %2326 = vmatprep.subr.bf16.mxu0 %v2725_v1  ;;  %v1983_v62 = vcombine.low %v1939_v16, %v3234_v21 }
  0x7e   : > { %2346 = vmatprep.subr.bf16.mxu1 %v2725_v1 }
  0x7f   : > { %v1040_v23 = vshll.u32 %v1983_v62, 16  ;;  %v1038_v61 = vshrl.u32 %v1983_v62, 16  ;;  %v1992_v62 = vld [vmem:[%s2848_s20 + $0x10] sm:$0xe] }
  0x80   : > { %2327 = vmatpush3.bf16.msra.mxu0 %v3223_v12 }
  0x81   : > { %2347 = vmatpush3.bf16.msra.mxu1 %v3230_v13  ;;  %2328 = vmatprep.subr.bf16.mxu0 %v2725_v1  ;;  %v3263_v13 = vld [vmem:[%s3549_s1 + $0x1c8] sm:$0xff]   ;;  %v1042_v12 = vrot.slane %v1040_v23, 1  ;;  %v3289_v23 = vld [vmem:[%s3549_s1 + $0x238] sm:$0xff]  }
  0x82   : > { %2348 = vmatprep.subr.bf16.mxu1 %v2725_v1 }
  0x83   : > { %v3284_v58 = vor.u32 %v1042_v12, %v1038_v61  ;;  %v3300_v61 = vld [vmem:[%s3549_s1 + $0x230] sm:$0xff]   ;;  %v3360_v12 = vld [vmem:[%s3549_s1 + $0x200] sm:$0xff]  }
  0x84   : > { %2329 = vmatpush3.bf16.msra.mxu0 %v3241_v56  ;;  %v1940_v56 = vld [vmem:[%s2848_s20 + $0x14] sm:$0x7] }
  0x85   : > { %2349 = vmatpush3.bf16.msra.mxu1 %v3249_v45  ;;  %2330 = vmatprep.subr.bf16.mxu0 %v2725_v1  ;;  %v3278_v45 = vld [vmem:[%s3549_s1 + $0x1c0] sm:$0xff]  }
  0x86   : > { %2350 = vmatprep.subr.bf16.mxu1 %v2725_v1 }
  0x88   : > { %2331 = vmatpush3.bf16.msra.mxu0 %v3256_v43  ;;  %v3281_v43 = vcombine.low %v1939_v16, %v1940_v56  ;;  %v3313_v56 = vld [vmem:[%s3549_s1 + $0x228] sm:$0xff]  }
  0x89   : > { %2351 = vmatpush3.bf16.msra.mxu1 %v3263_v13  ;;  %2332 = vmatprep.subr.bf16.mxu0 %v2725_v1 }
  0x8a   : > { %2352 = vmatprep.subr.bf16.mxu1 %v2725_v1 }
  0x8c   : > { %2333 = vmatpush3.bf16.msra.mxu0 %v3270_v11 }
  0x8d   : > { %2353 = vmatpush3.bf16.msra.mxu1 %v3278_v45  ;;  %2358 = vmatprep.subr.bf16.mxu0 %v2725_v1 }
  0x8e   : > { %2378 = vmatprep.subr.bf16.mxu1 %v2725_v1 }
  0x8f   : > { %2335 = vmatmul.mubr.bf16.vlgmr.msra.gmra.mxu0 %v3281_v43 }
  0x90   : > { %2355 = vmatmul.mubr.bf16.vlgmr.msra.gmra.mxu1 %v3284_v58  ;;  %2359 = vmatpush3.bf16.msra.mxu0 %v3289_v23 }
  0x91   : > { %2379 = vmatpush3.bf16.msra.mxu1 %v2784_v0  ;;  %2360 = vmatprep.subr.bf16.mxu0 %v2725_v1  ;;  %v3322_v0 = vld [vmem:[%s3549_s1 + $0x220] sm:$0xff]  }
  0x92   : > { %2380 = vmatprep.subr.bf16.mxu1 %v2725_v1  ;;  %2374 = vmatprep.mubr.msk.bf16.mxu0 %vm2726_vm0, %v2725_v1 }
  0x93   : > { %2394 = vmatprep.mubr.msk.bf16.mxu1 %vm2726_vm0, %v2725_v1 }
  0x94   : > { %2361 = vmatpush3.bf16.msra.mxu0 %v3300_v61 }
  0x95   : > { %2381 = vmatpush3.bf16.msra.mxu1 %v2797_v3  ;;  %2362 = vmatprep.subr.bf16.mxu0 %v2725_v1  ;;  %v3331_v3 = vld [vmem:[%s3549_s1 + $0x218] sm:$0xff]  }
  0x96   : > { %2382 = vmatprep.subr.bf16.mxu1 %v2725_v1 }
  0x98   : > { %2363 = vmatpush3.bf16.msra.mxu0 %v3313_v56 }
  0x99   : > { %2383 = vmatpush3.bf16.msra.mxu1 %v2819_v5  ;;  %2364 = vmatprep.subr.bf16.mxu0 %v2725_v1  ;;  %v3340_v5 = vld [vmem:[%s3549_s1 + $0x210] sm:$0xff]  }
  0x9a   : > { %2384 = vmatprep.subr.bf16.mxu1 %v2725_v1 }
  0x9c   : > { %2365 = vmatpush3.bf16.msra.mxu0 %v3322_v0 }
  0x9d   : > { %2385 = vmatpush3.bf16.msra.mxu1 %v2834_v7  ;;  %2366 = vmatprep.subr.bf16.mxu0 %v2725_v1  ;;  %v3349_v7 = vld [vmem:[%s3549_s1 + $0x208] sm:$0xff]  }
  0x9e   : > { %2386 = vmatprep.subr.bf16.mxu1 %v2725_v1 }
  0xa0   : > { %2367 = vmatpush3.bf16.msra.mxu0 %v3331_v3 }
  0xa1   : > { %2387 = vmatpush3.bf16.msra.mxu1 %v2854_v9  ;;  %2368 = vmatprep.subr.bf16.mxu0 %v2725_v1  ;;  %v2009_v9 = vcombine.low %v1992_v62, %v3234_v21 }
  0xa2   : > { %2388 = vmatprep.subr.bf16.mxu1 %v2725_v1 }
  0xa4   : > { %2369 = vmatpush3.bf16.msra.mxu0 %v3340_v5 }
  0xa5   : > { %2389 = vmatpush3.bf16.msra.mxu1 %v2873_v14  ;;  %2370 = vmatprep.subr.bf16.mxu0 %v2725_v1  ;;  %v3365_v14 = vrot.slane %v2009_v9, 1 }
  0xa6   : > { %2390 = vmatprep.subr.bf16.mxu1 %v2725_v1 }
  0xa8   : > { %2371 = vmatpush3.bf16.msra.mxu0 %v3349_v7 }
  0xa9   : > { %2391 = vmatpush3.bf16.msra.mxu1 %v2887_v17  ;;  %2372 = vmatprep.subr.bf16.mxu0 %v2725_v1 }
  0xaa   : > { %2392 = vmatprep.subr.bf16.mxu1 %v2725_v1 }
  0xac   : > { %2373 = vmatpush3.bf16.msra.mxu0 %v3360_v12 }
  0xad   : > { %2393 = vmatpush3.bf16.msra.mxu1 %v2900_v19  ;;  %2398 = vmatprep.subr.bf16.mxu0 %v2725_v1 }
  0xae   : > { %2418 = vmatprep.subr.bf16.mxu1 %v2725_v1 }
  0xaf   : > { %2375 = vmatmul.mubr.bf16.vlgmr.msra.gmra.mxu0 %v3365_v14 }
  0xb0   : > { %2395 = vmatmul.mubr.bf16.vlgmr.msra.gmra.mxu1 %v3153_v24  ;;  %2399 = vmatpush3.bf16.msra.mxu0 %v2791_v2  ;;  %v2026_v24 = vld [vmem:[%s2848_s20 + $0x18] sm:$0xe] }
  0xb1   : > { %2419 = vmatpush3.bf16.msra.mxu1 %v2916_v26  ;;  %2400 = vmatprep.subr.bf16.mxu0 %v2725_v1  ;;  %v3578_v26 = vld [vmem:[#allocation3_spill] sm:$0xff] }
  0xb2   : > { %2420 = vmatprep.subr.bf16.mxu1 %v2725_v1  ;;  %2414 = vmatprep.mubr.msk.bf16.mxu0 %vm2726_vm0, %v2725_v1 }
  0xb3   : > { %2434 = vmatprep.mubr.msk.bf16.mxu1 %vm2726_vm0, %v2725_v1 }
  0xb4   : > { %2401 = vmatpush3.bf16.msra.mxu0 %v2807_v4 }
  0xb5   : > { %2421 = vmatpush3.bf16.msra.mxu1 %v2930_v28  ;;  %2402 = vmatprep.subr.bf16.mxu0 %v2725_v1  ;;  %v3580_v28 = vld [vmem:[#allocation4_spill] sm:$0xff] }
  0xb6   : > { %2422 = vmatprep.subr.bf16.mxu1 %v2725_v1 }
  0xb8   : > { %2403 = vmatpush3.bf16.msra.mxu0 %v2826_v6 }
  0xb9   : > { %2423 = vmatpush3.bf16.msra.mxu1 %v2948_v30  ;;  %2404 = vmatprep.subr.bf16.mxu0 %v2725_v1  ;;  %v3582_v30 = vld [vmem:[#allocation5_spill] sm:$0xff] }
  0xba   : > { %2424 = vmatprep.subr.bf16.mxu1 %v2725_v1 }
  0xbc   : > { %2405 = vmatpush3.bf16.msra.mxu0 %v2845_v8 }
  0xbd   : > { %2425 = vmatpush3.bf16.msra.mxu1 %v2962_v32  ;;  %2406 = vmatprep.subr.bf16.mxu0 %v2725_v1  ;;  %v2021_v32 = vld [vmem:[%s2848_s20 + $0x18] sm:$0xf] }
  0xbe   : > { %2426 = vmatprep.subr.bf16.mxu1 %v2725_v1 }
  0xc0   : > { %2407 = vmatpush3.bf16.msra.mxu0 %v2861_v10 }
  0xc1   : > { %2427 = vmatpush3.bf16.msra.mxu1 %v2976_v34  ;;  %2408 = vmatprep.subr.bf16.mxu0 %v2725_v1  ;;  %v3584_v34 = vld [vmem:[#allocation6_spill] sm:$0xff] }
  0xc2   : > { %2428 = vmatprep.subr.bf16.mxu1 %v2725_v1 }
  0xc4   : > { %2409 = vmatpush3.bf16.msra.mxu0 %v2880_v15 }
  0xc5   : > { %2429 = vmatpush3.bf16.msra.mxu1 %v2990_v36  ;;  %2410 = vmatprep.subr.bf16.mxu0 %v2725_v1 }
  0xc6   : > { %2430 = vmatprep.subr.bf16.mxu1 %v2725_v1 }
  0xc8   : > { %2411 = vmatpush3.bf16.msra.mxu0 %v2894_v18 }
  0xc9   : > { %2431 = vmatpush3.bf16.msra.mxu1 %v3003_v38  ;;  %2412 = vmatprep.subr.bf16.mxu0 %v2725_v1 }
  0xca   : > { %2432 = vmatprep.subr.bf16.mxu1 %v2725_v1 }
  0xcc   : > { %2413 = vmatpush3.bf16.msra.mxu0 %v2906_v22 }
  0xcd   : > { %2433 = vmatpush3.bf16.msra.mxu1 %v3018_v41  ;;  %2438 = vmatprep.subr.bf16.mxu0 %v2725_v1 }
  0xce   : > { %2458 = vmatprep.subr.bf16.mxu1 %v2725_v1 }
  0xcf   : > { %2415 = vmatmul.mubr.bf16.vlgmr.msra.gmra.mxu0 %v3033_v47 }
  0xd0   : > { %2435 = vmatmul.mubr.bf16.vlgmr.msra.gmra.mxu1 %v3156_v25  ;;  %2439 = vmatpush3.bf16.msra.mxu0 %v2923_v27  ;;  %v3579_v27 = vld [vmem:[#allocation11_spill] sm:$0xff] }
  0xd1   : > { %2459 = vmatpush3.bf16.msra.mxu1 %v3038_v48  ;;  %2440 = vmatprep.subr.bf16.mxu0 %v2725_v1 }
  0xd2   : > { %2460 = vmatprep.subr.bf16.mxu1 %v2725_v1  ;;  %2454 = vmatprep.mubr.msk.bf16.mxu0 %vm2726_vm0, %v2725_v1 }
  0xd3   : > { %2474 = vmatprep.mubr.msk.bf16.mxu1 %vm2726_vm0, %v2725_v1 }
  0xd4   : > { %2441 = vmatpush3.bf16.msra.mxu0 %v2937_v29  ;;  %v3581_v29 = vld [vmem:[#allocation13_spill] sm:$0xff] }
  0xd5   : > { %2461 = vmatpush3.bf16.msra.mxu1 %v3053_v50  ;;  %2442 = vmatprep.subr.bf16.mxu0 %v2725_v1 }
  0xd6   : > { %2462 = vmatprep.subr.bf16.mxu1 %v2725_v1 }
  0xd8   : > { %2443 = vmatpush3.bf16.msra.mxu0 %v2955_v31  ;;  %v3583_v31 = vld [vmem:[#allocation15_spill] sm:$0xff] }
  0xd9   : > { %2463 = vmatpush3.bf16.msra.mxu1 %v3071_v52  ;;  %2444 = vmatprep.subr.bf16.mxu0 %v2725_v1 }
  0xda   : > { %2464 = vmatprep.subr.bf16.mxu1 %v2725_v1 }
  0xdc   : > { %2445 = vmatpush3.bf16.msra.mxu0 %v2969_v33  ;;  %v2022_v33 = vld [vmem:[%s2848_s20 + $0x1c] sm:$0x7] }
  0xdd   : > { %2465 = vmatpush3.bf16.msra.mxu1 %v3085_v54  ;;  %2446 = vmatprep.subr.bf16.mxu0 %v2725_v1 }
  0xde   : > { %2466 = vmatprep.subr.bf16.mxu1 %v2725_v1 }
  0xe0   : > { %2447 = vmatpush3.bf16.msra.mxu0 %v2983_v35  ;;  %v2023_v35 = vcombine.low %v2021_v32, %v2022_v33 }
  0xe1   : > { %2467 = vmatpush3.bf16.msra.mxu1 %v3100_v57  ;;  %2448 = vmatprep.subr.bf16.mxu0 %v2725_v1  ;;  %v2024_v57 = vld [vmem:[%s2848_s20 + $0x1c] sm:$0xf] }
  0xe2   : > { %2468 = vmatprep.subr.bf16.mxu1 %v2725_v1 }
  0xe4   : > { %2449 = vmatpush3.bf16.msra.mxu0 %v2997_v37 }
  0xe5   : > { %2469 = vmatpush3.bf16.msra.mxu1 %v3114_v60  ;;  %2450 = vmatprep.subr.bf16.mxu0 %v2725_v1  ;;  %v2025_v60 = vcombine.low %v2021_v32, %v2024_v57 }
  0xe6   : > { %2470 = vmatprep.subr.bf16.mxu1 %v2725_v1 }
  0xe7   : > { %v1574_v25 = vshrl.u32 %v2025_v60, 16 }
  0xe8   : > { %2451 = vmatpush3.bf16.msra.mxu0 %v3012_v40  ;;  %v3585_v40 = vld [vmem:[#allocation7_spill] sm:$0xff] }
  0xe9   : > { %2471 = vmatpush3.bf16.msra.mxu1 %v3128_v63  ;;  %2452 = vmatprep.subr.bf16.mxu0 %v2725_v1  ;;  %v3589_v63 = vld [vmem:[#allocation12_spill] sm:$0xff] }
  0xea   : > { %2472 = vmatprep.subr.bf16.mxu1 %v2725_v1 }
  0xec   : > { %2453 = vmatpush3.bf16.msra.mxu0 %v3023_v42 }
  0xed   : > { %2473 = vmatpush3.bf16.msra.mxu1 %v3143_v20  ;;  %2478 = vmatprep.subr.bf16.mxu0 %v2725_v1  ;;  %v3590_v20 = vld [vmem:[#allocation14_spill] sm:$0xff] }
  0xee   : > { %2498 = vmatprep.subr.bf16.mxu1 %v2725_v1 }
  0xef   : > { %v328_v2 = vpop.f32.mrf.mxu0  ;;  %2455 = vmatmul.mubr.bf16.vlgmr.msra.gmra.mxu0 %v3281_v43  ;;  %v2027_v43 = vcombine.low %v2026_v24, %v2024_v57 }
  0xf0   : > { %v421_v4 = vpop.f32.mrf.mxu1  ;;  %2475 = vmatmul.mubr.bf16.vlgmr.msra.gmra.mxu1 %v3284_v58  ;;  %2479 = vmatpush3.bf16.msra.mxu0 %v3045_v49  ;;  %v3588_v58 = vld [vmem:[#allocation10_spill] sm:$0xff] }
  0xf1   : > { %v422_v6 = vadd.f32 %v421_v4, %v328_v2  ;;  %2499 = vmatpush3.bf16.msra.mxu1 %v3161_v39  ;;  %v2216_v8 = vpop.f32.mrf.mxu0  ;;  %2480 = vmatprep.subr.bf16.mxu0 %v2725_v1 }
  0xf2   : > { %v2236_v10 = vpop.f32.mrf.mxu1  ;;  %2500 = vmatprep.subr.bf16.mxu1 %v2725_v1  ;;  %2494 = vmatprep.mubr.msk.bf16.mxu0 %vm2726_vm0, %v2725_v1 }
  0xf3   : > { %v331_v15 = vpop.f32.mrf.mxu0  ;;  %2514 = vmatprep.mubr.msk.bf16.mxu1 %vm2726_vm0, %v2725_v1 }
  0xf4   : > { %v424_v17 = vpop.f32.mrf.mxu1  ;;  %2481 = vmatpush3.bf16.msra.mxu0 %v3060_v51  ;;  %v3586_v51 = vld [vmem:[#allocation8_spill] sm:$0xff] }
  0xf5   : > { %v425_v18 = vadd.f32 %v424_v17, %v331_v15  ;;  %2501 = vmatpush3.bf16.msra.mxu1 %v3177_v44  ;;  %v2217_v19 = vpop.f32.mrf.mxu0  ;;  %2482 = vmatprep.subr.bf16.mxu0 %v2725_v1 }
  0xf6   : > { %v2237_v22 = vpop.f32.mrf.mxu1  ;;  %2502 = vmatprep.subr.bf16.mxu1 %v2725_v1 }
  0xf8   : > { %2483 = vmatpush3.bf16.msra.mxu0 %v3078_v53 }
  0xf9   : > { %2503 = vmatpush3.bf16.msra.mxu1 %v3195_v46  ;;  %2484 = vmatprep.subr.bf16.mxu0 %v2725_v1  ;;  %v1628_v46 = vrot.slane %v2027_v43, 1 }
  0xfa   : > { %2504 = vmatprep.subr.bf16.mxu1 %v2725_v1 }
  0xfc   : > { %2485 = vmatpush3.bf16.msra.mxu0 %v3092_v55  ;;  %v3587_v55 = vld [vmem:[#allocation9_spill] sm:$0xff] }
  0xfd   : > { %2505 = vmatpush3.bf16.msra.mxu1 %v3209_v59  ;;  %2486 = vmatprep.subr.bf16.mxu0 %v2725_v1 }
  0xfe   : > { %2506 = vmatprep.subr.bf16.mxu1 %v2725_v1 }
 0x100   : > { %2487 = vmatpush3.bf16.msra.mxu0 %v3578_v26 }
 0x101   : > { %2507 = vmatpush3.bf16.msra.mxu1 %v3579_v27  ;;  %2488 = vmatprep.subr.bf16.mxu0 %v2725_v1 }
 0x102   : > { %2508 = vmatprep.subr.bf16.mxu1 %v2725_v1 }
 0x104   : > { %2489 = vmatpush3.bf16.msra.mxu0 %v3580_v28 }
 0x105   : > { %2509 = vmatpush3.bf16.msra.mxu1 %v3581_v29  ;;  %2490 = vmatprep.subr.bf16.mxu0 %v2725_v1 }
 0x106   : > { %2510 = vmatprep.subr.bf16.mxu1 %v2725_v1 }
 0x108   : > { %2491 = vmatpush3.bf16.msra.mxu0 %v3582_v30 }
 0x109   : > { %2511 = vmatpush3.bf16.msra.mxu1 %v3583_v31  ;;  %2492 = vmatprep.subr.bf16.mxu0 %v2725_v1 }
 0x10a   : > { %2512 = vmatprep.subr.bf16.mxu1 %v2725_v1 }
 0x10c   : > { %2493 = vmatpush3.bf16.msra.mxu0 %v3584_v34 }
 0x10d   : > { %2513 = vmatpush3.bf16.msra.mxu1 %v3270_v11  ;;  %2518 = vmatprep.subr.bf16.mxu0 %v2725_v1  ;;  %v1576_v11 = vshll.u32 %v2025_v60, 16 }
 0x10e   : > { %2538 = vmatprep.subr.bf16.mxu1 %v2725_v1 }
 0x10f   : > { %v533_v36 = vpop.f32.mrf.mxu0  ;;  %2495 = vmatmul.mubr.bf16.vlgmr.msra.gmra.mxu0 %v3365_v14  ;;  %v1578_v39 = vrot.slane %v1576_v11, 1 }
 0x110   : > { %v540_v37 = vadd.f32 %v533_v36, %v422_v6  ;;  %v653_v38 = vpop.f32.mrf.mxu1  ;;  %2515 = vmatmul.mubr.bf16.vlgmr.msra.gmra.mxu1 %v2023_v35  ;;  %2519 = vmatpush3.bf16.msra.mxu0 %v3585_v40 }
 0x111   : > { %2539 = vmatpush3.bf16.msra.mxu1 %v3289_v23  ;;  %v2256_v41 = vpop.f32.mrf.mxu0  ;;  %2520 = vmatprep.subr.bf16.mxu0 %v2725_v1  ;;  %v1579_v44 = vor.u32 %v1578_v39, %v1574_v25 }
 0x112   : > { %v660_v42 = vadd.f32 %v653_v38, %v540_v37  ;;  %v2276_v47 = vpop.f32.mrf.mxu1  ;;  %2540 = vmatprep.subr.bf16.mxu1 %v2725_v1  ;;  %2534 = vmatprep.mubr.msk.bf16.mxu0 %vm2726_vm0, %v2725_v1 }
 0x113   : > { %v536_v48 = vpop.f32.mrf.mxu0  ;;  %2554 = vmatprep.mubr.msk.bf16.mxu1 %vm2726_vm0, %v2725_v1 }
 0x114   : > { %v541_v49 = vadd.f32 %v536_v48, %v425_v18  ;;  %v656_v50 = vpop.f32.mrf.mxu1  ;;  %2521 = vmatpush3.bf16.msra.mxu0 %v3586_v51 }
 0x115   : > { %2541 = vmatpush3.bf16.msra.mxu1 %v3300_v61  ;;  %v2257_v52 = vpop.f32.mrf.mxu0  ;;  %2522 = vmatprep.subr.bf16.mxu0 %v2725_v1 }
 0x116   : > { %v661_v53 = vadd.f32 %v656_v50, %v541_v49  ;;  %v2277_v54 = vpop.f32.mrf.mxu1  ;;  %2542 = vmatprep.subr.bf16.mxu1 %v2725_v1 }
 0x118   : > { %2523 = vmatpush3.bf16.msra.mxu0 %v3587_v55 }
 0x119   : > { %2543 = vmatpush3.bf16.msra.mxu1 %v3313_v56  ;;  %2524 = vmatprep.subr.bf16.mxu0 %v2725_v1 }
 0x11a   : > { %2544 = vmatprep.subr.bf16.mxu1 %v2725_v1 }
 0x11c   : > { %2525 = vmatpush3.bf16.msra.mxu0 %v3588_v58 }
 0x11d   : > { %2545 = vmatpush3.bf16.msra.mxu1 %v3322_v0  ;;  %2526 = vmatprep.subr.bf16.mxu0 %v2725_v1 }
 0x11e   : > { %2546 = vmatprep.subr.bf16.mxu1 %v2725_v1 }
 0x120   : > { %2527 = vmatpush3.bf16.msra.mxu0 %v3589_v63 }
 0x121   : > { %2547 = vmatpush3.bf16.msra.mxu1 %v3331_v3  ;;  %2528 = vmatprep.subr.bf16.mxu0 %v2725_v1 }
 0x122   : > { %2548 = vmatprep.subr.bf16.mxu1 %v2725_v1 }
 0x124   : > { %2529 = vmatpush3.bf16.msra.mxu0 %v3590_v20 }
 0x125   : > { %2549 = vmatpush3.bf16.msra.mxu1 %v3340_v5  ;;  %2530 = vmatprep.subr.bf16.mxu0 %v2725_v1 }
 0x126   : > { %2550 = vmatprep.subr.bf16.mxu1 %v2725_v1 }
 0x128   : > { %2531 = vmatpush3.bf16.msra.mxu0 %v3263_v13 }
 0x129   : > { %2551 = vmatpush3.bf16.msra.mxu1 %v3349_v7  ;;  %2532 = vmatprep.subr.bf16.mxu0 %v2725_v1 }
 0x12a   : > { %2552 = vmatprep.subr.bf16.mxu1 %v2725_v1 }
 0x12c   : > { %2533 = vmatpush3.bf16.msra.mxu0 %v3278_v45 }
 0x12d   : > { %2553 = vmatpush3.bf16.msra.mxu1 %v3360_v12 }
 0x12f   : > { %v773_v59 = vpop.f32.mrf.mxu0  ;;  %2535 = vmatmul.mubr.bf16.vlgmr.msra.gmra.mxu0 %v1579_v44 }
 0x130   : > { %v780_v16 = vadd.f32 %v773_v59, %v660_v42  ;;  %v887_v21 = vpop.f32.mrf.mxu1  ;;  %2555 = vmatmul.mubr.bf16.vlgmr.msra.gmra.mxu1 %v1628_v46 }
 0x131   : > { %v2296_v23 = vpop.f32.mrf.mxu0 }
 0x132   : > { %v894_v13 = vadd.f32 %v887_v21, %v780_v16  ;;  %v2316_v61 = vpop.f32.mrf.mxu1 }
 0x133   : > { %v776_v56 = vpop.f32.mrf.mxu0  ;;  %v2018_v61 = vld [vmem:[%s3550_s2] ss:$0 sm:$0xff] }
 0x134   : > { %v781_v0 = vadd.f32 %v776_v56, %v661_v53  ;;  %v890_v3 = vpop.f32.mrf.mxu1 }
 0x135   : > { %v2297_v5 = vpop.f32.mrf.mxu0 }
 0x136   : > { %v895_v7 = vadd.f32 %v890_v3, %v781_v0  ;;  %v2317_v1 = vpop.f32.mrf.mxu1 }
 0x14f   : > { %v1007_v62 = vpop.f32.mrf.mxu0 }
 0x150   : > { %v1014_v9 = vadd.f32 %v1007_v62, %v894_v13  ;;  %v1127_v45 = vpop.f32.mrf.mxu1 }
 0x151   : > { %v2336_v14 = vpop.f32.mrf.mxu0 }
 0x152   : > { %v1134_v2 = vadd.f32 %v1127_v45, %v1014_v9  ;;  %v2356_v12 = vpop.f32.mrf.mxu1 }
 0x153   : > { %v1010_v4 = vpop.f32.mrf.mxu0 }
 0x154   : > { %v1015_v6 = vadd.f32 %v1010_v4, %v895_v7  ;;  %v1130_v8 = vpop.f32.mrf.mxu1 }
 0x155   : > { %v2337_v10 = vpop.f32.mrf.mxu0 }
 0x156   : > { %v1135_v15 = vadd.f32 %v1130_v8, %v1015_v6  ;;  %v2357_v17 = vpop.f32.mrf.mxu1 }
 0x16f   : > { %v1241_v18 = vpop.f32.mrf.mxu0 }
 0x170   : > { %v1248_v19 = vadd.f32 %v1241_v18, %v1134_v2  ;;  %v1294_v22 = vpop.f32.mrf.mxu1 }
 0x171   : > { %v2376_v26 = vpop.f32.mrf.mxu0 }
 0x172   : > { %v2396_v27 = vpop.f32.mrf.mxu1  ;;  %v1256_v7 = vadd.f32 %v2018_v61, %v1248_v19 }
 0x173   : > { %v1244_v28 = vpop.f32.mrf.mxu0 }
 0x174   : > { %v1249_v29 = vadd.f32 %v1244_v28, %v1135_v15  ;;  %v1297_v30 = vpop.f32.mrf.mxu1  ;;  %v1258_v6 = vmax.f32 %v1256_v7, 0.0 }
 0x175   : > { %v2377_v31 = vpop.f32.mrf.mxu0 }
 0x176   : > { %v2397_v32 = vpop.f32.mrf.mxu1  ;;  %v1257_v8 = vadd.f32 %v2018_v61, %v1249_v29  ;;  %v1689_v31 = vld [vmem:[%s190_s22] sm:$0xf] }
 0x178   : > { %v1259_v19 = vmax.f32 %v1257_v8, 0.0 }
 0x18f   : > { %v1335_v33 = vpop.f32.mrf.mxu0 }
 0x190   : > { %v1336_v34 = vadd.f32 %v1335_v33, %v1294_v22  ;;  %v1376_v35 = vpop.f32.mrf.mxu1 }
 0x191   : > { %v2416_v36 = vpop.f32.mrf.mxu0 }
 0x192   : > { %v1383_v37 = vadd.f32 %v1376_v35, %v1336_v34  ;;  %v2436_v38 = vpop.f32.mrf.mxu1 }
 0x193   : > { %v1338_v40 = vpop.f32.mrf.mxu0 }
 0x194   : > { %v1339_v41 = vadd.f32 %v1338_v40, %v1297_v30  ;;  %v1379_v42 = vpop.f32.mrf.mxu1 }
 0x195   : > { %v2417_v47 = vpop.f32.mrf.mxu0 }
 0x196   : > { %v1384_v48 = vadd.f32 %v1379_v42, %v1339_v41  ;;  %v2437_v49 = vpop.f32.mrf.mxu1 }
 0x1af   : > { %v1419_v50 = vpop.f32.mrf.mxu0 }
 0x1b0   : > { %v1462_v51 = vpop.f32.mrf.mxu1  ;;  %v1426_v44 = vadd.f32 %v1419_v50, %v1383_v37 }
 0x1b1   : > { %v2456_v52 = vpop.f32.mrf.mxu0 }
 0x1b2   : > { %v2476_v53 = vpop.f32.mrf.mxu1  ;;  %v1469_v46 = vadd.f32 %v1462_v51, %v1426_v44 }
 0x1b3   : > { %v1422_v54 = vpop.f32.mrf.mxu0 }
 0x1b4   : > { %v1465_v55 = vpop.f32.mrf.mxu1  ;;  %v1427_v59 = vadd.f32 %v1422_v54, %v1384_v48 }
 0x1b5   : > { %v2457_v57 = vpop.f32.mrf.mxu0 }
 0x1b6   : > { %v2477_v58 = vpop.f32.mrf.mxu1  ;;  %v1470_v21 = vadd.f32 %v1465_v55, %v1427_v59 }
 0x1cf   : > { %v1505_v60 = vpop.f32.mrf.mxu0 }
 0x1d0   : > { %v1560_v63 = vpop.f32.mrf.mxu1  ;;  %v1512_v16 = vadd.f32 %v1505_v60, %v1469_v46 }
 0x1d1   : > { %v2496_v11 = vpop.f32.mrf.mxu0 }
 0x1d2   : > { %v2516_v20 = vpop.f32.mrf.mxu1  ;;  %v1567_v23 = vadd.f32 %v1560_v63, %v1512_v16 }
 0x1d3   : > { %v1508_v24 = vpop.f32.mrf.mxu0 }
 0x1d4   : > { %v1563_v25 = vpop.f32.mrf.mxu1  ;;  %v1513_v13 = vadd.f32 %v1508_v24, %v1470_v21 }
 0x1d5   : > { %v2497_v39 = vpop.f32.mrf.mxu0 }
 0x1d6   : > { %v2517_v43 = vpop.f32.mrf.mxu1  ;;  %v1568_v1 = vadd.f32 %v1563_v25, %v1513_v13 }
 0x1ef   : > { %v1615_v56 = vpop.f32.mrf.mxu0 }
 0x1f0   : > { %v1622_v0 = vadd.f32 %v1615_v56, %v1567_v23  ;;  %v1664_v3 = vpop.f32.mrf.mxu1 }
 0x1f1   : > { %v2536_v5 = vpop.f32.mrf.mxu0 }
 0x1f2   : > { %v1671_v62 = vadd.f32 %v1664_v3, %v1622_v0  ;;  %v2556_v9 = vpop.f32.mrf.mxu1 }
 0x1f3   : > { %v1618_v45 = vpop.f32.mrf.mxu0 }
 0x1f4   : > { %v1673_v14 = vadd.f32 %v2018_v61, %v1671_v62  ;;  %v1623_v2 = vadd.f32 %v1618_v45, %v1568_v1  ;;  %v1667_v12 = vpop.f32.mrf.mxu1 }
 0x1f5   : > { %v2537_v4 = vpop.f32.mrf.mxu0 }
 0x1f6   : > { %v1675_v10 = vmax.f32 %v1673_v14, 0.0  ;;  %v1672_v15 = vadd.f32 %v1667_v12, %v1623_v2  ;;  %v2557_v17 = vpop.f32.mrf.mxu1 }
 0x1f8   : > { %v1677_v18 = vmax.f32 %v1258_v6, %v1675_v10  ;;  %v1674_v22 = vadd.f32 %v2018_v61, %v1672_v15 }
 0x1fa   : > { %1679 = vst [vmem:[#allocation2] sm:$0xff] %v1677_v18  ;;  %v1676_v26 = vmax.f32 %v1674_v22, 0.0 }
 0x1fc   : > { %v1678_v27 = vmax.f32 %v1259_v19, %v1676_v26 }
 0x1fe   : > { %1680 = vst [vmem:[#allocation2 + $0x8] sm:$0x3f] %v1678_v27 }
 0x205   : > { %v1681_v28 = vld [vmem:[#allocation2] ss:$2 sm:$0x7f]  ;;  %v1683_v29 = vld [vmem:[#allocation2 + $0x1] ss:$2 sm:$0x7f] }
 0x206   : > { %v1684_v30 = vmax.f32 %v1681_v28, %v1683_v29 }
 0x208   : > { %v1685_v32 = vpack.c.bf16 %v1684_v30, %v1684_v30 }
 0x20a   : > { %v1690_v33 = vsel %vm1688_vm3, %v1685_v32, %v1689_v31 }
 0x20b   : > { %1691 = vst [vmem:[%s190_s22] sm:$0xf] %v1690_v33 }
 0x20c PF: > { %s13_s16 = sadd.s32 1, %s2723_s16   ;;  %s3591_s12 = smov %s2715_s14 }
 0x20d   : > { %p10_p7 = scmp.ge.s32.totalorder %s13_s16, 16   ;;  %s3592_s13 = smov %s2719_s15 }
 0x20e   : > { %s3593_s14 = smov %s3596_s17  ;;  %s3594_s15 = smov %s3600_s18 }
 0x20f   :  { %12 = sbr.rel (!%p10_p7) target bundleno = 3 (0x3), region = 75 }

// kernel: teacher_forward.5
= control target key start
LH: loop header
LB: loop body
LE: loop exit
PB: predicated region body
PF: predicated region fallthrough
CT: control target
= control target key end

     0   :  { %v831_v27 = vlaneseq  ;;  %v6085_v35 = vmov 1966171168   ;;  %vm6087_vm0 = vmmov 0   ;;  %s7451_s0 = inlined_call_operand.vmem [shape: bf16[2,6272], index: 0, kind: input, shape index: {}]   ;;  %s7452_s1 = inlined_call_operand.vmem [shape: bf16[6272,128], index: 1, kind: input, shape index: {}]   ;;  %s7453_s2 = inlined_call_operand.vmem [shape: f32[1,128], index: 2, kind: input, shape index: {}]   ;;  %s7454_s3 = inlined_call_operand.vmem [shape: bf16[128,128], index: 3, kind: input, shape index: {}]   ;;  %s7455_s4 = inlined_call_operand.vmem [shape: f32[1,128], index: 4, kind: input, shape index: {}]   ;;  %s7456_s5 = inlined_call_operand.hbm [shape: f32[2,128], index: 5, kind: output, shape index: {}]  }
   0x1   :  { %v5657_v0 = vld [vmem:[%s7452_s1 + $0x78] sm:$0xff]   ;;  %v5661_v4 = vld [vmem:[%s7452_s1 + $0x70] sm:$0xff]   ;;  %v5665_v8 = vld [vmem:[%s7452_s1 + $0x68] sm:$0xff]   ;;  %v829_v36 = vunpack.c.l.s4 %v6085_v35 }
   0x2   :  { %v5658_v1 = vld [vmem:[%s7452_s1 + $0x38] sm:$0xff]   ;;  %5067 = vmatprep.subr.bf16.mxu0 %v5657_v0  ;;  %v5662_v5 = vld [vmem:[%s7452_s1 + $0x30] sm:$0xff]   ;;  %v5666_v9 = vld [vmem:[%s7452_s1 + $0x28] sm:$0xff]   ;;  %v832_v32 = vshrl.u32 %v831_v27, 7 }
   0x3   :  { %v5659_v2 = vld [vmem:[%s7452_s1 + $0xf8] sm:$0xff]   ;;  %5068 = vmatpush3.bf16.msra.mxu0 %v5658_v1  ;;  %v5663_v6 = vld [vmem:[%s7452_s1 + $0xf0] sm:$0xff]   ;;  %v5667_v10 = vld [vmem:[%s7452_s1 + $0xe8] sm:$0xff]   ;;  %v830_v39 = vunpack.c.0.s8 %v829_v36 }
   0x4   :  { %v5660_v3 = vld [vmem:[%s7452_s1 + $0xb8] sm:$0xff]   ;;  %5089 = vmatprep.subr.bf16.mxu1 %v5659_v2  ;;  %5069 = vmatprep.subr.bf16.mxu0 %v5661_v4  ;;  %v5664_v7 = vld [vmem:[%s7452_s1 + $0xb0] sm:$0xff]   ;;  %v5668_v11 = vld [vmem:[%s7452_s1 + $0xa8] sm:$0xff]  }
   0x5   :  { %5090 = vmatpush3.bf16.msra.mxu1 %v5660_v3  ;;  %v5669_v12 = vld [vmem:[%s7452_s1 + $0x60] sm:$0xff]   ;;  %v5673_v16 = vld [vmem:[%s7452_s1 + $0x58] sm:$0xff]   ;;  %v5677_v20 = vld [vmem:[%s7452_s1 + $0x50] sm:$0xff]   ;;  %v6224_v41 = vsub.s32 %v830_v39, %v832_v32 }
   0x6   :  { %5091 = vmatprep.subr.bf16.mxu1 %v5663_v6  ;;  %v5670_v13 = vld [vmem:[%s7452_s1 + $0x20] sm:$0xff]   ;;  %v5674_v17 = vld [vmem:[%s7452_s1 + $0x18] sm:$0xff]   ;;  %v5678_v21 = vld [vmem:[%s7452_s1 + $0x10] sm:$0xff]  }
   0x7   :  { %5070 = vmatpush3.bf16.msra.mxu0 %v5662_v5  ;;  %v5671_v14 = vld [vmem:[%s7452_s1 + $0xe0] sm:$0xff]   ;;  %v5675_v18 = vld [vmem:[%s7452_s1 + $0xd8] sm:$0xff]   ;;  %v5679_v22 = vld [vmem:[%s7452_s1 + $0xd0] sm:$0xff]  }
   0x8   :  { %5071 = vmatprep.subr.bf16.mxu0 %v5665_v8  ;;  %v5672_v15 = vld [vmem:[%s7452_s1 + $0xa0] sm:$0xff]   ;;  %v5676_v19 = vld [vmem:[%s7452_s1 + $0x98] sm:$0xff]   ;;  %v5680_v23 = vld [vmem:[%s7452_s1 + $0x90] sm:$0xff]  }
   0x9   :  { %5092 = vmatpush3.bf16.msra.mxu1 %v5664_v7  ;;  %v5681_v24 = vld [vmem:[%s7452_s1 + $0x48] sm:$0xff]   ;;  %v5685_v29 = vld [vmem:[%s7452_s1 + $0x40] sm:$0xff]   ;;  %v5690_v37 = vld [vmem:[%s7452_s1 + $0x178] sm:$0xff]  }
   0xa   :  { %5093 = vmatprep.subr.bf16.mxu1 %v5667_v10  ;;  %v5682_v25 = vld [vmem:[%s7452_s1 + $0x8] sm:$0xff]   ;;  %v5686_v30 = vld [vmem:[%s7452_s1] sm:$0xff]   ;;  %v5692_v40 = vld [vmem:[%s7452_s1 + $0x1f8] sm:$0xff]  }
   0xb   :  { %5072 = vmatpush3.bf16.msra.mxu0 %v5666_v9  ;;  %v5683_v26 = vld [vmem:[%s7452_s1 + $0xc8] sm:$0xff]   ;;  %v5687_v31 = vld [vmem:[%s7452_s1 + $0xc0] sm:$0xff]   ;;  %v5691_v47 = vld [vmem:[%s7452_s1 + $0x138] sm:$0xff]  }
   0xc   :  { %5073 = vmatprep.subr.bf16.mxu0 %v5669_v12  ;;  %v5684_v28 = vld [vmem:[%s7452_s1 + $0x88] sm:$0xff]   ;;  %v22_v33 = vld [vmem:[%s7451_s0] sm:$0xff]  ;;  %v5693_v49 = vld [vmem:[%s7452_s1 + $0x1b8] sm:$0xff]  }
   0xd   :  { %5094 = vmatpush3.bf16.msra.mxu1 %v5668_v11  ;;  %v5689_v34 = vld [vmem:[%s7452_s1 + $0x80] sm:$0xff]   ;;  %v827_v38 = vcombine.high %v22_v33, %v22_v33  ;;  %v834_v42 = vrot.slane %v22_v33, %v6224_v41  ;;  %v5694_v52 = vld [vmem:[%s7452_s1 + $0x170] sm:$0xff]   ;;  %v5698_v58 = vld [vmem:[%s7452_s1 + $0x168] sm:$0xff]  }
   0xe   :  { %5095 = vmatprep.subr.bf16.mxu1 %v5671_v14  ;;  %v5695_v54 = vld [vmem:[%s7452_s1 + $0x130] sm:$0xff]   ;;  %v5699_v59 = vld [vmem:[%s7452_s1 + $0x128] sm:$0xff]   ;;  %v5702_v62 = vld [vmem:[%s7452_s1 + $0x160] sm:$0xff]  }
   0xf   :  { %5074 = vmatpush3.bf16.msra.mxu0 %v5670_v13  ;;  %v6228_v43 = vrot.slane %v827_v38, %v6224_v41  ;;  %v842_v44 = vcombine.high %v834_v42, %v834_v42  ;;  %v850_v45 = vrot.slane %v834_v42, %v6224_v41  ;;  %v5696_v55 = vld [vmem:[%s7452_s1 + $0x1f0] sm:$0xff]   ;;  %v5700_v60 = vld [vmem:[%s7452_s1 + $0x1e8] sm:$0xff]   ;;  %v5703_v63 = vld [vmem:[%s7452_s1 + $0x120] sm:$0xff]  }
  0x10   :  { %5075 = vmatprep.subr.bf16.mxu0 %v5673_v16  ;;  %v5697_v57 = vld [vmem:[%s7452_s1 + $0x1b0] sm:$0xff]   ;;  %v5701_v61 = vld [vmem:[%s7452_s1 + $0x1a8] sm:$0xff]   ;;  %v5704_v0 = vld [vmem:[%s7452_s1 + $0x1e0] sm:$0xff]  }
  0x11   :  { %5096 = vmatpush3.bf16.msra.mxu1 %v5672_v15  ;;  %v843_v46 = vcombine.high %v6228_v43, %v6228_v43  ;;  %v864_v48 = vrot.slane %v842_v44, %v6224_v41  ;;  %v872_v51 = vcombine.high %v850_v45, %v850_v45  ;;  %v5705_v1 = vld [vmem:[%s7452_s1 + $0x1a0] sm:$0xff]   ;;  %v5706_v2 = vld [vmem:[%s7452_s1 + $0x158] sm:$0xff]   ;;  %v5710_v6 = vld [vmem:[%s7452_s1 + $0x150] sm:$0xff]  }
  0x12   :  { %5097 = vmatprep.subr.bf16.mxu1 %v5675_v18  ;;  %v5707_v3 = vld [vmem:[%s7452_s1 + $0x118] sm:$0xff]   ;;  %v5711_v7 = vld [vmem:[%s7452_s1 + $0x110] sm:$0xff]   ;;  %v5714_v10 = vld [vmem:[%s7452_s1 + $0x148] sm:$0xff]   ;;  %v857_v18 = vrot.slane %v6228_v43, %v6224_v41 }
  0x13   :  { %5076 = vmatpush3.bf16.msra.mxu0 %v5674_v17  ;;  %v871_v50 = vrot.slane %v843_v46, %v6224_v41  ;;  %3568 = vmatprep.mubr.bf16.mxu0 %v864_v48  ;;  %v874_v53 = vcombine.high %v864_v48, %v864_v48  ;;  %v5708_v4 = vld [vmem:[%s7452_s1 + $0x1d8] sm:$0xff]   ;;  %v5712_v8 = vld [vmem:[%s7452_s1 + $0x1d0] sm:$0xff]   ;;  %v5715_v11 = vld [vmem:[%s7452_s1 + $0x108] sm:$0xff]  }
  0x14   :  { %5077 = vmatprep.subr.bf16.mxu0 %v5677_v20  ;;  %v5709_v5 = vld [vmem:[%s7452_s1 + $0x198] sm:$0xff]   ;;  %v5713_v9 = vld [vmem:[%s7452_s1 + $0x190] sm:$0xff]   ;;  %v5716_v12 = vld [vmem:[%s7452_s1 + $0x1c8] sm:$0xff]  }
  0x15   :  { %5098 = vmatpush3.bf16.msra.mxu1 %v5676_v19  ;;  %v875_v56 = vcombine.high %v871_v50, %v871_v50  ;;  %3608 = vmatprep.mubr.bf16.mxu1 %v874_v53  ;;  %v5717_v13 = vld [vmem:[%s7452_s1 + $0x188] sm:$0xff]   ;;  %v5718_v14 = vld [vmem:[%s7452_s1 + $0x140] sm:$0xff]   ;;  %v5722_v19 = vld [vmem:[%s7452_s1 + $0x278] sm:$0xff]  }
  0x16   :  { %5099 = vmatprep.subr.bf16.mxu1 %v5679_v22  ;;  %v5719_v15 = vld [vmem:[%s7452_s1 + $0x100] sm:$0xff]   ;;  %v5723_v20 = vld [vmem:[%s7452_s1 + $0x238] sm:$0xff]   ;;  %v5729_v27 = vld [vmem:[%s7452_s1 + $0x2b0] sm:$0xff]  }
  0x17   :  { %5078 = vmatpush3.bf16.msra.mxu0 %v5678_v21  ;;  %v5720_v16 = vld [vmem:[%s7452_s1 + $0x1c0] sm:$0xff]   ;;  %v5724_v21 = vld [vmem:[%s7452_s1 + $0x2f8] sm:$0xff]   ;;  %v5743_v42 = vld [vmem:[%s7452_s1 + $0x210] sm:$0xff]  }
  0x18   :  { %5079 = vmatprep.subr.bf16.mxu0 %v5681_v24  ;;  %v5721_v17 = vld [vmem:[%s7452_s1 + $0x180] sm:$0xff]   ;;  %v5725_v22 = vld [vmem:[%s7452_s1 + $0x2b8] sm:$0xff]   ;;  %v5726_v24 = vld [vmem:[%s7452_s1 + $0x270] sm:$0xff]  }
  0x19   :  { %5100 = vmatpush3.bf16.msra.mxu1 %v5680_v23  ;;  %v873_v23 = vcombine.high %v857_v18, %v857_v18  ;;  %v5734_v32 = vld [vmem:[%s7452_s1 + $0x260] sm:$0xff]   ;;  %v5738_v36 = vld [vmem:[%s7452_s1 + $0x258] sm:$0xff]   ;;  %v5744_v43 = vld [vmem:[%s7452_s1 + $0x2d0] sm:$0xff]  }
  0x1a   :  { %5101 = vmatprep.subr.bf16.mxu1 %v5683_v26  ;;  %v5728_v26 = vld [vmem:[%s7452_s1 + $0x2f0] sm:$0xff]   ;;  %v5735_v33 = vld [vmem:[%s7452_s1 + $0x220] sm:$0xff]   ;;  %v5740_v38 = vld [vmem:[%s7452_s1 + $0x2d8] sm:$0xff]  }
  0x1b   :  { %5080 = vmatpush3.bf16.msra.mxu0 %v5682_v25  ;;  %v5727_v25 = vld [vmem:[%s7452_s1 + $0x230] sm:$0xff]   ;;  %v5737_v35 = vld [vmem:[%s7452_s1 + $0x2a0] sm:$0xff]   ;;  %v5741_v39 = vld [vmem:[%s7452_s1 + $0x298] sm:$0xff]  }
  0x1c   :  { %5081 = vmatprep.subr.bf16.mxu0 %v5685_v29  ;;  %v5731_v29 = vld [vmem:[%s7452_s1 + $0x228] sm:$0xff]   ;;  %v5745_v44 = vld [vmem:[%s7452_s1 + $0x290] sm:$0xff]  }
  0x1d   :  { %5102 = vmatpush3.bf16.msra.mxu1 %v5684_v28  ;;  %v5730_v28 = vld [vmem:[%s7452_s1 + $0x268] sm:$0xff]  }
  0x1e   :  { %5103 = vmatprep.subr.bf16.mxu1 %v5687_v31  ;;  %v5733_v31 = vld [vmem:[%s7452_s1 + $0x2a8] sm:$0xff]  }
  0x1f   :  { %5082 = vmatpush3.bf16.msra.mxu0 %v5686_v30  ;;  %v5732_v30 = vld [vmem:[%s7452_s1 + $0x2e8] sm:$0xff]  }
  0x20   :  { %5111 = vmatprep.subr.bf16.mxu0 %v5690_v37  ;;  %v5739_v37 = vld [vmem:[%s7452_s1 + $0x218] sm:$0xff]   ;;  %v23_v46 = vld [vmem:[%s7451_s0 + $0x8] sm:$0xff] }
  0x21   :  { %5104 = vmatpush3.bf16.msra.mxu1 %v5689_v34  ;;  %v5736_v34 = vld [vmem:[%s7452_s1 + $0x2e0] sm:$0xff]   ;;  %v883_v48 = vrot.slane %v23_v46, %v6224_v41 }
  0x22   :  { %5133 = vmatprep.subr.bf16.mxu1 %v5692_v40  ;;  %3569 = vmatmul.mubr.bf16.vlgmr.msra.gmra.mxu0 %v850_v45  ;;  %v5742_v40 = vld [vmem:[%s7452_s1 + $0x250] sm:$0xff]   ;;  %v5746_v45 = vld [vmem:[%s7452_s1 + $0x248] sm:$0xff]  }
  0x23   :  { %5112 = vmatpush3.bf16.msra.mxu0 %v5691_v47  ;;  %3648 = vmatprep.mubr.bf16.mxu0 %v871_v50  ;;  %v5747_v47 = vld [vmem:[%s7452_s1 + $0x208] sm:$0xff]  }
  0x24   :  { %3609 = vmatmul.mubr.bf16.vlgmr.msra.gmra.mxu1 %v872_v51  ;;  %5113 = vmatprep.subr.bf16.mxu0 %v5694_v52  ;;  %v5748_v50 = vld [vmem:[%s7452_s1 + $0x2c8] sm:$0xff]   ;;  %v891_v52 = vcombine.high %v883_v48, %v883_v48 }
  0x25   :  { %5134 = vmatpush3.bf16.msra.mxu1 %v5693_v49  ;;  %3688 = vmatprep.mubr.bf16.mxu1 %v875_v56  ;;  %v876_v49 = vcombine.high %v23_v46, %v23_v46  ;;  %v5749_v51 = vld [vmem:[%s7452_s1 + $0x288] sm:$0xff]  }
  0x26   :  { %5135 = vmatprep.subr.bf16.mxu1 %v5696_v55  ;;  %v5751_v55 = vld [vmem:[%s7452_s1 + $0x200] sm:$0xff]   ;;  %v913_v56 = vrot.slane %v891_v52, %v6224_v41  ;;  %v5797_v46 = vld [vmem:[%s7452_s1 + $0x4e8] sm:$0xff]   ;;  %v5803_v52 = vld [vmem:[%s7452_s1 + $0x458] sm:$0xff]  }
  0x27   :  { %5114 = vmatpush3.bf16.msra.mxu0 %v5695_v54  ;;  %v6416_v53 = vrot.slane %v876_v49, %v6224_v41  ;;  %v5750_v54 = vld [vmem:[%s7452_s1 + $0x240] sm:$0xff]  }
  0x28   :  { %5115 = vmatprep.subr.bf16.mxu0 %v5698_v58  ;;  %v5752_v58 = vld [vmem:[%s7452_s1 + $0x2c0] sm:$0xff]  }
  0x29   :  { %5136 = vmatpush3.bf16.msra.mxu1 %v5697_v57  ;;  %v892_v57 = vcombine.high %v6416_v53, %v6416_v53  ;;  %v5800_v49 = vld [vmem:[%s7452_s1 + $0x420] sm:$0xff]  }
  0x2a   :  { %5137 = vmatprep.subr.bf16.mxu1 %v5700_v60  ;;  %v923_v60 = vcombine.high %v913_v56, %v913_v56 }
  0x2b   :  { %5116 = vmatpush3.bf16.msra.mxu0 %v5699_v59  ;;  %v5753_v59 = vld [vmem:[%s7452_s1 + $0x280] sm:$0xff]  }
  0x2c   :  { %5117 = vmatprep.subr.bf16.mxu0 %v5702_v62  ;;  %v5754_v62 = vld [vmem:[%s7452_s1 + $0x378] sm:$0xff]  }
  0x2d   :  { %5138 = vmatpush3.bf16.msra.mxu1 %v5701_v61  ;;  %v899_v61 = vrot.slane %v883_v48, %v6224_v41  ;;  %v5799_v48 = vld [vmem:[%s7452_s1 + $0x460] sm:$0xff]  }
  0x2e   :  { %5139 = vmatprep.subr.bf16.mxu1 %v5704_v0  ;;  %v920_v0 = vrot.slane %v892_v57, %v6224_v41  ;;  %v5808_v57 = vld [vmem:[%s7452_s1 + $0x410] sm:$0xff]  }
  0x2f   :  { %5118 = vmatpush3.bf16.msra.mxu0 %v5703_v63  ;;  %v5755_v63 = vld [vmem:[%s7452_s1 + $0x338] sm:$0xff]  }
  0x30   :  { %5119 = vmatprep.subr.bf16.mxu0 %v5706_v2  ;;  %v5757_v2 = vld [vmem:[%s7452_s1 + $0x3b8] sm:$0xff]  }
  0x31   :  { %5140 = vmatpush3.bf16.msra.mxu1 %v5705_v1  ;;  %v5756_v1 = vld [vmem:[%s7452_s1 + $0x3f8] sm:$0xff]  }
  0x32   :  { %5141 = vmatprep.subr.bf16.mxu1 %v5708_v4  ;;  %v5758_v4 = vld [vmem:[%s7452_s1 + $0x370] sm:$0xff]  }
  0x33   :  { %5120 = vmatpush3.bf16.msra.mxu0 %v5707_v3  ;;  %v921_v3 = vcombine.high %v899_v61, %v899_v61 }
  0x34   :  { %5121 = vmatprep.subr.bf16.mxu0 %v5710_v6  ;;  %v924_v6 = vcombine.high %v920_v0, %v920_v0 }
  0x35   :  { %5142 = vmatpush3.bf16.msra.mxu1 %v5709_v5  ;;  %v5759_v5 = vld [vmem:[%s7452_s1 + $0x330] sm:$0xff]  }
  0x36   :  { %5143 = vmatprep.subr.bf16.mxu1 %v5712_v8  ;;  %v5761_v8 = vld [vmem:[%s7452_s1 + $0x3b0] sm:$0xff]  }
  0x37   :  { %5122 = vmatpush3.bf16.msra.mxu0 %v5711_v7  ;;  %v5760_v7 = vld [vmem:[%s7452_s1 + $0x3f0] sm:$0xff]  }
  0x38   :  { %5123 = vmatprep.subr.bf16.mxu0 %v5714_v10  ;;  %v5763_v10 = vld [vmem:[%s7452_s1 + $0x328] sm:$0xff]  }
  0x39   :  { %5144 = vmatpush3.bf16.msra.mxu1 %v5713_v9  ;;  %v5762_v9 = vld [vmem:[%s7452_s1 + $0x368] sm:$0xff]  }
  0x3a   :  { %5145 = vmatprep.subr.bf16.mxu1 %v5716_v12  ;;  %v5765_v12 = vld [vmem:[%s7452_s1 + $0x3a8] sm:$0xff]  }
  0x3b   :  { %5124 = vmatpush3.bf16.msra.mxu0 %v5715_v11  ;;  %v5764_v11 = vld [vmem:[%s7452_s1 + $0x3e8] sm:$0xff]  }
  0x3c   :  { %5125 = vmatprep.subr.bf16.mxu0 %v5718_v14  ;;  %v5767_v14 = vld [vmem:[%s7452_s1 + $0x320] sm:$0xff]  }
  0x3d   :  { %5146 = vmatpush3.bf16.msra.mxu1 %v5717_v13  ;;  %v5766_v13 = vld [vmem:[%s7452_s1 + $0x360] sm:$0xff]  }
  0x3e   :  { %5147 = vmatprep.subr.bf16.mxu1 %v5720_v16  ;;  %v5769_v16 = vld [vmem:[%s7452_s1 + $0x3a0] sm:$0xff]  }
  0x3f   :  { %5126 = vmatpush3.bf16.msra.mxu0 %v5719_v15  ;;  %v5768_v15 = vld [vmem:[%s7452_s1 + $0x3e0] sm:$0xff]  }
  0x40   :  { %5155 = vmatprep.subr.bf16.mxu0 %v5722_v19  ;;  %v5772_v19 = vld [vmem:[%s7452_s1 + $0x3d8] sm:$0xff]  }
  0x41   :  { %5148 = vmatpush3.bf16.msra.mxu1 %v5721_v17  ;;  %v5770_v17 = vld [vmem:[%s7452_s1 + $0x358] sm:$0xff]  }
  0x42   :  { %3649 = vmatmul.mubr.bf16.vlgmr.msra.gmra.mxu0 %v857_v18  ;;  %5177 = vmatprep.subr.bf16.mxu1 %v5724_v21  ;;  %v5771_v18 = vld [vmem:[%s7452_s1 + $0x318] sm:$0xff]   ;;  %v5774_v21 = vld [vmem:[%s7452_s1 + $0x350] sm:$0xff]  }
  0x43   :  { %5156 = vmatpush3.bf16.msra.mxu0 %v5723_v20  ;;  %3728 = vmatprep.mubr.bf16.mxu0 %v913_v56  ;;  %v5773_v20 = vld [vmem:[%s7452_s1 + $0x398] sm:$0xff]   ;;  %v5807_v56 = vld [vmem:[%s7452_s1 + $0x450] sm:$0xff]  }
  0x44   :  { %3689 = vmatmul.mubr.bf16.vlgmr.msra.gmra.mxu1 %v873_v23  ;;  %5157 = vmatprep.subr.bf16.mxu0 %v5726_v24  ;;  %v5776_v23 = vld [vmem:[%s7452_s1 + $0x3d0] sm:$0xff]  }
  0x45   :  { %5178 = vmatpush3.bf16.msra.mxu1 %v5725_v22  ;;  %3768 = vmatprep.mubr.bf16.mxu1 %v923_v60  ;;  %v5775_v22 = vld [vmem:[%s7452_s1 + $0x310] sm:$0xff]   ;;  %v5811_v60 = vld [vmem:[%s7452_s1 + $0x448] sm:$0xff]  }
  0x46   :  { %5179 = vmatprep.subr.bf16.mxu1 %v5728_v26  ;;  %v5777_v24 = vld [vmem:[%s7452_s1 + $0x390] sm:$0xff]   ;;  %v5779_v26 = vld [vmem:[%s7452_s1 + $0x308] sm:$0xff]  }
  0x47   :  { %5158 = vmatpush3.bf16.msra.mxu0 %v5727_v25  ;;  %v5778_v25 = vld [vmem:[%s7452_s1 + $0x348] sm:$0xff]  }
  0x48   :  { %5159 = vmatprep.subr.bf16.mxu0 %v5730_v28  ;;  %v5781_v28 = vld [vmem:[%s7452_s1 + $0x388] sm:$0xff]  }
  0x49   :  { %5180 = vmatpush3.bf16.msra.mxu1 %v5729_v27  ;;  %v5780_v27 = vld [vmem:[%s7452_s1 + $0x3c8] sm:$0xff]  }
  0x4a   :  { %5181 = vmatprep.subr.bf16.mxu1 %v5732_v30  ;;  %v5783_v30 = vld [vmem:[%s7452_s1 + $0x300] sm:$0xff]  }
  0x4b   :  { %5160 = vmatpush3.bf16.msra.mxu0 %v5731_v29  ;;  %v5782_v29 = vld [vmem:[%s7452_s1 + $0x340] sm:$0xff]  }
  0x4c   :  { %5161 = vmatprep.subr.bf16.mxu0 %v5734_v32  ;;  %v5786_v32 = vld [vmem:[%s7452_s1 + $0x380] sm:$0xff]  }
  0x4d   :  { %5182 = vmatpush3.bf16.msra.mxu1 %v5733_v31  ;;  %v5784_v31 = vld [vmem:[%s7452_s1 + $0x3c0] sm:$0xff]  }
  0x4e   :  { %5183 = vmatprep.subr.bf16.mxu1 %v5736_v34  ;;  %v5787_v34 = vld [vmem:[%s7452_s1 + $0x478] sm:$0xff]  }
  0x4f   :  { %5162 = vmatpush3.bf16.msra.mxu0 %v5735_v33  ;;  %v906_v33 = vrot.slane %v6416_v53, %v6224_v41  ;;  %v5804_v53 = vld [vmem:[%s7452_s1 + $0x418] sm:$0xff]  }
  0x50   :  { %5163 = vmatprep.subr.bf16.mxu0 %v5738_v36  ;;  %v5789_v36 = vld [vmem:[%s7452_s1 + $0x4f8] sm:$0xff]  }
  0x51   :  { %5184 = vmatpush3.bf16.msra.mxu1 %v5737_v35  ;;  %v5788_v35 = vld [vmem:[%s7452_s1 + $0x438] sm:$0xff]  }
  0x52   :  { %5185 = vmatprep.subr.bf16.mxu1 %v5740_v38  ;;  %v922_v38 = vcombine.high %v906_v33, %v906_v33 }
  0x53   :  { %5164 = vmatpush3.bf16.msra.mxu0 %v5739_v37  ;;  %v5790_v37 = vld [vmem:[%s7452_s1 + $0x4b8] sm:$0xff]  }
  0x54   :  { %5165 = vmatprep.subr.bf16.mxu0 %v5742_v40  ;;  %v5792_v40 = vld [vmem:[%s7452_s1 + $0x430] sm:$0xff]  }
  0x55   :  { %5186 = vmatpush3.bf16.msra.mxu1 %v5741_v39  ;;  %v5791_v39 = vld [vmem:[%s7452_s1 + $0x470] sm:$0xff]  }
  0x56   :  { %5187 = vmatprep.subr.bf16.mxu1 %v5744_v43  ;;  %v5794_v43 = vld [vmem:[%s7452_s1 + $0x4b0] sm:$0xff]  }
  0x57   :  { %5166 = vmatpush3.bf16.msra.mxu0 %v5743_v42  ;;  %v5793_v42 = vld [vmem:[%s7452_s1 + $0x4f0] sm:$0xff]  }
  0x58   :  { %5167 = vmatprep.subr.bf16.mxu0 %v5746_v45  ;;  %v5796_v45 = vld [vmem:[%s7452_s1 + $0x428] sm:$0xff]  }
  0x59   :  { %5188 = vmatpush3.bf16.msra.mxu1 %v5745_v44  ;;  %v5795_v44 = vld [vmem:[%s7452_s1 + $0x468] sm:$0xff]  }
  0x5a   :  { %5189 = vmatprep.subr.bf16.mxu1 %v5748_v50  ;;  %v5801_v50 = vld [vmem:[%s7452_s1 + $0x4e0] sm:$0xff]  }
  0x5b   :  { %5168 = vmatpush3.bf16.msra.mxu0 %v5747_v47  ;;  %v5798_v47 = vld [vmem:[%s7452_s1 + $0x4a8] sm:$0xff]  }
  0x5c   :  { %5169 = vmatprep.subr.bf16.mxu0 %v5750_v54  ;;  %v5805_v54 = vld [vmem:[%s7452_s1 + $0x4d8] sm:$0xff]  }
  0x5d   :  { %5190 = vmatpush3.bf16.msra.mxu1 %v5749_v51  ;;  %v5802_v51 = vld [vmem:[%s7452_s1 + $0x4a0] sm:$0xff]  }
  0x5e   :  { %5191 = vmatprep.subr.bf16.mxu1 %v5752_v58  ;;  %v5809_v58 = vld [vmem:[%s7452_s1 + $0x4d0] sm:$0xff]  }
  0x5f   :  { %5170 = vmatpush3.bf16.msra.mxu0 %v5751_v55  ;;  %v5806_v55 = vld [vmem:[%s7452_s1 + $0x498] sm:$0xff]  }
  0x60   :  { %5199 = vmatprep.subr.bf16.mxu0 %v5754_v62  ;;  %v5812_v62 = vld [vmem:[%s7452_s1 + $0x408] sm:$0xff]  }
  0x61   :  { %5192 = vmatpush3.bf16.msra.mxu1 %v5753_v59  ;;  %v5810_v59 = vld [vmem:[%s7452_s1 + $0x490] sm:$0xff]  }
  0x62   :  { %3729 = vmatmul.mubr.bf16.vlgmr.msra.gmra.mxu0 %v899_v61  ;;  %5221 = vmatprep.subr.bf16.mxu1 %v5756_v1  ;;  %v24_v61 = vld [vmem:[%s7451_s0 + $0x10] sm:$0xff]  ;;  %v5813_v1 = vld [vmem:[%s7452_s1 + $0x4c8] sm:$0xff]  }
  0x63   :  { %5200 = vmatpush3.bf16.msra.mxu0 %v5755_v63  ;;  %3808 = vmatprep.mubr.bf16.mxu0 %v920_v0  ;;  %v932_v63 = vrot.slane %v24_v61, %v6224_v41  ;;  %v925_v0 = vcombine.high %v24_v61, %v24_v61  ;;  %v5862_v61 = vld [vmem:[%s7452_s1 + $0x6e8] sm:$0xff]  }
  0x64   :  { %3769 = vmatmul.mubr.bf16.vlgmr.msra.gmra.mxu1 %v921_v3  ;;  %5201 = vmatprep.subr.bf16.mxu0 %v5758_v4 }
  0x65   :  { %5222 = vmatpush3.bf16.msra.mxu1 %v5757_v2  ;;  %3848 = vmatprep.mubr.bf16.mxu1 %v924_v6  ;;  %v5814_v2 = vld [vmem:[%s7452_s1 + $0x488] sm:$0xff]   ;;  %v940_v3 = vcombine.high %v932_v63, %v932_v63  ;;  %v6622_v4 = vrot.slane %v925_v0, %v6224_v41  ;;  %v5816_v6 = vld [vmem:[%s7452_s1 + $0x400] sm:$0xff]  }
  0x66   :  { %5223 = vmatprep.subr.bf16.mxu1 %v5760_v7  ;;  %v5865_v0 = vld [vmem:[%s7452_s1 + $0x620] sm:$0xff]  }
  0x67   :  { %5202 = vmatpush3.bf16.msra.mxu0 %v5759_v5  ;;  %v5815_v5 = vld [vmem:[%s7452_s1 + $0x440] sm:$0xff]   ;;  %v962_v7 = vrot.slane %v940_v3, %v6224_v41  ;;  %v5868_v3 = vld [vmem:[%s7452_s1 + $0x658] sm:$0xff]  }
  0x68   :  { %5203 = vmatprep.subr.bf16.mxu0 %v5762_v9  ;;  %v5817_v9 = vld [vmem:[%s7452_s1 + $0x4c0] sm:$0xff]  }
  0x69   :  { %5224 = vmatpush3.bf16.msra.mxu1 %v5761_v8  ;;  %v941_v8 = vcombine.high %v6622_v4, %v6622_v4 }
  0x6a   :  { %5225 = vmatprep.subr.bf16.mxu1 %v5764_v11  ;;  %v972_v11 = vcombine.high %v962_v7, %v962_v7 }
  0x6b   :  { %5204 = vmatpush3.bf16.msra.mxu0 %v5763_v10  ;;  %v5818_v10 = vld [vmem:[%s7452_s1 + $0x480] sm:$0xff]  }
  0x6c   :  { %5205 = vmatprep.subr.bf16.mxu0 %v5766_v13  ;;  %v5819_v13 = vld [vmem:[%s7452_s1 + $0x578] sm:$0xff]  }
  0x6d   :  { %5226 = vmatpush3.bf16.msra.mxu1 %v5765_v12  ;;  %v948_v12 = vrot.slane %v932_v63, %v6224_v41  ;;  %v5864_v63 = vld [vmem:[%s7452_s1 + $0x660] sm:$0xff]  }
  0x6e   :  { %5227 = vmatprep.subr.bf16.mxu1 %v5768_v15  ;;  %v969_v15 = vrot.slane %v941_v8, %v6224_v41  ;;  %v5873_v8 = vld [vmem:[%s7452_s1 + $0x610] sm:$0xff]  }
  0x6f   :  { %5206 = vmatpush3.bf16.msra.mxu0 %v5767_v14  ;;  %v5820_v14 = vld [vmem:[%s7452_s1 + $0x538] sm:$0xff]  }
  0x70   :  { %5207 = vmatprep.subr.bf16.mxu0 %v5770_v17  ;;  %v5822_v17 = vld [vmem:[%s7452_s1 + $0x5b8] sm:$0xff]  }
  0x71   :  { %5228 = vmatpush3.bf16.msra.mxu1 %v5769_v16  ;;  %v5821_v16 = vld [vmem:[%s7452_s1 + $0x5f8] sm:$0xff]  }
  0x72   :  { %5229 = vmatprep.subr.bf16.mxu1 %v5772_v19  ;;  %v5823_v19 = vld [vmem:[%s7452_s1 + $0x570] sm:$0xff]  }
  0x73   :  { %5208 = vmatpush3.bf16.msra.mxu0 %v5771_v18  ;;  %v970_v18 = vcombine.high %v948_v12, %v948_v12 }
  0x74   :  { %5209 = vmatprep.subr.bf16.mxu0 %v5774_v21  ;;  %v973_v21 = vcombine.high %v969_v15, %v969_v15 }
  0x75   :  { %5230 = vmatpush3.bf16.msra.mxu1 %v5773_v20  ;;  %v5824_v20 = vld [vmem:[%s7452_s1 + $0x530] sm:$0xff]  }
  0x76   :  { %5231 = vmatprep.subr.bf16.mxu1 %v5776_v23  ;;  %v5826_v23 = vld [vmem:[%s7452_s1 + $0x5b0] sm:$0xff]  }
  0x77   :  { %5210 = vmatpush3.bf16.msra.mxu0 %v5775_v22  ;;  %v5825_v22 = vld [vmem:[%s7452_s1 + $0x5f0] sm:$0xff]  }
  0x78   :  { %5211 = vmatprep.subr.bf16.mxu0 %v5778_v25  ;;  %v5828_v25 = vld [vmem:[%s7452_s1 + $0x528] sm:$0xff]  }
  0x79   :  { %5232 = vmatpush3.bf16.msra.mxu1 %v5777_v24  ;;  %v5827_v24 = vld [vmem:[%s7452_s1 + $0x568] sm:$0xff]  }
  0x7a   :  { %5233 = vmatprep.subr.bf16.mxu1 %v5780_v27  ;;  %v5830_v27 = vld [vmem:[%s7452_s1 + $0x5a8] sm:$0xff]  }
  0x7b   :  { %5212 = vmatpush3.bf16.msra.mxu0 %v5779_v26  ;;  %v5829_v26 = vld [vmem:[%s7452_s1 + $0x5e8] sm:$0xff]  }
  0x7c   :  { %5213 = vmatprep.subr.bf16.mxu0 %v5782_v29  ;;  %v5832_v29 = vld [vmem:[%s7452_s1 + $0x520] sm:$0xff]  }
  0x7d   :  { %5234 = vmatpush3.bf16.msra.mxu1 %v5781_v28  ;;  %v5831_v28 = vld [vmem:[%s7452_s1 + $0x560] sm:$0xff]  }
  0x7e   :  { %5235 = vmatprep.subr.bf16.mxu1 %v5784_v31  ;;  %v5834_v31 = vld [vmem:[%s7452_s1 + $0x5a0] sm:$0xff]  }
  0x7f   :  { %5214 = vmatpush3.bf16.msra.mxu0 %v5783_v30  ;;  %v5833_v30 = vld [vmem:[%s7452_s1 + $0x5e0] sm:$0xff]  }
  0x80   :  { %5243 = vmatprep.subr.bf16.mxu0 %v5787_v34  ;;  %v5837_v34 = vld [vmem:[%s7452_s1 + $0x5d8] sm:$0xff]  }
  0x81   :  { %5236 = vmatpush3.bf16.msra.mxu1 %v5786_v32  ;;  %v5835_v32 = vld [vmem:[%s7452_s1 + $0x558] sm:$0xff]  }
  0x82   :  { %3809 = vmatmul.mubr.bf16.vlgmr.msra.gmra.mxu0 %v906_v33  ;;  %5265 = vmatprep.subr.bf16.mxu1 %v5789_v36  ;;  %v5836_v33 = vld [vmem:[%s7452_s1 + $0x518] sm:$0xff]   ;;  %v5839_v36 = vld [vmem:[%s7452_s1 + $0x550] sm:$0xff]  }
  0x83   :  { %5244 = vmatpush3.bf16.msra.mxu0 %v5788_v35  ;;  %3888 = vmatprep.mubr.bf16.mxu0 %v962_v7  ;;  %v5838_v35 = vld [vmem:[%s7452_s1 + $0x598] sm:$0xff]   ;;  %v5872_v7 = vld [vmem:[%s7452_s1 + $0x650] sm:$0xff]  }
  0x84   :  { %3849 = vmatmul.mubr.bf16.vlgmr.msra.gmra.mxu1 %v922_v38  ;;  %5245 = vmatprep.subr.bf16.mxu0 %v5791_v39  ;;  %v5841_v38 = vld [vmem:[%s7452_s1 + $0x5d0] sm:$0xff]  }
  0x85   :  { %5266 = vmatpush3.bf16.msra.mxu1 %v5790_v37  ;;  %3928 = vmatprep.mubr.bf16.mxu1 %v972_v11  ;;  %v5840_v37 = vld [vmem:[%s7452_s1 + $0x510] sm:$0xff]   ;;  %v5876_v11 = vld [vmem:[%s7452_s1 + $0x648] sm:$0xff]  }
  0x86   :  { %5267 = vmatprep.subr.bf16.mxu1 %v5793_v42  ;;  %v5842_v39 = vld [vmem:[%s7452_s1 + $0x590] sm:$0xff]   ;;  %v5844_v42 = vld [vmem:[%s7452_s1 + $0x508] sm:$0xff]  }
  0x87   :  { %5246 = vmatpush3.bf16.msra.mxu0 %v5792_v40  ;;  %v5843_v40 = vld [vmem:[%s7452_s1 + $0x548] sm:$0xff]  }
  0x88   :  { %5247 = vmatprep.subr.bf16.mxu0 %v5795_v44  ;;  %v5846_v44 = vld [vmem:[%s7452_s1 + $0x588] sm:$0xff]  }
  0x89   :  { %5268 = vmatpush3.bf16.msra.mxu1 %v5794_v43  ;;  %v5845_v43 = vld [vmem:[%s7452_s1 + $0x5c8] sm:$0xff]  }
  0x8a   :  { %5269 = vmatprep.subr.bf16.mxu1 %v5797_v46  ;;  %v5848_v46 = vld [vmem:[%s7452_s1 + $0x500] sm:$0xff]  }
  0x8b   :  { %5248 = vmatpush3.bf16.msra.mxu0 %v5796_v45  ;;  %v5847_v45 = vld [vmem:[%s7452_s1 + $0x540] sm:$0xff]  }
  0x8c   :  { %5249 = vmatprep.subr.bf16.mxu0 %v5799_v48  ;;  %v5851_v48 = vld [vmem:[%s7452_s1 + $0x580] sm:$0xff]  }
  0x8d   :  { %5270 = vmatpush3.bf16.msra.mxu1 %v5798_v47  ;;  %v5849_v47 = vld [vmem:[%s7452_s1 + $0x5c0] sm:$0xff]  }
  0x8e   :  { %5271 = vmatprep.subr.bf16.mxu1 %v5801_v50  ;;  %v5852_v50 = vld [vmem:[%s7452_s1 + $0x678] sm:$0xff]  }
  0x8f   :  { %5250 = vmatpush3.bf16.msra.mxu0 %v5800_v49  ;;  %v955_v49 = vrot.slane %v6622_v4, %v6224_v41  ;;  %v5869_v4 = vld [vmem:[%s7452_s1 + $0x618] sm:$0xff]  }
  0x90   :  { %5251 = vmatprep.subr.bf16.mxu0 %v5803_v52  ;;  %v5854_v52 = vld [vmem:[%s7452_s1 + $0x6f8] sm:$0xff]  }
  0x91   :  { %5272 = vmatpush3.bf16.msra.mxu1 %v5802_v51  ;;  %v5853_v51 = vld [vmem:[%s7452_s1 + $0x638] sm:$0xff]  }
  0x92   :  { %5273 = vmatprep.subr.bf16.mxu1 %v5805_v54  ;;  %v971_v54 = vcombine.high %v955_v49, %v955_v49 }
  0x93   :  { %5252 = vmatpush3.bf16.msra.mxu0 %v5804_v53  ;;  %v5855_v53 = vld [vmem:[%s7452_s1 + $0x6b8] sm:$0xff]  }
  0x94   :  { %5253 = vmatprep.subr.bf16.mxu0 %v5807_v56  ;;  %v5857_v56 = vld [vmem:[%s7452_s1 + $0x630] sm:$0xff]  }
  0x95   :  { %5274 = vmatpush3.bf16.msra.mxu1 %v5806_v55  ;;  %v5856_v55 = vld [vmem:[%s7452_s1 + $0x670] sm:$0xff]  }
  0x96   :  { %5275 = vmatprep.subr.bf16.mxu1 %v5809_v58  ;;  %v5859_v58 = vld [vmem:[%s7452_s1 + $0x6b0] sm:$0xff]  }
  0x97   :  { %5254 = vmatpush3.bf16.msra.mxu0 %v5808_v57  ;;  %v5858_v57 = vld [vmem:[%s7452_s1 + $0x6f0] sm:$0xff]  }
  0x98   :  { %5255 = vmatprep.subr.bf16.mxu0 %v5811_v60  ;;  %v5861_v60 = vld [vmem:[%s7452_s1 + $0x628] sm:$0xff]  }
  0x99   :  { %5276 = vmatpush3.bf16.msra.mxu1 %v5810_v59  ;;  %v5860_v59 = vld [vmem:[%s7452_s1 + $0x668] sm:$0xff]  }
  0x9a   :  { %5277 = vmatprep.subr.bf16.mxu1 %v5813_v1  ;;  %v5866_v1 = vld [vmem:[%s7452_s1 + $0x6e0] sm:$0xff]  }
  0x9b   :  { %5256 = vmatpush3.bf16.msra.mxu0 %v5812_v62  ;;  %v5863_v62 = vld [vmem:[%s7452_s1 + $0x6a8] sm:$0xff]  }
  0x9c   :  { %5257 = vmatprep.subr.bf16.mxu0 %v5815_v5  ;;  %v5870_v5 = vld [vmem:[%s7452_s1 + $0x6d8] sm:$0xff]  }
  0x9d   :  { %5278 = vmatpush3.bf16.msra.mxu1 %v5814_v2  ;;  %v5867_v2 = vld [vmem:[%s7452_s1 + $0x6a0] sm:$0xff]  }
  0x9e   :  { %5279 = vmatprep.subr.bf16.mxu1 %v5817_v9  ;;  %v5874_v9 = vld [vmem:[%s7452_s1 + $0x6d0] sm:$0xff]  }
  0x9f   :  { %5258 = vmatpush3.bf16.msra.mxu0 %v5816_v6  ;;  %v5871_v6 = vld [vmem:[%s7452_s1 + $0x698] sm:$0xff]  }
  0xa0   :  { %5287 = vmatprep.subr.bf16.mxu0 %v5819_v13  ;;  %v5878_v13 = vld [vmem:[%s7452_s1 + $0x6c8] sm:$0xff]  }
  0xa1   :  { %5280 = vmatpush3.bf16.msra.mxu1 %v5818_v10  ;;  %v5875_v10 = vld [vmem:[%s7452_s1 + $0x690] sm:$0xff]  }
  0xa2   :  { %3889 = vmatmul.mubr.bf16.vlgmr.msra.gmra.mxu0 %v948_v12  ;;  %5309 = vmatprep.subr.bf16.mxu1 %v5821_v16  ;;  %v25_v12 = vld [vmem:[%s7451_s0 + $0x18] sm:$0xff]  ;;  %v5877_v16 = vld [vmem:[%s7452_s1 + $0x608] sm:$0xff]  }
  0xa3   :  { %5288 = vmatpush3.bf16.msra.mxu0 %v5820_v14  ;;  %3968 = vmatprep.mubr.bf16.mxu0 %v969_v15  ;;  %v981_v14 = vrot.slane %v25_v12, %v6224_v41  ;;  %v974_v15 = vcombine.high %v25_v12, %v25_v12  ;;  %v5916_v12 = vld [vmem:[%s7452_s1 + $0x780] sm:$0xff]  }
  0xa4   :  { %3929 = vmatmul.mubr.bf16.vlgmr.msra.gmra.mxu1 %v970_v18  ;;  %5289 = vmatprep.subr.bf16.mxu0 %v5823_v19  ;;  %v5880_v18 = vld [vmem:[%s7452_s1 + $0x640] sm:$0xff]  }
  0xa5   :  { %5310 = vmatpush3.bf16.msra.mxu1 %v5822_v17  ;;  %4008 = vmatprep.mubr.bf16.mxu1 %v973_v21  ;;  %v5879_v17 = vld [vmem:[%s7452_s1 + $0x688] sm:$0xff]   ;;  %v989_v19 = vcombine.high %v981_v14, %v981_v14  ;;  %v5881_v21 = vld [vmem:[%s7452_s1 + $0x600] sm:$0xff]  }
  0xa6   :  { %5311 = vmatprep.subr.bf16.mxu1 %v5825_v22  ;;  %v5882_v22 = vld [vmem:[%s7452_s1 + $0x6c0] sm:$0xff]  }
  0xa7   :  { %5290 = vmatpush3.bf16.msra.mxu0 %v5824_v20  ;;  %v6831_v20 = vrot.slane %v974_v15, %v6224_v41  ;;  %v5918_v15 = vld [vmem:[%s7452_s1 + $0x838] sm:$0xff]  }
  0xa8   :  { %5291 = vmatprep.subr.bf16.mxu0 %v5827_v24 }
  0xa9   :  { %5312 = vmatpush3.bf16.msra.mxu1 %v5826_v23  ;;  %v1011_v23 = vrot.slane %v989_v19, %v6224_v41  ;;  %v990_v24 = vcombine.high %v6831_v20, %v6831_v20  ;;  %v5921_v19 = vld [vmem:[%s7452_s1 + $0x870] sm:$0xff]  }
  0xaa   :  { %5313 = vmatprep.subr.bf16.mxu1 %v5829_v26  ;;  %v997_v26 = vrot.slane %v981_v14, %v6224_v41  ;;  %v5917_v14 = vld [vmem:[%s7452_s1 + $0x878] sm:$0xff]  }
  0xab   :  { %5292 = vmatpush3.bf16.msra.mxu0 %v5828_v25  ;;  %v5883_v25 = vld [vmem:[%s7452_s1 + $0x680] sm:$0xff]  }
  0xac   :  { %5293 = vmatprep.subr.bf16.mxu0 %v5831_v28  ;;  %v1021_v28 = vcombine.high %v1011_v23, %v1011_v23 }
  0xad   :  { %5314 = vmatpush3.bf16.msra.mxu1 %v5830_v27  ;;  %v5884_v27 = vld [vmem:[%s7452_s1 + $0x778] sm:$0xff]  }
  0xae   :  { %5315 = vmatprep.subr.bf16.mxu1 %v5833_v30  ;;  %v1018_v30 = vrot.slane %v990_v24, %v6224_v41 }
  0xaf   :  { %5294 = vmatpush3.bf16.msra.mxu0 %v5832_v29  ;;  %v5885_v29 = vld [vmem:[%s7452_s1 + $0x738] sm:$0xff]  }
  0xb0   :  { %5295 = vmatprep.subr.bf16.mxu0 %v5835_v32  ;;  %v5887_v32 = vld [vmem:[%s7452_s1 + $0x7b8] sm:$0xff]  }
  0xb1   :  { %5316 = vmatpush3.bf16.msra.mxu1 %v5834_v31  ;;  %v5886_v31 = vld [vmem:[%s7452_s1 + $0x7f8] sm:$0xff]  }
  0xb2   :  { %5317 = vmatprep.subr.bf16.mxu1 %v5837_v34  ;;  %v5888_v34 = vld [vmem:[%s7452_s1 + $0x770] sm:$0xff]  }
  0xb3   :  { %5296 = vmatpush3.bf16.msra.mxu0 %v5836_v33  ;;  %v1019_v33 = vcombine.high %v997_v26, %v997_v26 }
  0xb4   :  { %5297 = vmatprep.subr.bf16.mxu0 %v5839_v36  ;;  %v1022_v36 = vcombine.high %v1018_v30, %v1018_v30 }
  0xb5   :  { %5318 = vmatpush3.bf16.msra.mxu1 %v5838_v35  ;;  %v5889_v35 = vld [vmem:[%s7452_s1 + $0x730] sm:$0xff]  }
  0xb6   :  { %5319 = vmatprep.subr.bf16.mxu1 %v5841_v38  ;;  %v4664_v38 = vld [vmem:[%s7453_s2] ss:$0 sm:$0xff] }
  0xb7   :  { %5298 = vmatpush3.bf16.msra.mxu0 %v5840_v37 }
  0xb8   :  { %5299 = vmatprep.subr.bf16.mxu0 %v5843_v40  ;;  %v5891_v40 = vld [vmem:[%s7452_s1 + $0x7b0] sm:$0xff]  }
  0xb9   :  { %5320 = vmatpush3.bf16.msra.mxu1 %v5842_v39  ;;  %v5890_v39 = vld [vmem:[%s7452_s1 + $0x7f0] sm:$0xff]  }
  0xba   :  { %5321 = vmatprep.subr.bf16.mxu1 %v5845_v43 }
  0xbb   :  { %5300 = vmatpush3.bf16.msra.mxu0 %v5844_v42 }
  0xbc   :  { %5301 = vmatprep.subr.bf16.mxu0 %v5847_v45 }
  0xbd   :  { %5322 = vmatpush3.bf16.msra.mxu1 %v5846_v44  ;;  %v5892_v44 = vld [vmem:[%s7452_s1 + $0x768] sm:$0xff]  }
  0xbe   :  { %5323 = vmatprep.subr.bf16.mxu1 %v5849_v47 }
  0xbf   :  { %5302 = vmatpush3.bf16.msra.mxu0 %v5848_v46  ;;  %v5893_v46 = vld [vmem:[%s7452_s1 + $0x728] sm:$0xff]  }
  0xc0   :  { %5331 = vmatprep.subr.bf16.mxu0 %v5852_v50 }
  0xc1   :  { %5324 = vmatpush3.bf16.msra.mxu1 %v5851_v48 }
  0xc2   :  { %3969 = vmatmul.mubr.bf16.vlgmr.msra.gmra.mxu0 %v955_v49  ;;  %5353 = vmatprep.subr.bf16.mxu1 %v5854_v52  ;;  %v5894_v49 = vld [vmem:[%s7452_s1 + $0x7e8] sm:$0xff]  }
  0xc3   :  { %5332 = vmatpush3.bf16.msra.mxu0 %v5853_v51  ;;  %4048 = vmatprep.mubr.bf16.mxu0 %v1011_v23  ;;  %v5895_v52 = vld [vmem:[%s7452_s1 + $0x7a8] sm:$0xff]   ;;  %v5924_v23 = vld [vmem:[%s7452_s1 + $0x8b0] sm:$0xff]  }
  0xc4   :  { %4009 = vmatmul.mubr.bf16.vlgmr.msra.gmra.mxu1 %v971_v54  ;;  %5333 = vmatprep.subr.bf16.mxu0 %v5856_v55  ;;  %v5896_v54 = vld [vmem:[%s7452_s1 + $0x760] sm:$0xff]  }
  0xc5   :  { %5354 = vmatpush3.bf16.msra.mxu1 %v5855_v53  ;;  %4088 = vmatprep.mubr.bf16.mxu1 %v1021_v28  ;;  %v5926_v28 = vld [vmem:[%s7452_s1 + $0x828] sm:$0xff]  }
  0xc6   :  { %5355 = vmatprep.subr.bf16.mxu1 %v5858_v57  ;;  %v5897_v57 = vld [vmem:[%s7452_s1 + $0x720] sm:$0xff]  }
  0xc7   :  { %5334 = vmatpush3.bf16.msra.mxu0 %v5857_v56 }
  0xc8   :  { %5335 = vmatprep.subr.bf16.mxu0 %v5860_v59 }
  0xc9   :  { %5356 = vmatpush3.bf16.msra.mxu1 %v5859_v58  ;;  %v5898_v58 = vld [vmem:[%s7452_s1 + $0x7e0] sm:$0xff]  }
  0xca   :  { %5357 = vmatprep.subr.bf16.mxu1 %v5862_v61  ;;  %v5900_v61 = vld [vmem:[%s7452_s1 + $0x758] sm:$0xff]  }
  0xcb   :  { %5336 = vmatpush3.bf16.msra.mxu0 %v5861_v60  ;;  %v5899_v60 = vld [vmem:[%s7452_s1 + $0x7a0] sm:$0xff]  }
  0xcc   :  { %5337 = vmatprep.subr.bf16.mxu0 %v5864_v63  ;;  %v5902_v63 = vld [vmem:[%s7452_s1 + $0x7d8] sm:$0xff]  }
  0xcd   :  { %5358 = vmatpush3.bf16.msra.mxu1 %v5863_v62  ;;  %v5901_v62 = vld [vmem:[%s7452_s1 + $0x718] sm:$0xff]  }
  0xce   :  { %5359 = vmatprep.subr.bf16.mxu1 %v5866_v1  ;;  %v5904_v1 = vld [vmem:[%s7452_s1 + $0x750] sm:$0xff]  }
  0xcf   :  { %5338 = vmatpush3.bf16.msra.mxu0 %v5865_v0  ;;  %v5903_v0 = vld [vmem:[%s7452_s1 + $0x798] sm:$0xff]  }
  0xd0   :  { %5339 = vmatprep.subr.bf16.mxu0 %v5868_v3  ;;  %v5906_v3 = vld [vmem:[%s7452_s1 + $0x7d0] sm:$0xff]  }
  0xd1   :  { %5360 = vmatpush3.bf16.msra.mxu1 %v5867_v2  ;;  %v5905_v2 = vld [vmem:[%s7452_s1 + $0x710] sm:$0xff]  }
  0xd2   :  { %5361 = vmatprep.subr.bf16.mxu1 %v5870_v5  ;;  %v5908_v5 = vld [vmem:[%s7452_s1 + $0x748] sm:$0xff]  }
  0xd3   :  { %5340 = vmatpush3.bf16.msra.mxu0 %v5869_v4  ;;  %v5907_v4 = vld [vmem:[%s7452_s1 + $0x790] sm:$0xff]  }
  0xd4   :  { %5341 = vmatprep.subr.bf16.mxu0 %v5872_v7  ;;  %v5910_v7 = vld [vmem:[%s7452_s1 + $0x7c8] sm:$0xff]  }
  0xd5   :  { %5362 = vmatpush3.bf16.msra.mxu1 %v5871_v6  ;;  %v5909_v6 = vld [vmem:[%s7452_s1 + $0x708] sm:$0xff]  }
  0xd6   :  { %5363 = vmatprep.subr.bf16.mxu1 %v5874_v9  ;;  %v5912_v9 = vld [vmem:[%s7452_s1 + $0x740] sm:$0xff]  }
  0xd7   :  { %5342 = vmatpush3.bf16.msra.mxu0 %v5873_v8  ;;  %v5911_v8 = vld [vmem:[%s7452_s1 + $0x788] sm:$0xff]  }
  0xd8   :  { %5343 = vmatprep.subr.bf16.mxu0 %v5876_v11  ;;  %v5914_v11 = vld [vmem:[%s7452_s1 + $0x7c0] sm:$0xff]  }
  0xd9   :  { %5364 = vmatpush3.bf16.msra.mxu1 %v5875_v10  ;;  %v5913_v10 = vld [vmem:[%s7452_s1 + $0x700] sm:$0xff]  }
  0xda   :  { %5365 = vmatprep.subr.bf16.mxu1 %v5878_v13  ;;  %v1004_v13 = vrot.slane %v6831_v20, %v6224_v41  ;;  %v5922_v20 = vld [vmem:[%s7452_s1 + $0x830] sm:$0xff]  }
  0xdb   :  { %5344 = vmatpush3.bf16.msra.mxu0 %v5877_v16  ;;  %v5919_v16 = vld [vmem:[%s7452_s1 + $0x8f8] sm:$0xff]  }
  0xdc   :  { %5345 = vmatprep.subr.bf16.mxu0 %v5880_v18  ;;  %v1020_v18 = vcombine.high %v1004_v13, %v1004_v13 }
  0xdd   :  { %5366 = vmatpush3.bf16.msra.mxu1 %v5879_v17  ;;  %v5920_v17 = vld [vmem:[%s7452_s1 + $0x8b8] sm:$0xff]  }
  0xde   :  { %5367 = vmatprep.subr.bf16.mxu1 %v5882_v22  ;;  %v5923_v22 = vld [vmem:[%s7452_s1 + $0x8f0] sm:$0xff]  }
  0xdf   :  { %5346 = vmatpush3.bf16.msra.mxu0 %v5881_v21 }
  0xe0   :  { %5375 = vmatprep.subr.bf16.mxu0 %v5884_v27 }
  0xe1   :  { %5368 = vmatpush3.bf16.msra.mxu1 %v5883_v25 }
  0xe2   :  { %v5083_v37 = vpop.f32.mrf.mxu0  ;;  %4049 = vmatmul.mubr.bf16.vlgmr.msra.gmra.mxu0 %v997_v26  ;;  %5397 = vmatprep.subr.bf16.mxu1 %v5886_v31  ;;  %v5925_v26 = vld [vmem:[%s7452_s1 + $0x868] sm:$0xff]  }
  0xe3   :  { %5376 = vmatpush3.bf16.msra.mxu0 %v5885_v29  ;;  %4128 = vmatprep.mubr.bf16.mxu0 %v1018_v30  ;;  %v5927_v31 = vld [vmem:[%s7452_s1 + $0x8e8] sm:$0xff]  }
  0xe4   :  { %v5084_v42 = vpop.f32.mrf.mxu0  ;;  %v5105_v43 = vpop.f32.mrf.mxu1  ;;  %4089 = vmatmul.mubr.bf16.vlgmr.msra.gmra.mxu1 %v1019_v33  ;;  %5377 = vmatprep.subr.bf16.mxu0 %v5888_v34  ;;  %v5928_v34 = vld [vmem:[%s7452_s1 + $0x8a8] sm:$0xff]  }
  0xe5   :  { %v5085_v45 = vadd.f32 %v5084_v42, %v5083_v37  ;;  %5398 = vmatpush3.bf16.msra.mxu1 %v5887_v32  ;;  %4168 = vmatprep.mubr.bf16.mxu1 %v1022_v36  ;;  %v5929_v36 = vld [vmem:[%s7452_s1 + $0x860] sm:$0xff]  }
  0xe6   :  { %v5086_v47 = vpop.f32.mrf.mxu0  ;;  %v5106_v48 = vpop.f32.mrf.mxu1  ;;  %5399 = vmatprep.subr.bf16.mxu1 %v5890_v39  ;;  %v5930_v39 = vld [vmem:[%s7452_s1 + $0x820] sm:$0xff]  }
  0xe7   :  { %v3571_v50 = vadd.f32 %v5085_v45, %v4664_v38  ;;  %v5107_v51 = vadd.f32 %v5106_v48, %v5105_v43  ;;  %5378 = vmatpush3.bf16.msra.mxu0 %v5889_v35  ;;  %v5932_v43 = vld [vmem:[%s7452_s1 + $0x8a0] sm:$0xff]   ;;  %v5934_v45 = vld [vmem:[%s7452_s1 + $0x818] sm:$0xff]   ;;  %v5937_v48 = vld [vmem:[%s7452_s1 + $0x850] sm:$0xff]  }
  0xe8   :  { %v5087_v53 = vpop.f32.mrf.mxu0  ;;  %5379 = vmatprep.subr.bf16.mxu0 %v5892_v44  ;;  %v5108_v55 = vpop.f32.mrf.mxu1  ;;  %v5933_v44 = vld [vmem:[%s7452_s1 + $0x858] sm:$0xff]  }
  0xe9   :  { %v6889_v56 = vadd.f32 %v5107_v51, %v3571_v50  ;;  %5400 = vmatpush3.bf16.msra.mxu1 %v5891_v40  ;;  %v5931_v40 = vld [vmem:[%s7452_s1 + $0x8e0] sm:$0xff]   ;;  %v5936_v47 = vld [vmem:[%s7452_s1 + $0x898] sm:$0xff]   ;;  %v5939_v50 = vld [vmem:[%s7452_s1 + $0x8d0] sm:$0xff]  }
  0xea   :  { %5401 = vmatprep.subr.bf16.mxu1 %v5894_v49  ;;  %v5109_v59 = vpop.f32.mrf.mxu1  ;;  %v5938_v49 = vld [vmem:[%s7452_s1 + $0x810] sm:$0xff]   ;;  %v5942_v53 = vld [vmem:[%s7452_s1 + $0x808] sm:$0xff]  }
  0xeb   :  { %5380 = vmatpush3.bf16.msra.mxu0 %v5893_v46  ;;  %v5935_v46 = vld [vmem:[%s7452_s1 + $0x8d8] sm:$0xff]   ;;  %v5940_v51 = vld [vmem:[%s7452_s1 + $0x890] sm:$0xff]   ;;  %v5943_v55 = vld [vmem:[%s7452_s1 + $0x8c8] sm:$0xff]  }
  0xec   :  { %5381 = vmatprep.subr.bf16.mxu0 %v5896_v54  ;;  %v26_v54 = vld [vmem:[%s7451_s0 + $0x20] sm:$0xff] }
  0xed   :  { %5402 = vmatpush3.bf16.msra.mxu1 %v5895_v52  ;;  %v5941_v52 = vld [vmem:[%s7452_s1 + $0x848] sm:$0xff]   ;;  %v5945_v59 = vld [vmem:[%s7452_s1 + $0x840] sm:$0xff]  }
  0xee   :  { %5403 = vmatprep.subr.bf16.mxu1 %v5898_v58  ;;  %v5944_v58 = vld [vmem:[%s7452_s1 + $0x888] sm:$0xff]  }
  0xef   :  { %5382 = vmatpush3.bf16.msra.mxu0 %v5897_v57  ;;  %v1023_v57 = vcombine.high %v26_v54, %v26_v54 }
  0xf0   :  { %5383 = vmatprep.subr.bf16.mxu0 %v5900_v61 }
  0xf1   :  { %5404 = vmatpush3.bf16.msra.mxu1 %v5899_v60  ;;  %v7045_v61 = vrot.slane %v1023_v57, %v6224_v41  ;;  %v5985_v57 = vld [vmem:[%s7452_s1 + $0xab8] sm:$0xff]  }
  0xf2   :  { %5405 = vmatprep.subr.bf16.mxu1 %v5902_v63  ;;  %v5947_v63 = vld [vmem:[%s7452_s1 + $0x8c0] sm:$0xff]  }
  0xf3   :  { %5384 = vmatpush3.bf16.msra.mxu0 %v5901_v62  ;;  %v5946_v62 = vld [vmem:[%s7452_s1 + $0x800] sm:$0xff]  }
  0xf4   :  { %5385 = vmatprep.subr.bf16.mxu0 %v5904_v1  ;;  %v1039_v1 = vcombine.high %v7045_v61, %v7045_v61 }
  0xf5   :  { %5406 = vmatpush3.bf16.msra.mxu1 %v5903_v0 }
  0xf6   :  { %5407 = vmatprep.subr.bf16.mxu1 %v5906_v3 }
  0xf7   :  { %5386 = vmatpush3.bf16.msra.mxu0 %v5905_v2  ;;  %v5948_v2 = vld [vmem:[%s7452_s1 + $0x880] sm:$0xff]  }
  0xf8   :  { %5387 = vmatprep.subr.bf16.mxu0 %v5908_v5 }
  0xf9   :  { %5408 = vmatpush3.bf16.msra.mxu1 %v5907_v4  ;;  %v5949_v4 = vld [vmem:[%s7452_s1 + $0x978] sm:$0xff]  }
  0xfa   :  { %5409 = vmatprep.subr.bf16.mxu1 %v5910_v7  ;;  %v1067_v7 = vrot.slane %v1039_v1, %v6224_v41 }
  0xfb   :  { %5388 = vmatpush3.bf16.msra.mxu0 %v5909_v6  ;;  %v5950_v6 = vld [vmem:[%s7452_s1 + $0x938] sm:$0xff]  }
  0xfc   :  { %5389 = vmatprep.subr.bf16.mxu0 %v5912_v9  ;;  %v5952_v9 = vld [vmem:[%s7452_s1 + $0x9b8] sm:$0xff]  }
  0xfd   :  { %5410 = vmatpush3.bf16.msra.mxu1 %v5911_v8  ;;  %v5951_v8 = vld [vmem:[%s7452_s1 + $0x9f8] sm:$0xff]  }
  0xfe   :  { %5411 = vmatprep.subr.bf16.mxu1 %v5914_v11  ;;  %v5953_v11 = vld [vmem:[%s7452_s1 + $0x970] sm:$0xff]  }
  0xff   :  { %5390 = vmatpush3.bf16.msra.mxu0 %v5913_v10 }
 0x100   :  { %5419 = vmatprep.subr.bf16.mxu0 %v5917_v14 }
 0x101   :  { %5412 = vmatpush3.bf16.msra.mxu1 %v5916_v12  ;;  %v5954_v12 = vld [vmem:[%s7452_s1 + $0x930] sm:$0xff]  }
 0x102   :  { %v5127_v21 = vpop.f32.mrf.mxu0  ;;  %4129 = vmatmul.mubr.bf16.vlgmr.msra.gmra.mxu0 %v1004_v13  ;;  %5441 = vmatprep.subr.bf16.mxu1 %v5919_v16  ;;  %v1071_v13 = vcombine.high %v1067_v7, %v1067_v7  ;;  %v5956_v16 = vld [vmem:[%s7452_s1 + $0x9b0] sm:$0xff]  }
 0x103   :  { %5420 = vmatpush3.bf16.msra.mxu0 %v5918_v15  ;;  %v5955_v15 = vld [vmem:[%s7452_s1 + $0x9f0] sm:$0xff]  }
 0x104   :  { %v5128_v24 = vpop.f32.mrf.mxu0  ;;  %v5149_v25 = vpop.f32.mrf.mxu1  ;;  %4169 = vmatmul.mubr.bf16.vlgmr.msra.gmra.mxu1 %v1020_v18  ;;  %5421 = vmatprep.subr.bf16.mxu0 %v5921_v19  ;;  %v5957_v19 = vld [vmem:[%s7452_s1 + $0x968] sm:$0xff]  }
 0x105   :  { %v5129_v27 = vadd.f32 %v5128_v24, %v5127_v21  ;;  %5442 = vmatpush3.bf16.msra.mxu1 %v5920_v17  ;;  %v5958_v21 = vld [vmem:[%s7452_s1 + $0x928] sm:$0xff]  }
 0x106   :  { %v5130_v29 = vpop.f32.mrf.mxu0  ;;  %v5150_v30 = vpop.f32.mrf.mxu1  ;;  %5443 = vmatprep.subr.bf16.mxu1 %v5923_v22  ;;  %v5959_v24 = vld [vmem:[%s7452_s1 + $0x9e8] sm:$0xff]  }
 0x107   :  { %v3651_v32 = vadd.f32 %v5129_v27, %v6889_v56  ;;  %v5151_v33 = vadd.f32 %v5150_v30, %v5149_v25  ;;  %5422 = vmatpush3.bf16.msra.mxu0 %v5922_v20  ;;  %v1030_v56 = vrot.slane %v26_v54, %v6224_v41  ;;  %v5960_v27 = vld [vmem:[%s7452_s1 + $0x9a8] sm:$0xff]   ;;  %v5961_v29 = vld [vmem:[%s7452_s1 + $0x960] sm:$0xff]   ;;  %v5982_v54 = vld [vmem:[%s7452_s1 + $0xa78] sm:$0xff]  }
 0x108   :  { %v5131_v35 = vpop.f32.mrf.mxu0  ;;  %5423 = vmatprep.subr.bf16.mxu0 %v5925_v26  ;;  %v5152_v37 = vpop.f32.mrf.mxu1 }
 0x109   :  { %v6990_v38 = vadd.f32 %v5151_v33, %v3651_v32  ;;  %5444 = vmatpush3.bf16.msra.mxu1 %v5924_v23  ;;  %v1038_v60 = vcombine.high %v1030_v56, %v1030_v56  ;;  %v1046_v3 = vrot.slane %v1030_v56, %v6224_v41  ;;  %v5962_v32 = vld [vmem:[%s7452_s1 + $0x920] sm:$0xff]   ;;  %v5966_v37 = vld [vmem:[%s7452_s1 + $0x918] sm:$0xff]  }
 0x10a   :  { %5445 = vmatprep.subr.bf16.mxu1 %v5927_v31  ;;  %v5153_v42 = vpop.f32.mrf.mxu1  ;;  %v5963_v33 = vld [vmem:[%s7452_s1 + $0x9e0] sm:$0xff]   ;;  %v5984_v56 = vld [vmem:[%s7452_s1 + $0xaf8] sm:$0xff]  }
 0x10b   :  { %5424 = vmatpush3.bf16.msra.mxu0 %v5926_v28  ;;  %v1060_v0 = vrot.slane %v1038_v60, %v6224_v41  ;;  %v1068_v10 = vcombine.high %v1046_v3, %v1046_v3  ;;  %v5964_v35 = vld [vmem:[%s7452_s1 + $0x9a0] sm:$0xff]   ;;  %v5970_v42 = vld [vmem:[%s7452_s1 + $0x910] sm:$0xff]  }
 0x10c   :  { %5425 = vmatprep.subr.bf16.mxu0 %v5929_v36  ;;  %v5965_v36 = vld [vmem:[%s7452_s1 + $0x958] sm:$0xff]   ;;  %v5987_v60 = vld [vmem:[%s7452_s1 + $0xa30] sm:$0xff]  }
 0x10d   :  { %5446 = vmatpush3.bf16.msra.mxu1 %v5928_v34  ;;  %4208 = vmatprep.mubr.bf16.mxu0 %v1060_v0  ;;  %v1070_v5 = vcombine.high %v1060_v0, %v1060_v0 }
 0x10e   :  { %5447 = vmatprep.subr.bf16.mxu1 %v5931_v40  ;;  %v5969_v40 = vld [vmem:[%s7452_s1 + $0x950] sm:$0xff]  }
 0x10f   :  { %5426 = vmatpush3.bf16.msra.mxu0 %v5930_v39  ;;  %4248 = vmatprep.mubr.bf16.mxu1 %v1070_v5  ;;  %v5968_v39 = vld [vmem:[%s7452_s1 + $0x998] sm:$0xff]  }
 0x110   :  { %5427 = vmatprep.subr.bf16.mxu0 %v5933_v44  ;;  %v5972_v44 = vld [vmem:[%s7452_s1 + $0x990] sm:$0xff]  }
 0x111   :  { %5448 = vmatpush3.bf16.msra.mxu1 %v5932_v43  ;;  %v5971_v43 = vld [vmem:[%s7452_s1 + $0x9d0] sm:$0xff]  }
 0x112   :  { %5449 = vmatprep.subr.bf16.mxu1 %v5935_v46  ;;  %v5974_v46 = vld [vmem:[%s7452_s1 + $0x908] sm:$0xff]  }
 0x113   :  { %5428 = vmatpush3.bf16.msra.mxu0 %v5934_v45  ;;  %v5973_v45 = vld [vmem:[%s7452_s1 + $0x948] sm:$0xff]  }
 0x114   :  { %5429 = vmatprep.subr.bf16.mxu0 %v5937_v48  ;;  %v5976_v48 = vld [vmem:[%s7452_s1 + $0x988] sm:$0xff]  }
 0x115   :  { %5450 = vmatpush3.bf16.msra.mxu1 %v5936_v47  ;;  %v5975_v47 = vld [vmem:[%s7452_s1 + $0x9c8] sm:$0xff]  }
 0x116   :  { %5451 = vmatprep.subr.bf16.mxu1 %v5939_v50  ;;  %v5978_v50 = vld [vmem:[%s7452_s1 + $0x900] sm:$0xff]  }
 0x117   :  { %5430 = vmatpush3.bf16.msra.mxu0 %v5938_v49  ;;  %v5977_v49 = vld [vmem:[%s7452_s1 + $0x940] sm:$0xff]  }
 0x118   :  { %5431 = vmatprep.subr.bf16.mxu0 %v5941_v52  ;;  %v5981_v52 = vld [vmem:[%s7452_s1 + $0x980] sm:$0xff]  }
 0x119   :  { %5452 = vmatpush3.bf16.msra.mxu1 %v5940_v51  ;;  %v5979_v51 = vld [vmem:[%s7452_s1 + $0x9c0] sm:$0xff]  }
 0x11a   :  { %5453 = vmatprep.subr.bf16.mxu1 %v5943_v55  ;;  %v5983_v55 = vld [vmem:[%s7452_s1 + $0xa38] sm:$0xff]  }
 0x11b   :  { %5432 = vmatpush3.bf16.msra.mxu0 %v5942_v53  ;;  %v1053_v53 = vrot.slane %v7045_v61, %v6224_v41 }
 0x11c   :  { %5433 = vmatprep.subr.bf16.mxu0 %v5945_v59  ;;  %v5986_v59 = vld [vmem:[%s7452_s1 + $0xa70] sm:$0xff]  }
 0x11d   :  { %5454 = vmatpush3.bf16.msra.mxu1 %v5944_v58  ;;  %v1069_v58 = vcombine.high %v1053_v53, %v1053_v53 }
 0x11e   :  { %5455 = vmatprep.subr.bf16.mxu1 %v5947_v63  ;;  %v5989_v63 = vld [vmem:[%s7452_s1 + $0xab0] sm:$0xff]  }
 0x11f   :  { %5434 = vmatpush3.bf16.msra.mxu0 %v5946_v62  ;;  %v5988_v62 = vld [vmem:[%s7452_s1 + $0xaf0] sm:$0xff]  }
 0x120   :  { %5463 = vmatprep.subr.bf16.mxu0 %v5949_v4  ;;  %v5991_v4 = vld [vmem:[%s7452_s1 + $0xa28] sm:$0xff]  }
 0x121   :  { %5456 = vmatpush3.bf16.msra.mxu1 %v5948_v2  ;;  %v5990_v2 = vld [vmem:[%s7452_s1 + $0xa68] sm:$0xff]  }
 0x122   :  { %v5171_v14 = vpop.f32.mrf.mxu0  ;;  %4209 = vmatmul.mubr.bf16.vlgmr.msra.gmra.mxu0 %v1046_v3  ;;  %5485 = vmatprep.subr.bf16.mxu1 %v5951_v8 }
 0x123   :  { %5464 = vmatpush3.bf16.msra.mxu0 %v5950_v6  ;;  %4288 = vmatprep.mubr.bf16.mxu0 %v1067_v7  ;;  %v5992_v7 = vld [vmem:[%s7452_s1 + $0xae8] sm:$0xff]  }
 0x124   :  { %v5172_v17 = vpop.f32.mrf.mxu0  ;;  %v5193_v18 = vpop.f32.mrf.mxu1  ;;  %4249 = vmatmul.mubr.bf16.vlgmr.msra.gmra.mxu1 %v1068_v10  ;;  %5465 = vmatprep.subr.bf16.mxu0 %v5953_v11  ;;  %v5993_v10 = vld [vmem:[%s7452_s1 + $0xaa8] sm:$0xff]  }
 0x125   :  { %v5173_v20 = vadd.f32 %v5172_v17, %v5171_v14  ;;  %5486 = vmatpush3.bf16.msra.mxu1 %v5952_v9  ;;  %4328 = vmatprep.mubr.bf16.mxu1 %v1071_v13 }
 0x126   :  { %v5174_v22 = vpop.f32.mrf.mxu0  ;;  %v5194_v23 = vpop.f32.mrf.mxu1  ;;  %5487 = vmatprep.subr.bf16.mxu1 %v5955_v15  ;;  %v5995_v15 = vld [vmem:[%s7452_s1 + $0xa20] sm:$0xff]  }
 0x127   :  { %v3731_v25 = vadd.f32 %v5173_v20, %v6990_v38  ;;  %v5195_v26 = vadd.f32 %v5194_v23, %v5193_v18  ;;  %5466 = vmatpush3.bf16.msra.mxu0 %v5954_v12  ;;  %v5967_v38 = vld [vmem:[%s7452_s1 + $0x9d8] sm:$0xff]   ;;  %v5994_v12 = vld [vmem:[%s7452_s1 + $0xa60] sm:$0xff]   ;;  %v6002_v23 = vld [vmem:[%s7452_s1 + $0xa50] sm:$0xff]  }
 0x128   :  { %v5175_v28 = vpop.f32.mrf.mxu0  ;;  %5467 = vmatprep.subr.bf16.mxu0 %v5957_v19  ;;  %v5196_v30 = vpop.f32.mrf.mxu1  ;;  %v5997_v18 = vld [vmem:[%s7452_s1 + $0xaa0] sm:$0xff]   ;;  %v5998_v19 = vld [vmem:[%s7452_s1 + $0xa58] sm:$0xff]  }
 0x129   :  { %v7101_v31 = vadd.f32 %v5195_v26, %v3731_v25  ;;  %5488 = vmatpush3.bf16.msra.mxu1 %v5956_v16  ;;  %v5996_v16 = vld [vmem:[%s7452_s1 + $0xae0] sm:$0xff]   ;;  %v5999_v20 = vld [vmem:[%s7452_s1 + $0xa18] sm:$0xff]   ;;  %v6004_v25 = vld [vmem:[%s7452_s1 + $0xad0] sm:$0xff]  }
 0x12a   :  { %5489 = vmatprep.subr.bf16.mxu1 %v5959_v24  ;;  %v5197_v34 = vpop.f32.mrf.mxu1  ;;  %v6001_v22 = vld [vmem:[%s7452_s1 + $0xa98] sm:$0xff]   ;;  %v6003_v24 = vld [vmem:[%s7452_s1 + $0xa10] sm:$0xff]   ;;  %v6008_v28 = vld [vmem:[%s7452_s1 + $0xac8] sm:$0xff]  }
 0x12b   :  { %5468 = vmatpush3.bf16.msra.mxu0 %v5958_v21  ;;  %v6000_v21 = vld [vmem:[%s7452_s1 + $0xad8] sm:$0xff]   ;;  %v6005_v26 = vld [vmem:[%s7452_s1 + $0xa90] sm:$0xff]   ;;  %v6007_v30 = vld [vmem:[%s7452_s1 + $0xa08] sm:$0xff]  }
 0x12c   :  { %5469 = vmatprep.subr.bf16.mxu0 %v5961_v29  ;;  %v27_v29 = vld [vmem:[%s7451_s0 + $0x28] sm:$0xff] }
 0x12d   :  { %5490 = vmatpush3.bf16.msra.mxu1 %v5960_v27  ;;  %v6006_v27 = vld [vmem:[%s7452_s1 + $0xa48] sm:$0xff]  }
 0x12e   :  { %5491 = vmatprep.subr.bf16.mxu1 %v5963_v33  ;;  %v6010_v33 = vld [vmem:[%s7452_s1 + $0xa40] sm:$0xff]   ;;  %v6009_v34 = vld [vmem:[%s7452_s1 + $0xa88] sm:$0xff]  }
 0x12f   :  { %5470 = vmatpush3.bf16.msra.mxu0 %v5962_v32  ;;  %v1072_v32 = vcombine.high %v27_v29, %v27_v29 }
 0x130   :  { %5471 = vmatprep.subr.bf16.mxu0 %v5965_v36 }
 0x131   :  { %5492 = vmatpush3.bf16.msra.mxu1 %v5964_v35  ;;  %v7257_v36 = vrot.slane %v1072_v32, %v6224_v41  ;;  %v6048_v32 = vld [vmem:[%s7452_s1 + $0xc30] sm:$0xff]  }
 0x132   :  { %5493 = vmatprep.subr.bf16.mxu1 %v5967_v38  ;;  %v6011_v38 = vld [vmem:[%s7452_s1 + $0xa00] sm:$0xff]  }
 0x133   :  { %5472 = vmatpush3.bf16.msra.mxu0 %v5966_v37  ;;  %v6012_v37 = vld [vmem:[%s7452_s1 + $0xac0] sm:$0xff]  }
 0x134   :  { %5473 = vmatprep.subr.bf16.mxu0 %v5969_v40  ;;  %v1088_v40 = vcombine.high %v7257_v36, %v7257_v36 }
 0x135   :  { %5494 = vmatpush3.bf16.msra.mxu1 %v5968_v39 }
 0x136   :  { %5495 = vmatprep.subr.bf16.mxu1 %v5971_v43  ;;  %v6014_v43 = vld [vmem:[%s7452_s1 + $0xb78] sm:$0xff]  }
 0x137   :  { %5474 = vmatpush3.bf16.msra.mxu0 %v5970_v42 }
 0x138   :  { %5475 = vmatprep.subr.bf16.mxu0 %v5973_v45 }
 0x139   :  { %5496 = vmatpush3.bf16.msra.mxu1 %v5972_v44  ;;  %v6013_v44 = vld [vmem:[%s7452_s1 + $0xa80] sm:$0xff]  }
 0x13a   :  { %5497 = vmatprep.subr.bf16.mxu1 %v5975_v47  ;;  %v6016_v47 = vld [vmem:[%s7452_s1 + $0xbf8] sm:$0xff]  }
 0x13b   :  { %5476 = vmatpush3.bf16.msra.mxu0 %v5974_v46  ;;  %v1116_v46 = vrot.slane %v1088_v40, %v6224_v41 }
 0x13c   :  { %5477 = vmatprep.subr.bf16.mxu0 %v5977_v49 }
 0x13d   :  { %5498 = vmatpush3.bf16.msra.mxu1 %v5976_v48  ;;  %v6015_v48 = vld [vmem:[%s7452_s1 + $0xb38] sm:$0xff]  }
 0x13e   :  { %5499 = vmatprep.subr.bf16.mxu1 %v5979_v51  ;;  %v6017_v51 = vld [vmem:[%s7452_s1 + $0xbb8] sm:$0xff]  }
 0x13f   :  { %5478 = vmatpush3.bf16.msra.mxu0 %v5978_v50  ;;  %v6018_v50 = vld [vmem:[%s7452_s1 + $0xb70] sm:$0xff]  }
 0x140   :  { %5507 = vmatprep.subr.bf16.mxu0 %v5982_v54  ;;  %v6020_v54 = vld [vmem:[%s7452_s1 + $0xbf0] sm:$0xff]  }
 0x141   :  { %5500 = vmatpush3.bf16.msra.mxu1 %v5981_v52  ;;  %v1120_v52 = vcombine.high %v1116_v46, %v1116_v46 }
 0x142   :  { %v5215_v61 = vpop.f32.mrf.mxu0  ;;  %4289 = vmatmul.mubr.bf16.vlgmr.msra.gmra.mxu0 %v1053_v53  ;;  %5529 = vmatprep.subr.bf16.mxu1 %v5984_v56 }
 0x143   :  { %5508 = vmatpush3.bf16.msra.mxu0 %v5983_v55  ;;  %v6019_v55 = vld [vmem:[%s7452_s1 + $0xb30] sm:$0xff]  }
 0x144   :  { %v5216_v0 = vpop.f32.mrf.mxu0  ;;  %v5237_v1 = vpop.f32.mrf.mxu1  ;;  %4329 = vmatmul.mubr.bf16.vlgmr.msra.gmra.mxu1 %v1069_v58  ;;  %5509 = vmatprep.subr.bf16.mxu0 %v5986_v59  ;;  %v6022_v58 = vld [vmem:[%s7452_s1 + $0xb68] sm:$0xff]  }
 0x145   :  { %v5217_v3 = vadd.f32 %v5216_v0, %v5215_v61  ;;  %5530 = vmatpush3.bf16.msra.mxu1 %v5985_v57 }
 0x146   :  { %v5218_v5 = vpop.f32.mrf.mxu0  ;;  %v5238_v6 = vpop.f32.mrf.mxu1  ;;  %5531 = vmatprep.subr.bf16.mxu1 %v5988_v62 }
 0x147   :  { %v3811_v8 = vadd.f32 %v5217_v3, %v7101_v31  ;;  %v5239_v9 = vadd.f32 %v5238_v6, %v5237_v1  ;;  %5510 = vmatpush3.bf16.msra.mxu0 %v5987_v60  ;;  %v1079_v31 = vrot.slane %v27_v29, %v6224_v41  ;;  %v6021_v60 = vld [vmem:[%s7452_s1 + $0xbb0] sm:$0xff]   ;;  %v6047_v29 = vld [vmem:[%s7452_s1 + $0xc38] sm:$0xff]  }
 0x148   :  { %v5219_v11 = vpop.f32.mrf.mxu0  ;;  %5511 = vmatprep.subr.bf16.mxu0 %v5990_v2  ;;  %v5240_v13 = vpop.f32.mrf.mxu1  ;;  %v6023_v2 = vld [vmem:[%s7452_s1 + $0xb28] sm:$0xff]  }
 0x149   :  { %v7202_v14 = vadd.f32 %v5239_v9, %v3811_v8  ;;  %5532 = vmatpush3.bf16.msra.mxu1 %v5989_v63  ;;  %v1087_v35 = vcombine.high %v1079_v31, %v1079_v31  ;;  %v1095_v42 = vrot.slane %v1079_v31, %v6224_v41  ;;  %v6024_v63 = vld [vmem:[%s7452_s1 + $0xbe8] sm:$0xff]   ;;  %v6028_v8 = vld [vmem:[%s7452_s1 + $0xbe0] sm:$0xff]   ;;  %v6030_v11 = vld [vmem:[%s7452_s1 + $0xb58] sm:$0xff]  }
 0x14a   :  { %5533 = vmatprep.subr.bf16.mxu1 %v5992_v7  ;;  %v5241_v17 = vpop.f32.mrf.mxu1  ;;  %v6025_v7 = vld [vmem:[%s7452_s1 + $0xba8] sm:$0xff]   ;;  %v6032_v13 = vld [vmem:[%s7452_s1 + $0xbd8] sm:$0xff]  }
 0x14b   :  { %5512 = vmatpush3.bf16.msra.mxu0 %v5991_v4  ;;  %v1109_v39 = vrot.slane %v1087_v35, %v6224_v41  ;;  %v1117_v49 = vcombine.high %v1095_v42, %v1095_v42  ;;  %v6026_v4 = vld [vmem:[%s7452_s1 + $0xb60] sm:$0xff]   ;;  %v6036_v17 = vld [vmem:[%s7452_s1 + $0xbd0] sm:$0xff]  }
 0x14c   :  { %5513 = vmatprep.subr.bf16.mxu0 %v5994_v12  ;;  %v6029_v12 = vld [vmem:[%s7452_s1 + $0xba0] sm:$0xff]  }
 0x14d   :  { %5534 = vmatpush3.bf16.msra.mxu1 %v5993_v10  ;;  %4368 = vmatprep.mubr.bf16.mxu0 %v1109_v39  ;;  %v1119_v45 = vcombine.high %v1109_v39, %v1109_v39  ;;  %v6027_v10 = vld [vmem:[%s7452_s1 + $0xb20] sm:$0xff]  }
 0x14e   :  { %5535 = vmatprep.subr.bf16.mxu1 %v5996_v16  ;;  %v6033_v16 = vld [vmem:[%s7452_s1 + $0xb98] sm:$0xff]  }
 0x14f   :  { %5514 = vmatpush3.bf16.msra.mxu0 %v5995_v15  ;;  %4408 = vmatprep.mubr.bf16.mxu1 %v1119_v45  ;;  %v6034_v15 = vld [vmem:[%s7452_s1 + $0xb50] sm:$0xff]  }
 0x150   :  { %5515 = vmatprep.subr.bf16.mxu0 %v5998_v19  ;;  %v6038_v19 = vld [vmem:[%s7452_s1 + $0xb48] sm:$0xff]  }
 0x151   :  { %5536 = vmatpush3.bf16.msra.mxu1 %v5997_v18  ;;  %v6035_v18 = vld [vmem:[%s7452_s1 + $0xb10] sm:$0xff]  }
 0x152   :  { %5537 = vmatprep.subr.bf16.mxu1 %v6000_v21  ;;  %v6040_v21 = vld [vmem:[%s7452_s1 + $0xbc8] sm:$0xff]  }
 0x153   :  { %5516 = vmatpush3.bf16.msra.mxu0 %v5999_v20  ;;  %v6037_v20 = vld [vmem:[%s7452_s1 + $0xb90] sm:$0xff]  }
 0x154   :  { %5517 = vmatprep.subr.bf16.mxu0 %v6002_v23  ;;  %v6042_v23 = vld [vmem:[%s7452_s1 + $0xb40] sm:$0xff]  }
 0x155   :  { %5538 = vmatpush3.bf16.msra.mxu1 %v6001_v22  ;;  %v6039_v22 = vld [vmem:[%s7452_s1 + $0xb08] sm:$0xff]  }
 0x156   :  { %5539 = vmatprep.subr.bf16.mxu1 %v6004_v25  ;;  %v6044_v25 = vld [vmem:[%s7452_s1 + $0xbc0] sm:$0xff]  }
 0x157   :  { %5518 = vmatpush3.bf16.msra.mxu0 %v6003_v24  ;;  %v6041_v24 = vld [vmem:[%s7452_s1 + $0xb88] sm:$0xff]  }
 0x158   :  { %5519 = vmatprep.subr.bf16.mxu0 %v6006_v27  ;;  %v1102_v27 = vrot.slane %v7257_v36, %v6224_v41 }
 0x159   :  { %5540 = vmatpush3.bf16.msra.mxu1 %v6005_v26  ;;  %v6043_v26 = vld [vmem:[%s7452_s1 + $0xb00] sm:$0xff]  }
 0x15a   :  { %5541 = vmatprep.subr.bf16.mxu1 %v6008_v28  ;;  %v6046_v28 = vld [vmem:[%s7452_s1 + $0xb80] sm:$0xff]   ;;  %v1118_v31 = vcombine.high %v1102_v27, %v1102_v27 }
 0x15b   :  { %5520 = vmatpush3.bf16.msra.mxu0 %v6007_v30  ;;  %v6086_v30 = vmov 0.0  }
 0x15c   :  { %5521 = vmatprep.subr.bf16.mxu0 %v6010_v33 }
 0x15d   :  { %5542 = vmatpush3.bf16.msra.mxu1 %v6009_v34 }
 0x15e   :  { %5543 = vmatprep.subr.bf16.mxu1 %v6012_v37 }
 0x15f   :  { %5522 = vmatpush3.bf16.msra.mxu0 %v6011_v38 }
 0x160   :  { %5551 = vmatprep.subr.bf16.mxu0 %v6014_v43 }
 0x161   :  { %5544 = vmatpush3.bf16.msra.mxu1 %v6013_v44 }
 0x162   :  { %v5259_v53 = vpop.f32.mrf.mxu0  ;;  %4369 = vmatmul.mubr.bf16.vlgmr.msra.gmra.mxu0 %v1095_v42  ;;  %5573 = vmatprep.subr.bf16.mxu1 %v6016_v47 }
 0x163   :  { %5552 = vmatpush3.bf16.msra.mxu0 %v6015_v48  ;;  %4448 = vmatprep.mubr.bf16.mxu0 %v1116_v46 }
 0x164   :  { %v5260_v56 = vpop.f32.mrf.mxu0  ;;  %v5281_v57 = vpop.f32.mrf.mxu1  ;;  %4409 = vmatmul.mubr.bf16.vlgmr.msra.gmra.mxu1 %v1117_v49  ;;  %5553 = vmatprep.subr.bf16.mxu0 %v6018_v50 }
 0x165   :  { %v5261_v59 = vadd.f32 %v5260_v56, %v5259_v53  ;;  %5574 = vmatpush3.bf16.msra.mxu1 %v6017_v51  ;;  %4488 = vmatprep.mubr.bf16.mxu1 %v1120_v52 }
 0x166   :  { %v5262_v61 = vpop.f32.mrf.mxu0  ;;  %v5282_v62 = vpop.f32.mrf.mxu1  ;;  %5575 = vmatprep.subr.bf16.mxu1 %v6020_v54 }
 0x167   :  { %v3891_v0 = vadd.f32 %v5261_v59, %v7202_v14  ;;  %v5283_v1 = vadd.f32 %v5282_v62, %v5281_v57  ;;  %5554 = vmatpush3.bf16.msra.mxu0 %v6019_v55  ;;  %v6031_v14 = vld [vmem:[%s7452_s1 + $0xb18] sm:$0xff]  }
 0x168   :  { %v5263_v3 = vpop.f32.mrf.mxu0  ;;  %5555 = vmatprep.subr.bf16.mxu0 %v6022_v58  ;;  %v5284_v5 = vpop.f32.mrf.mxu1 }
 0x169   :  { %v7310_v6 = vadd.f32 %v5283_v1, %v3891_v0  ;;  %5576 = vmatpush3.bf16.msra.mxu1 %v6021_v60 }
 0x16a   :  { %5577 = vmatprep.subr.bf16.mxu1 %v6024_v63  ;;  %v5285_v9 = vpop.f32.mrf.mxu1 }
 0x16b   :  { %5556 = vmatpush3.bf16.msra.mxu0 %v6023_v2 }
 0x16c   :  { %5557 = vmatprep.subr.bf16.mxu0 %v6026_v4 }
 0x16d   :  { %5578 = vmatpush3.bf16.msra.mxu1 %v6025_v7 }
 0x16e   :  { %5579 = vmatprep.subr.bf16.mxu1 %v6028_v8 }
 0x16f   :  { %5558 = vmatpush3.bf16.msra.mxu0 %v6027_v10 }
 0x170   :  { %5559 = vmatprep.subr.bf16.mxu0 %v6030_v11 }
 0x171   :  { %5580 = vmatpush3.bf16.msra.mxu1 %v6029_v12 }
 0x172   :  { %5581 = vmatprep.subr.bf16.mxu1 %v6032_v13 }
 0x173   :  { %5560 = vmatpush3.bf16.msra.mxu0 %v6031_v14 }
 0x174   :  { %5561 = vmatprep.subr.bf16.mxu0 %v6034_v15 }
 0x175   :  { %5582 = vmatpush3.bf16.msra.mxu1 %v6033_v16 }
 0x176   :  { %5583 = vmatprep.subr.bf16.mxu1 %v6036_v17 }
 0x177   :  { %5562 = vmatpush3.bf16.msra.mxu0 %v6035_v18 }
 0x178   :  { %5563 = vmatprep.subr.bf16.mxu0 %v6038_v19 }
 0x179   :  { %5584 = vmatpush3.bf16.msra.mxu1 %v6037_v20 }
 0x17a   :  { %5585 = vmatprep.subr.bf16.mxu1 %v6040_v21 }
 0x17b   :  { %5564 = vmatpush3.bf16.msra.mxu0 %v6039_v22 }
 0x17c   :  { %5565 = vmatprep.subr.bf16.mxu0 %v6042_v23 }
 0x17d   :  { %5586 = vmatpush3.bf16.msra.mxu1 %v6041_v24 }
 0x17e   :  { %5587 = vmatprep.subr.bf16.mxu1 %v6044_v25 }
 0x17f   :  { %5566 = vmatpush3.bf16.msra.mxu0 %v6043_v26 }
 0x180   :  { %5613 = vmatprep.subr.bf16.mxu0 %v6086_v30 }
 0x181   :  { %5588 = vmatpush3.bf16.msra.mxu1 %v6046_v28 }
 0x182   :  { %v5303_v33 = vpop.f32.mrf.mxu0  ;;  %4449 = vmatmul.mubr.bf16.vlgmr.msra.gmra.mxu0 %v1102_v27  ;;  %5633 = vmatprep.subr.bf16.mxu1 %v6086_v30 }
 0x183   :  { %5614 = vmatpush3.bf16.msra.mxu0 %v6047_v29  ;;  %5629 = vmatprep.mubr.msk.bf16.mxu0 %vm6087_vm0, %v6086_v30 }
 0x184   :  { %v5304_v34 = vpop.f32.mrf.mxu0  ;;  %v5325_v35 = vpop.f32.mrf.mxu1  ;;  %4489 = vmatmul.mubr.bf16.vlgmr.msra.gmra.mxu1 %v1118_v31  ;;  %5615 = vmatprep.subr.bf16.mxu0 %v6086_v30 }
 0x185   :  { %v5305_v36 = vadd.f32 %v5304_v34, %v5303_v33  ;;  %5649 = vmatprep.mubr.msk.bf16.mxu1 %vm6087_vm0, %v6086_v30 }
 0x186   :  { %10 = vsyncpa [#allocation3], 0  ;;  %v5306_v37 = vpop.f32.mrf.mxu0  ;;  %v5326_v38 = vpop.f32.mrf.mxu1  ;;  %v6049_v42 = vld [vmem:[%s7452_s1 + $0xc28] sm:$0xff]   ;;  %v6050_v47 = vld [vmem:[%s7452_s1 + $0xc20] sm:$0xff]   ;;  %s6088_s19 = smov [#allocation2]  }
 0x187   :  { %v3971_v39 = vadd.f32 %v5305_v36, %v7310_v6  ;;  %v5327_v40 = vadd.f32 %v5326_v38, %v5325_v35  ;;  %5616 = vmatpush3.bf16.msra.mxu0 %v6048_v32  ;;  %v6051_v48 = vld [vmem:[%s7452_s1 + $0xc18] sm:$0xff]   ;;  %v6052_v49 = vld [vmem:[%s7452_s1 + $0xc10] sm:$0xff]   ;;  %v6053_v50 = vld [vmem:[%s7452_s1 + $0xc08] sm:$0xff]   ;;  %s4656_s20 = sshll.u32 %s6088_s19, 4  ;;  %s4657_s20 = int_to_ptr.vmem [resolvable:$true] %s4656_s20 }
 0x188   :  { %v5307_v43 = vpop.f32.mrf.mxu0  ;;  %5617 = vmatprep.subr.bf16.mxu0 %v6086_v30  ;;  %v5328_v44 = vpop.f32.mrf.mxu1  ;;  %v6054_v51 = vld [vmem:[%s7452_s1 + $0xc00] sm:$0xff]   ;;  %v4665_v52 = vld.sshfl [vmem:[%s7451_s0 + $0x30] sm:$0x1 pattern:$0x75316420]  ;;  %v6055_v11 = vld [vmem:[%s7454_s3 + $0x38] sm:$0xff]   ;;  %p6068_p1 = scmp.lt.s32.totalorder %s4657_s20, %s4657_s20 }
 0x189   :  { %v4011_v45 = vadd.f32 %v5327_v40, %v3971_v39  ;;  %v1134_v53 = vrot.slane %v4665_v52, %v6224_v41  ;;  %5634 = vmatpush3.bf16.msra.mxu1 %v6055_v11  ;;  %v6056_v14 = vld [vmem:[%s7454_s3 + $0x30] sm:$0xff]   ;;  %v6057_v15 = vld [vmem:[%s7454_s3 + $0x28] sm:$0xff]   ;;  %v6058_v16 = vld [vmem:[%s7454_s3 + $0x20] sm:$0xff]   ;;  %s6063_s21 = scalar_lea.vmem %s4657_s20, 32 }
 0x18a   :  { %v5329_v46 = vpop.f32.mrf.mxu1  ;;  %5635 = vmatprep.subr.bf16.mxu1 %v6086_v30  ;;  %v6059_v17 = vld [vmem:[%s7454_s3 + $0x18] sm:$0xff]   ;;  %v6060_v18 = vld [vmem:[%s7454_s3 + $0x10] sm:$0xff]   ;;  %v6061_v19 = vld [vmem:[%s7454_s3 + $0x8] sm:$0xff]   ;;  %p6064_p0 = scmp.ne.s32.totalorder %s4657_s20, %s6063_s21  ;;  %p6069_p2 = scmp.lt.s32.totalorder %s6063_s21, %s6063_s21 }
 0x18b   :  { %5618 = vmatpush3.bf16.msra.mxu0 %v6049_v42  ;;  %v6062_v23 = vld [vmem:[%s7454_s3] sm:$0xff]  }
 0x18c   :  { %5619 = vmatprep.subr.bf16.mxu0 %v6086_v30  ;;  %p6070_p3 = por %p6069_p2, %p6068_p1 }
 0x18d   :  { %5636 = vmatpush3.bf16.msra.mxu1 %v6056_v14 }
 0x18e   :  { %5637 = vmatprep.subr.bf16.mxu1 %v6086_v30  ;;  %p6071_p4 = pnand %p6070_p3, %p6064_p0 }
 0x18f   :  { %5620 = vmatpush3.bf16.msra.mxu0 %v6050_v47 }
 0x190   :  { %5621 = vmatprep.subr.bf16.mxu0 %v6086_v30 }
 0x191   :  { %5638 = vmatpush3.bf16.msra.mxu1 %v6057_v15 }
 0x192   :  { %5639 = vmatprep.subr.bf16.mxu1 %v6086_v30 }
 0x193   :  { %5622 = vmatpush3.bf16.msra.mxu0 %v6051_v48 }
 0x194   :  { %5623 = vmatprep.subr.bf16.mxu0 %v6086_v30 }
 0x195   :  { %5640 = vmatpush3.bf16.msra.mxu1 %v6058_v16 }
 0x196   :  { %5641 = vmatprep.subr.bf16.mxu1 %v6086_v30 }
 0x197   :  { %5624 = vmatpush3.bf16.msra.mxu0 %v6052_v49 }
 0x198   :  { %5625 = vmatprep.subr.bf16.mxu0 %v6086_v30 }
 0x199   :  { %5642 = vmatpush3.bf16.msra.mxu1 %v6059_v17 }
 0x19a   :  { %5643 = vmatprep.subr.bf16.mxu1 %v6086_v30 }
 0x19b   :  { %5626 = vmatpush3.bf16.msra.mxu0 %v6053_v50 }
 0x19c   :  { %5627 = vmatprep.subr.bf16.mxu0 %v6086_v30 }
 0x19d   :  { %5644 = vmatpush3.bf16.msra.mxu1 %v6060_v18 }
 0x19e   :  { %5645 = vmatprep.subr.bf16.mxu1 %v6086_v30 }
 0x19f   :  { %5628 = vmatpush3.bf16.msra.mxu0 %v6054_v51 }
 0x1a1   :  { %5646 = vmatpush3.bf16.msra.mxu1 %v6061_v19 }
 0x1a2   :  { %v5347_v54 = vpop.f32.mrf.mxu0  ;;  %5630 = vmatmul.mubr.bf16.vlgmr.msra.gmra.mxu0 %v1134_v53  ;;  %5647 = vmatprep.subr.bf16.mxu1 %v6086_v30 }
 0x1a4   :  { %v5348_v55 = vpop.f32.mrf.mxu0  ;;  %v5369_v56 = vpop.f32.mrf.mxu1 }
 0x1a5   :  { %v5349_v57 = vadd.f32 %v5348_v55, %v5347_v54  ;;  %5648 = vmatpush3.bf16.msra.mxu1 %v6062_v23 }
 0x1a6   :  { %v5350_v58 = vpop.f32.mrf.mxu0  ;;  %v5370_v59 = vpop.f32.mrf.mxu1 }
 0x1a7   :  { %v4051_v60 = vadd.f32 %v5349_v57, %v4011_v45  ;;  %v5371_v61 = vadd.f32 %v5370_v59, %v5369_v56 }
 0x1a8   :  { %v5351_v62 = vpop.f32.mrf.mxu0  ;;  %v5372_v63 = vpop.f32.mrf.mxu1 }
 0x1a9   :  { %v4091_v0 = vadd.f32 %v5371_v61, %v4051_v60 }
 0x1aa   :  { %v5373_v1 = vpop.f32.mrf.mxu1 }
 0x1c2   :  { %v5391_v2 = vpop.f32.mrf.mxu0 }
 0x1c4   :  { %v5392_v3 = vpop.f32.mrf.mxu0  ;;  %v5413_v4 = vpop.f32.mrf.mxu1 }
 0x1c5   :  { %v5393_v5 = vadd.f32 %v5392_v3, %v5391_v2 }
 0x1c6   :  { %v5394_v6 = vpop.f32.mrf.mxu0  ;;  %v5414_v41 = vpop.f32.mrf.mxu1 }
 0x1c7   :  { %v4131_v7 = vadd.f32 %v5393_v5, %v4091_v0  ;;  %v5415_v8 = vadd.f32 %v5414_v41, %v5413_v4 }
 0x1c8   :  { %v5395_v9 = vpop.f32.mrf.mxu0  ;;  %v5416_v10 = vpop.f32.mrf.mxu1 }
 0x1c9   :  { %v4171_v12 = vadd.f32 %v5415_v8, %v4131_v7 }
 0x1ca   :  { %v5417_v13 = vpop.f32.mrf.mxu1 }
 0x1e2   :  { %v5435_v20 = vpop.f32.mrf.mxu0 }
 0x1e4   :  { %v5436_v21 = vpop.f32.mrf.mxu0  ;;  %v5457_v22 = vpop.f32.mrf.mxu1 }
 0x1e5   :  { %v5437_v24 = vadd.f32 %v5436_v21, %v5435_v20 }
 0x1e6   :  { %v5438_v25 = vpop.f32.mrf.mxu0  ;;  %v5458_v26 = vpop.f32.mrf.mxu1 }
 0x1e7   :  { %v4211_v27 = vadd.f32 %v5437_v24, %v4171_v12  ;;  %v5459_v28 = vadd.f32 %v5458_v26, %v5457_v22  ;;  %v5058_v12 = vld [vmem:[%s7455_s4] ss:$0 sm:$0xff] }
 0x1e8   :  { %v5439_v29 = vpop.f32.mrf.mxu0  ;;  %v5460_v31 = vpop.f32.mrf.mxu1 }
 0x1e9   :  { %v4251_v32 = vadd.f32 %v5459_v28, %v4211_v27 }
 0x1ea   :  { %v5461_v33 = vpop.f32.mrf.mxu1 }
 0x202   :  { %v5479_v34 = vpop.f32.mrf.mxu0 }
 0x204   :  { %v5480_v35 = vpop.f32.mrf.mxu0  ;;  %v5501_v36 = vpop.f32.mrf.mxu1 }
 0x205   :  { %v5481_v30 = vadd.f32 %v5480_v35, %v5479_v34 }
 0x206   :  { %v5482_v37 = vpop.f32.mrf.mxu0  ;;  %v5502_v38 = vpop.f32.mrf.mxu1 }
 0x207   :  { %v4291_v39 = vadd.f32 %v5481_v30, %v4251_v32  ;;  %v5503_v40 = vadd.f32 %v5502_v38, %v5501_v36 }
 0x208   :  { %v5483_v42 = vpop.f32.mrf.mxu0  ;;  %v5504_v43 = vpop.f32.mrf.mxu1 }
 0x209   :  { %v4331_v44 = vadd.f32 %v5503_v40, %v4291_v39 }
 0x20a   :  { %v5505_v45 = vpop.f32.mrf.mxu1 }
 0x222   :  { %v5523_v46 = vpop.f32.mrf.mxu0 }
 0x224   :  { %v5524_v47 = vpop.f32.mrf.mxu0  ;;  %v5545_v48 = vpop.f32.mrf.mxu1 }
 0x225   :  { %v5525_v62 = vadd.f32 %v5524_v47, %v5523_v46 }
 0x226   :  { %v5526_v49 = vpop.f32.mrf.mxu0  ;;  %v5546_v50 = vpop.f32.mrf.mxu1 }
 0x227   :  { %v4371_v63 = vadd.f32 %v5525_v62, %v4331_v44  ;;  %v5547_v0 = vadd.f32 %v5546_v50, %v5545_v48 }
 0x228   :  { %v5527_v51 = vpop.f32.mrf.mxu0  ;;  %v5548_v52 = vpop.f32.mrf.mxu1 }
 0x229   :  { %v4411_v2 = vadd.f32 %v5547_v0, %v4371_v63 }
 0x22a   :  { %v5549_v53 = vpop.f32.mrf.mxu1 }
 0x242   :  { %v5567_v54 = vpop.f32.mrf.mxu0 }
 0x244   :  { %v5568_v55 = vpop.f32.mrf.mxu0  ;;  %v5589_v56 = vpop.f32.mrf.mxu1 }
 0x245   :  { %v5569_v1 = vadd.f32 %v5568_v55, %v5567_v54 }
 0x246   :  { %v5570_v57 = vpop.f32.mrf.mxu0  ;;  %v5590_v58 = vpop.f32.mrf.mxu1 }
 0x247   :  { %v4451_v3 = vadd.f32 %v5569_v1, %v4411_v2  ;;  %v5591_v4 = vadd.f32 %v5590_v58, %v5589_v56 }
 0x248   :  { %v5571_v59 = vpop.f32.mrf.mxu0  ;;  %v5592_v60 = vpop.f32.mrf.mxu1 }
 0x249   :  { %v4491_v5 = vadd.f32 %v5591_v4, %v4451_v3 }
 0x24a   :  { %v5593_v61 = vpop.f32.mrf.mxu1 }
 0x262   :  { %v4530_v6 = vpop.f32.mrf.mxu0 }
 0x263   :  { %v4531_v41 = vadd.f32 %v4530_v6, %v4491_v5 }
 0x264   :  { %v5631_v7 = vpop.f32.mrf.mxu0 }
 0x265   :  { %v4536_v8 = vmax.f32 %v4531_v41, 0.0 }
 0x266   :  { %v4533_v9 = vpop.f32.mrf.mxu0 }
 0x267   :  { %v4537_v10 = vpack.c.bf16 %v4536_v8, %v4536_v8 }
 0x268   :  { %v5632_v11 = vpop.f32.mrf.mxu0 }
 0x269   :  { %5650 = vmatmul.mubr.bf16.vlgmr.msra.gmra.mxu1 %v4537_v10 }
 0x329   :  { %v4643_v13 = vpop.f32.mrf.mxu1 }
 0x32a   :  { %v4644_v14 = vadd.f32 %v5058_v12, %v4643_v13 }
 0x32b   :  { %v5651_v15 = vpop.f32.mrf.mxu1 }
 0x32c   :  { %4649 = vst [vmem:[#allocation2] sm:$0x3] %v4644_v14 }
 0x32d   :  { %v4646_v16 = vpop.f32.mrf.mxu1 }
 0x32e   :  { %6074 = shalt.err (!%p6071_p4)
}
 0x32f   :  { %4659 = dma.vmem_to_hbm [thread:$0]  %s4657_s20, 32, %s7456_s5, [#allocation3]   ;;  %v5652_v17 = vpop.f32.mrf.mxu1 }
 0x330   :  { %6083 = dma.done.wait [#allocation3], 32  }
 0x331   :  { %6084 = vsyncadd [#allocation3], 4294967264 }
 0x332   :  { %4663 = vsyncpa [#allocation3], 1 }

</bundles_post_ra>
